<compile_context>
chip_gen: v5e
topology: v5e:2x2
jax: 0.10.0
libtpu: 0.0.40
codegen_flags: <defaults>
</compile_context>

<pallas_src>
import functools
import math

import jax
import jax.numpy as jnp
from jax.experimental import pallas as pl
from jax.experimental.pallas import tpu as pltpu

# ----------------------------- config ---------------------------------------
VOCAB = 384
HIDDEN = 128
N_LAYERS = 2
N_HEADS = 4
HEAD_DIM = HIDDEN // N_HEADS
INTERMEDIATE = 256
MAX_SEQ = 16
LN_EPS = 1e-12


# --------------------------- kernel helpers ----------------------------------

def _layernorm(x, g, b):
    mean = jnp.mean(x, axis=-1, keepdims=True)
    xc = x - mean
    var = jnp.mean(xc * xc, axis=-1, keepdims=True)
    return xc * jax.lax.rsqrt(var + LN_EPS) * g + b


def _mm(a_f32, w_bf16):
    """bf16 MXU matmul with f32 accumulation."""
    return jax.lax.dot_general(
        a_f32.astype(jnp.bfloat16), w_bf16,
        (((1,), (0,)), ((), ())),
        preferred_element_type=jnp.float32)


def _bf16_mm(a_bf16, b_bf16, contract=((1,), (0,))):
    return jax.lax.dot_general(
        a_bf16, b_bf16, (contract, ((), ())),
        preferred_element_type=jnp.float32)


def _encoder_logits(ids_ref, mask_ref, w, *, seq):
    """Embeddings + full BERT encoder + classifier for ONE sequence.

    Returns f32 logits of shape [seq, VOCAB]."""
    (word_emb, pos_emb, type_emb, eg, eb,
     wqkv, bqkv, wo, bo, l1g, l1b,
     wi, bi, wo2, bo2, l2g, l2b, cw, cb) = w
    S = seq

    # ---- fused embedding lookup: one-hot [S,V] @ word_emb [V,H] on the MXU ----
    ids = ids_ref[0]                                               # [S, 1] int32
    col_v = jax.lax.broadcasted_iota(jnp.int32, (S, VOCAB), 1)
    onehot = jnp.where(col_v == ids, 1.0, 0.0).astype(jnp.bfloat16)
    x = _bf16_mm(onehot, word_emb[...])                            # [S, H] f32
    x = x + pos_emb[0:S, :] + type_emb[0:1, :]
    x = _layernorm(x, eg[...], eb[...])

    # ---- additive key-mask bias (per-sequence; no cross-batch block-diag) ----
    bias = jnp.where(mask_ref[0] > 0.5, 0.0, -1e9).astype(jnp.float32)  # [1, S]

    scale = 1.0 / math.sqrt(HEAD_DIM)

    for l in range(N_LAYERS):
        # ---- fused QKV projection, single bf16 cast of the result ----
        qkv = _mm(x, wqkv[l]) + bqkv[l]                            # [S, 3H] f32
        qkv_bf = qkv.astype(jnp.bfloat16)                          # cast ONCE
        wo_l = wo[l]                                               # [H, H] bf16

        # ---- multi-head attention; heads folded into the output projection ----
        attn = jnp.zeros((S, HIDDEN), jnp.float32)
        for h in range(N_HEADS):
            lo, hi = h * HEAD_DIM, (h + 1) * HEAD_DIM
            qh = qkv_bf[:, lo:hi]
            kh = qkv_bf[:, HIDDEN + lo:HIDDEN + hi]
            vh = qkv_bf[:, 2 * HIDDEN + lo:2 * HIDDEN + hi]
            s = _bf16_mm(qh, kh, contract=((1,), (1,))) * scale + bias   # [S, S]
            s = s - jnp.max(s, axis=-1, keepdims=True)
            p = jnp.exp(s)
            p = p * pl.reciprocal(jnp.sum(p, axis=-1, keepdims=True), approx=True)
            ctx = _bf16_mm(p.astype(jnp.bfloat16), vh)                   # [S, dh]
            # no concat: fold this head straight into the output projection
            attn = attn + _bf16_mm(ctx.astype(jnp.bfloat16), wo_l[lo:hi, :])
        attn = attn + bo[l]
        x = _layernorm(attn + x, l1g[l], l1b[l])

        # ---- FFN: GELU intermediate, proj, residual, LayerNorm ----
        hdn = _mm(x, wi[l]) + bi[l]
        # TODO(synk): HF BERT uses exact erf-GELU; tanh approximation used here.
        hdn = jax.nn.gelu(hdn, approximate=True)
        ffn = _mm(hdn, wo2[l]) + bo2[l]
        x = _layernorm(ffn + x, l2g[l], l2b[l])

    # ---- classifier (lane-dense [S, 384] logits) ----
    return _mm(x, cw[...]) + cb[...]


def _probs_kernel(*refs, seq):
    ids_ref, mask_ref = refs[0], refs[1]
    w, probs_ref = refs[2:-1], refs[-1]
    logits = _encoder_logits(ids_ref, mask_ref, w, seq=seq)
    mx = jnp.max(logits, axis=-1, keepdims=True)
    e = jnp.exp(logits - mx)
    p = e * pl.reciprocal(jnp.sum(e, axis=-1, keepdims=True), approx=True)
    probs_ref[0] = p.astype(probs_ref.dtype)


def _loss_kernel(*refs, seq):
    ids_ref, mask_ref, y_ref = refs[0], refs[1], refs[2]
    w, nll_ref, valid_ref = refs[3:-2], refs[-2], refs[-1]
    logits = _encoder_logits(ids_ref, mask_ref, w, seq=seq)
    y = y_ref[0]                                                   # [S, 1] int32
    mx = jnp.max(logits, axis=-1, keepdims=True)
    lse = jnp.log(jnp.sum(jnp.exp(logits - mx), axis=-1, keepdims=True)) + mx
    col = jax.lax.broadcasted_iota(jnp.int32, logits.shape, 1)
    picked = jnp.sum(jnp.where(col == y, logits, 0.0), axis=-1, keepdims=True)
    valid = (y != -1)
    nll = jnp.where(valid, lse - picked, 0.0)                      # [S, 1]
    # in-kernel scalar reduction (one (1,1) store per program)
    nll_ref[0] = jnp.sum(nll, axis=0, keepdims=True)
    valid_ref[0] = jnp.sum(valid.astype(jnp.float32), axis=0, keepdims=True)


# ----------------------------- params ----------------------------------------

def init_params(key):
    def nrm(k, shape, dtype=jnp.float32):
        return (jax.random.normal(k, shape, jnp.float32) * 0.02).astype(dtype)

    ks = jax.random.split(key, 16)
    L, H, I, V = N_LAYERS, HIDDEN, INTERMEDIATE, VOCAB
    bf = jnp.bfloat16
    return {
        "word_emb": nrm(ks[0], (V, H), bf),          # used as MXU operand
        "pos_emb":  nrm(ks[1], (MAX_SEQ, H)),
        "type_emb": nrm(ks[2], (2, H)),
        "emb_ln_g": jnp.ones((1, H), jnp.float32),
        "emb_ln_b": jnp.zeros((1, H), jnp.float32),
        # per-layer weights stacked on a leading layer axis; matmul weights bf16
        "wqkv": nrm(ks[3], (L, H, 3 * H), bf),       # fused Q|K|V
        "bqkv": nrm(ks[4], (L, 1, 3 * H)),
        "wo":   nrm(ks[5], (L, H, H), bf),
        "bo":   nrm(ks[6], (L, 1, H)),
        "ln1_g": jnp.ones((L, 1, H), jnp.float32),
        "ln1_b": jnp.zeros((L, 1, H), jnp.float32),
        "wi":   nrm(ks[7], (L, H, I), bf),
        "bi":   nrm(ks[8], (L, 1, I)),
        "wo2":  nrm(ks[9], (L, I, H), bf),
        "bo2":  nrm(ks[10], (L, 1, H)),
        "ln2_g": jnp.ones((L, 1, H), jnp.float32),
        "ln2_b": jnp.zeros((L, 1, H), jnp.float32),
        "cls_w": nrm(ks[11], (H, V), bf),
        "cls_b": jnp.zeros((1, V), jnp.float32),
    }


def _weight_args(params):
    return (params["word_emb"], params["pos_emb"], params["type_emb"],
            params["emb_ln_g"], params["emb_ln_b"],
            params["wqkv"], params["bqkv"], params["wo"], params["bo"],
            params["ln1_g"], params["ln1_b"],
            params["wi"], params["bi"], params["wo2"], params["bo2"],
            params["ln2_g"], params["ln2_b"],
            params["cls_w"], params["cls_b"])


def _full_spec(arr):
    """Whole-array block, constant across the batch grid (stays VMEM-resident)."""
    nd = arr.ndim
    return pl.BlockSpec(arr.shape, lambda b, _nd=nd: (0,) * _nd)


# ----------------------------- wrappers ---------------------------------------

@jax.jit
def _predict(params, x):
    B, S = x.shape
    ids3 = x.reshape(B, S, 1).astype(jnp.int32)
    mask3 = jnp.ones((B, 1, S), jnp.float32)     # reference calls bert(x) w/o mask
    weights = _weight_args(params)
    probs = pl.pallas_call(
        functools.partial(_probs_kernel, seq=S),
        grid=(B,),
        in_specs=[pl.BlockSpec((1, S, 1), lambda b: (b, 0, 0)),
                  pl.BlockSpec((1, 1, S), lambda b: (b, 0, 0))]
                 + [_full_spec(w) for w in weights],
        out_specs=pl.BlockSpec((1, S, VOCAB), lambda b: (b, 0, 0)),
        out_shape=jax.ShapeDtypeStruct((B, S, VOCAB), jnp.float32),
        compiler_params=pltpu.CompilerParams(
            dimension_semantics=("parallel",)),
    )(ids3, mask3, *weights)
    return probs


@jax.jit
def _loss(params, x, mask, y):
    B, S = x.shape
    ids3 = x.reshape(B, S, 1).astype(jnp.int32)
    mask3 = mask.astype(jnp.float32).reshape(B, 1, S)
    y3 = y.reshape(B, S, 1).astype(jnp.int32)
    weights = _weight_args(params)
    nll_p, valid_p = pl.pallas_call(
        functools.partial(_loss_kernel, seq=S),
        grid=(B,),
        in_specs=[pl.BlockSpec((1, S, 1), lambda b: (b, 0, 0)),
                  pl.BlockSpec((1, 1, S), lambda b: (b, 0, 0)),
                  pl.BlockSpec((1, S, 1), lambda b: (b, 0, 0))]
                 + [_full_spec(w) for w in weights],
        out_specs=(pl.BlockSpec((1, 1, 1), lambda b: (b, 0, 0)),
                   pl.BlockSpec((1, 1, 1), lambda b: (b, 0, 0))),
        out_shape=(jax.ShapeDtypeStruct((B, 1, 1), jnp.float32),
                   jax.ShapeDtypeStruct((B, 1, 1), jnp.float32)),
        compiler_params=pltpu.CompilerParams(
            dimension_semantics=("parallel",)),
    )(ids3, mask3, y3, *weights)
    # tiny B-element reduce + divide (mean over non-ignored labels)
    return jnp.sum(nll_p) / jnp.maximum(jnp.sum(valid_p), 1.0)


def language_model_forward(params, x, mask=None, y=None):
    """Mirrors LanguageModel.forward: CE loss if y is given, else softmax probs."""
    if y is not None:
        m = jnp.ones(x.shape, jnp.float32) if mask is None else mask.astype(jnp.float32)
        return _loss(params, x, m, y)
    return _predict(params, x)


# TODO(synk): BERT pooler output (tanh dense on [CLS]) is unused by this
# forward pass and therefore not implemented.

# ------------------------------- main -----------------------------------------
if __name__ == "__main__":
    B, S = 2, MAX_SEQ
    key = jax.random.PRNGKey(0)
    pkey, xkey, ykey = jax.random.split(key, 3)

    params = init_params(pkey)
    x = jax.random.randint(xkey, (B, S), 0, VOCAB, dtype=jnp.int32)

    # inference path (y is None): returns softmax probabilities [B, S, VOCAB]
    probs = jax.block_until_ready(language_model_forward(params, x))
    assert probs.shape == (B, S, VOCAB)
    assert jnp.allclose(jnp.sum(probs, axis=-1), 1.0, atol=1e-2)

    # training path (y given): returns scalar CE loss with ignore_index=-1
    mask = jnp.ones((B, S), jnp.float32).at[:, S // 2:].set(0.0)   # padded tail
    y = jax.random.randint(ykey, (B, S), 0, VOCAB, dtype=jnp.int32)
    y = y.at[:, :2].set(-1)                                        # ignored labels
    loss = jax.block_until_ready(language_model_forward(params, x, mask=mask, y=y))
    assert loss.shape == () and bool(jnp.isfinite(loss))

    print("KERNEL_OK")
</pallas_src>

<mosaic_0001>
module attributes {stable_mosaic.version = 11 : i64} {
  func.func @_probs_kernel(%arg0: i32, %arg1: memref<1x16x1xi32, #tpu.memory_space<vmem>>, %arg2: memref<1x1x16xf32, #tpu.memory_space<vmem>>, %arg3: memref<384x128xbf16, #tpu.memory_space<vmem>>, %arg4: memref<16x128xf32, #tpu.memory_space<vmem>>, %arg5: memref<2x128xf32, #tpu.memory_space<vmem>>, %arg6: memref<1x128xf32, #tpu.memory_space<vmem>>, %arg7: memref<1x128xf32, #tpu.memory_space<vmem>>, %arg8: memref<2x128x384xbf16, #tpu.memory_space<vmem>>, %arg9: memref<2x1x384xf32, #tpu.memory_space<vmem>>, %arg10: memref<2x128x128xbf16, #tpu.memory_space<vmem>>, %arg11: memref<2x1x128xf32, #tpu.memory_space<vmem>>, %arg12: memref<2x1x128xf32, #tpu.memory_space<vmem>>, %arg13: memref<2x1x128xf32, #tpu.memory_space<vmem>>, %arg14: memref<2x128x256xbf16, #tpu.memory_space<vmem>>, %arg15: memref<2x1x256xf32, #tpu.memory_space<vmem>>, %arg16: memref<2x256x128xbf16, #tpu.memory_space<vmem>>, %arg17: memref<2x1x128xf32, #tpu.memory_space<vmem>>, %arg18: memref<2x1x128xf32, #tpu.memory_space<vmem>>, %arg19: memref<2x1x128xf32, #tpu.memory_space<vmem>>, %arg20: memref<128x384xbf16, #tpu.memory_space<vmem>>, %arg21: memref<1x384xf32, #tpu.memory_space<vmem>>, %arg22: memref<1x16x384xf32, #tpu.memory_space<vmem>>) attributes {dimension_semantics = [#tpu.dimension_semantics<parallel>], iteration_bounds = array<i64: 2>, scalar_prefetch = 0 : i64, scratch_operands = 0 : i64, tpu.core_type = #tpu.core_type<tc>, window_params = [{transform_indices = @transform_0, window_bounds = array<i64: 1, 16, 1>}, {transform_indices = @transform_1, window_bounds = array<i64: 1, 1, 16>}, {pipeline_mode = #tpu.pipeline_mode<synchronous>, transform_indices = @transform_2, window_bounds = array<i64: 384, 128>}, {pipeline_mode = #tpu.pipeline_mode<synchronous>, transform_indices = @transform_3, window_bounds = array<i64: 16, 128>}, {pipeline_mode = #tpu.pipeline_mode<synchronous>, transform_indices = @transform_4, window_bounds = array<i64: 2, 128>}, {pipeline_mode = #tpu.pipeline_mode<synchronous>, transform_indices = @transform_5, window_bounds = array<i64: 1, 128>}, {pipeline_mode = #tpu.pipeline_mode<synchronous>, transform_indices = @transform_6, window_bounds = array<i64: 1, 128>}, {pipeline_mode = #tpu.pipeline_mode<synchronous>, transform_indices = @transform_7, window_bounds = array<i64: 2, 128, 384>}, {pipeline_mode = #tpu.pipeline_mode<synchronous>, transform_indices = @transform_8, window_bounds = array<i64: 2, 1, 384>}, {pipeline_mode = #tpu.pipeline_mode<synchronous>, transform_indices = @transform_9, window_bounds = array<i64: 2, 128, 128>}, {pipeline_mode = #tpu.pipeline_mode<synchronous>, transform_indices = @transform_10, window_bounds = array<i64: 2, 1, 128>}, {pipeline_mode = #tpu.pipeline_mode<synchronous>, transform_indices = @transform_11, window_bounds = array<i64: 2, 1, 128>}, {pipeline_mode = #tpu.pipeline_mode<synchronous>, transform_indices = @transform_12, window_bounds = array<i64: 2, 1, 128>}, {pipeline_mode = #tpu.pipeline_mode<synchronous>, transform_indices = @transform_13, window_bounds = array<i64: 2, 128, 256>}, {pipeline_mode = #tpu.pipeline_mode<synchronous>, transform_indices = @transform_14, window_bounds = array<i64: 2, 1, 256>}, {pipeline_mode = #tpu.pipeline_mode<synchronous>, transform_indices = @transform_15, window_bounds = array<i64: 2, 256, 128>}, {pipeline_mode = #tpu.pipeline_mode<synchronous>, transform_indices = @transform_16, window_bounds = array<i64: 2, 1, 128>}, {pipeline_mode = #tpu.pipeline_mode<synchronous>, transform_indices = @transform_17, window_bounds = array<i64: 2, 1, 128>}, {pipeline_mode = #tpu.pipeline_mode<synchronous>, transform_indices = @transform_18, window_bounds = array<i64: 2, 1, 128>}, {pipeline_mode = #tpu.pipeline_mode<synchronous>, transform_indices = @transform_19, window_bounds = array<i64: 128, 384>}, {pipeline_mode = #tpu.pipeline_mode<synchronous>, transform_indices = @transform_20, window_bounds = array<i64: 1, 384>}, {transform_indices = @transform_21, window_bounds = array<i64: 1, 16, 384>}]} {
    %c0 = arith.constant 0 : index
    %c0_0 = arith.constant 0 : index
    %c0_1 = arith.constant 0 : index
    %0 = vector.load %arg1[%c0, %c0_0, %c0_1] : memref<1x16x1xi32, #tpu.memory_space<vmem>>, vector<1x16x1xi32>
    %1 = vector.shape_cast %0 : vector<1x16x1xi32> to vector<16x1xi32>
    %2 = tpu.iota {dimensions = array<i32: 1>} : vector<16x384xi32>
    %3 = vector.broadcast %1 : vector<16x1xi32> to vector<16x384xi32>
    %4 = arith.cmpi eq, %2, %3 : vector<16x384xi32>
    %cst = arith.constant 1.000000e+00 : f32
    %cst_2 = arith.constant 0.000000e+00 : f32
    %5 = vector.broadcast %cst : f32 to vector<16x384xf32>
    %6 = vector.broadcast %cst_2 : f32 to vector<16x384xf32>
    %7 = arith.select %4, %5, %6 : vector<16x384xi1>, vector<16x384xf32>
    %8 = arith.truncf %7 : vector<16x384xf32> to vector<16x384xbf16>
    %c0_3 = arith.constant 0 : index
    %c0_4 = arith.constant 0 : index
    %9 = vector.load %arg3[%c0_3, %c0_4] : memref<384x128xbf16, #tpu.memory_space<vmem>>, vector<384x128xbf16>
    %cst_5 = arith.constant dense<0.000000e+00> : vector<16x128xf32>
    %10 = tpu.matmul %8, %9, %cst_5 {dimension_numbers = #tpu.dot_dimension_numbers<[1], [0], [0], [1], [0, 0, 1, 1], [], []>} : vector<16x384xbf16>, vector<384x128xbf16>, vector<16x128xf32> -> vector<16x128xf32>
    %c0_6 = arith.constant 0 : index
    %c0_7 = arith.constant 0 : index
    %11 = vector.load %arg4[%c0_6, %c0_7] : memref<16x128xf32, #tpu.memory_space<vmem>>, vector<16x128xf32>
    %12 = arith.addf %10, %11 : vector<16x128xf32>
    %c0_8 = arith.constant 0 : index
    %c0_9 = arith.constant 0 : index
    %13 = vector.load %arg5[%c0_8, %c0_9] : memref<2x128xf32, #tpu.memory_space<vmem>>, vector<1x128xf32>
    %14 = vector.broadcast %13 : vector<1x128xf32> to vector<16x128xf32>
    %15 = arith.addf %12, %14 : vector<16x128xf32>
    %c0_10 = arith.constant 0 : index
    %c0_11 = arith.constant 0 : index
    %16 = vector.load %arg6[%c0_10, %c0_11] : memref<1x128xf32, #tpu.memory_space<vmem>>, vector<1x128xf32>
    %c0_12 = arith.constant 0 : index
    %c0_13 = arith.constant 0 : index
    %17 = vector.load %arg7[%c0_12, %c0_13] : memref<1x128xf32, #tpu.memory_space<vmem>>, vector<1x128xf32>
    %cst_14 = arith.constant dense<0.000000e+00> : vector<16xf32>
    %18 = vector.multi_reduction <add>, %15, %cst_14 [1] : vector<16x128xf32> to vector<16xf32>
    %19 = vector.shape_cast %18 : vector<16xf32> to vector<16x1xf32>
    %cst_15 = arith.constant 1.280000e+02 : f32
    %20 = vector.broadcast %cst_15 : f32 to vector<16x1xf32>
    %21 = arith.divf %19, %20 : vector<16x1xf32>
    %22 = vector.broadcast %21 : vector<16x1xf32> to vector<16x128xf32>
    %23 = arith.subf %15, %22 : vector<16x128xf32>
    %24 = arith.mulf %23, %23 : vector<16x128xf32>
    %cst_16 = arith.constant dense<0.000000e+00> : vector<16xf32>
    %25 = vector.multi_reduction <add>, %24, %cst_16 [1] : vector<16x128xf32> to vector<16xf32>
    %26 = vector.shape_cast %25 : vector<16xf32> to vector<16x1xf32>
    %cst_17 = arith.constant 1.280000e+02 : f32
    %27 = vector.broadcast %cst_17 : f32 to vector<16x1xf32>
    %28 = arith.divf %26, %27 : vector<16x1xf32>
    %cst_18 = arith.constant 9.99999996E-13 : f32
    %29 = vector.broadcast %cst_18 : f32 to vector<16x1xf32>
    %30 = arith.addf %28, %29 : vector<16x1xf32>
    %31 = math.rsqrt %30 : vector<16x1xf32>
    %32 = vector.broadcast %31 : vector<16x1xf32> to vector<16x128xf32>
    %33 = arith.mulf %23, %32 : vector<16x128xf32>
    %34 = vector.broadcast %16 : vector<1x128xf32> to vector<16x128xf32>
    %35 = arith.mulf %33, %34 : vector<16x128xf32>
    %36 = vector.broadcast %17 : vector<1x128xf32> to vector<16x128xf32>
    %37 = arith.addf %35, %36 : vector<16x128xf32>
    %c0_19 = arith.constant 0 : index
    %c0_20 = arith.constant 0 : index
    %c0_21 = arith.constant 0 : index
    %38 = vector.load %arg2[%c0_19, %c0_20, %c0_21] : memref<1x1x16xf32, #tpu.memory_space<vmem>>, vector<1x1x16xf32>
    %39 = vector.shape_cast %38 : vector<1x1x16xf32> to vector<1x16xf32>
    %cst_22 = arith.constant 5.000000e-01 : f32
    %40 = vector.broadcast %cst_22 : f32 to vector<1x16xf32>
    %41 = arith.cmpf ogt, %39, %40 : vector<1x16xf32>
    %cst_23 = arith.constant 0.000000e+00 : f32
    %cst_24 = arith.constant -1.000000e+09 : f32
    %42 = vector.broadcast %cst_23 : f32 to vector<1x16xf32>
    %43 = vector.broadcast %cst_24 : f32 to vector<1x16xf32>
    %44 = arith.select %41, %42, %43 : vector<1x16xi1>, vector<1x16xf32>
    %c0_25 = arith.constant 0 : index
    %c0_26 = arith.constant 0 : index
    %c0_27 = arith.constant 0 : index
    %45 = vector.load %arg8[%c0_25, %c0_26, %c0_27] : memref<2x128x384xbf16, #tpu.memory_space<vmem>>, vector<1x128x384xbf16>
    %46 = vector.shape_cast %45 : vector<1x128x384xbf16> to vector<128x384xbf16>
    %47 = arith.truncf %37 : vector<16x128xf32> to vector<16x128xbf16>
    %cst_28 = arith.constant dense<0.000000e+00> : vector<16x384xf32>
    %48 = tpu.matmul %47, %46, %cst_28 {dimension_numbers = #tpu.dot_dimension_numbers<[1], [0], [0], [1], [0, 0, 1, 1], [], []>} : vector<16x128xbf16>, vector<128x384xbf16>, vector<16x384xf32> -> vector<16x384xf32>
    %c0_29 = arith.constant 0 : index
    %c0_30 = arith.constant 0 : index
    %c0_31 = arith.constant 0 : index
    %49 = vector.load %arg9[%c0_29, %c0_30, %c0_31] : memref<2x1x384xf32, #tpu.memory_space<vmem>>, vector<1x1x384xf32>
    %50 = vector.shape_cast %49 : vector<1x1x384xf32> to vector<1x384xf32>
    %51 = vector.broadcast %50 : vector<1x384xf32> to vector<16x384xf32>
    %52 = arith.addf %48, %51 : vector<16x384xf32>
    %53 = arith.truncf %52 : vector<16x384xf32> to vector<16x384xbf16>
    %c0_32 = arith.constant 0 : index
    %c0_33 = arith.constant 0 : index
    %c0_34 = arith.constant 0 : index
    %54 = vector.load %arg10[%c0_32, %c0_33, %c0_34] : memref<2x128x128xbf16, #tpu.memory_space<vmem>>, vector<1x128x128xbf16>
    %55 = vector.shape_cast %54 : vector<1x128x128xbf16> to vector<128x128xbf16>
    %cst_35 = arith.constant 0.000000e+00 : f32
    %56 = vector.broadcast %cst_35 : f32 to vector<16x128xf32>
    %57 = vector.extract_strided_slice %53 {offsets = [0, 0], sizes = [16, 32], strides = [1, 1]} : vector<16x384xbf16> to vector<16x32xbf16>
    %58 = vector.extract_strided_slice %53 {offsets = [0, 128], sizes = [16, 32], strides = [1, 1]} : vector<16x384xbf16> to vector<16x32xbf16>
    %59 = vector.extract_strided_slice %53 {offsets = [0, 256], sizes = [16, 32], strides = [1, 1]} : vector<16x384xbf16> to vector<16x32xbf16>
    %cst_36 = arith.constant dense<0.000000e+00> : vector<16x16xf32>
    %60 = tpu.matmul %57, %58, %cst_36 {dimension_numbers = #tpu.dot_dimension_numbers<[1], [1], [0], [0], [0, 0, 1, 0], [], []>} : vector<16x32xbf16>, vector<16x32xbf16>, vector<16x16xf32> -> vector<16x16xf32>
    %cst_37 = arith.constant 0.176776692 : f32
    %61 = vector.broadcast %cst_37 : f32 to vector<16x16xf32>
    %62 = arith.mulf %60, %61 : vector<16x16xf32>
    %63 = vector.broadcast %44 : vector<1x16xf32> to vector<16x16xf32>
    %64 = arith.addf %62, %63 : vector<16x16xf32>
    %cst_38 = arith.constant dense<0xFF800000> : vector<16xf32>
    %65 = vector.multi_reduction <maximumf>, %64, %cst_38 [1] : vector<16x16xf32> to vector<16xf32>
    %66 = vector.shape_cast %65 : vector<16xf32> to vector<16x1xf32>
    %67 = vector.broadcast %66 : vector<16x1xf32> to vector<16x16xf32>
    %68 = arith.subf %64, %67 : vector<16x16xf32>
    %69 = math.exp %68 : vector<16x16xf32>
    %cst_39 = arith.constant dense<0.000000e+00> : vector<16xf32>
    %70 = vector.multi_reduction <add>, %69, %cst_39 [1] : vector<16x16xf32> to vector<16xf32>
    %71 = vector.shape_cast %70 : vector<16xf32> to vector<16x1xf32>
    %72 = tpu.reciprocal %71 {approx = true} : vector<16x1xf32> -> vector<16x1xf32>
    %73 = vector.broadcast %72 : vector<16x1xf32> to vector<16x16xf32>
    %74 = arith.mulf %69, %73 : vector<16x16xf32>
    %75 = arith.truncf %74 : vector<16x16xf32> to vector<16x16xbf16>
    %cst_40 = arith.constant dense<0.000000e+00> : vector<16x32xf32>
    %76 = tpu.matmul %75, %59, %cst_40 {dimension_numbers = #tpu.dot_dimension_numbers<[1], [0], [0], [1], [0, 0, 1, 1], [], []>} : vector<16x16xbf16>, vector<16x32xbf16>, vector<16x32xf32> -> vector<16x32xf32>
    %77 = arith.truncf %76 : vector<16x32xf32> to vector<16x32xbf16>
    %78 = vector.extract_strided_slice %55 {offsets = [0, 0], sizes = [32, 128], strides = [1, 1]} : vector<128x128xbf16> to vector<32x128xbf16>
    %cst_41 = arith.constant dense<0.000000e+00> : vector<16x128xf32>
    %79 = tpu.matmul %77, %78, %cst_41 {dimension_numbers = #tpu.dot_dimension_numbers<[1], [0], [0], [1], [0, 0, 1, 1], [], []>} : vector<16x32xbf16>, vector<32x128xbf16>, vector<16x128xf32> -> vector<16x128xf32>
    %80 = arith.addf %56, %79 : vector<16x128xf32>
    %81 = vector.extract_strided_slice %53 {offsets = [0, 32], sizes = [16, 32], strides = [1, 1]} : vector<16x384xbf16> to vector<16x32xbf16>
    %82 = vector.extract_strided_slice %53 {offsets = [0, 160], sizes = [16, 32], strides = [1, 1]} : vector<16x384xbf16> to vector<16x32xbf16>
    %83 = vector.extract_strided_slice %53 {offsets = [0, 288], sizes = [16, 32], strides = [1, 1]} : vector<16x384xbf16> to vector<16x32xbf16>
    %cst_42 = arith.constant dense<0.000000e+00> : vector<16x16xf32>
    %84 = tpu.matmul %81, %82, %cst_42 {dimension_numbers = #tpu.dot_dimension_numbers<[1], [1], [0], [0], [0, 0, 1, 0], [], []>} : vector<16x32xbf16>, vector<16x32xbf16>, vector<16x16xf32> -> vector<16x16xf32>
    %cst_43 = arith.constant 0.176776692 : f32
    %85 = vector.broadcast %cst_43 : f32 to vector<16x16xf32>
    %86 = arith.mulf %84, %85 : vector<16x16xf32>
    %87 = vector.broadcast %44 : vector<1x16xf32> to vector<16x16xf32>
    %88 = arith.addf %86, %87 : vector<16x16xf32>
    %cst_44 = arith.constant dense<0xFF800000> : vector<16xf32>
    %89 = vector.multi_reduction <maximumf>, %88, %cst_44 [1] : vector<16x16xf32> to vector<16xf32>
    %90 = vector.shape_cast %89 : vector<16xf32> to vector<16x1xf32>
    %91 = vector.broadcast %90 : vector<16x1xf32> to vector<16x16xf32>
    %92 = arith.subf %88, %91 : vector<16x16xf32>
    %93 = math.exp %92 : vector<16x16xf32>
    %cst_45 = arith.constant dense<0.000000e+00> : vector<16xf32>
    %94 = vector.multi_reduction <add>, %93, %cst_45 [1] : vector<16x16xf32> to vector<16xf32>
    %95 = vector.shape_cast %94 : vector<16xf32> to vector<16x1xf32>
    %96 = tpu.reciprocal %95 {approx = true} : vector<16x1xf32> -> vector<16x1xf32>
    %97 = vector.broadcast %96 : vector<16x1xf32> to vector<16x16xf32>
    %98 = arith.mulf %93, %97 : vector<16x16xf32>
    %99 = arith.truncf %98 : vector<16x16xf32> to vector<16x16xbf16>
    %cst_46 = arith.constant dense<0.000000e+00> : vector<16x32xf32>
    %100 = tpu.matmul %99, %83, %cst_46 {dimension_numbers = #tpu.dot_dimension_numbers<[1], [0], [0], [1], [0, 0, 1, 1], [], []>} : vector<16x16xbf16>, vector<16x32xbf16>, vector<16x32xf32> -> vector<16x32xf32>
    %101 = arith.truncf %100 : vector<16x32xf32> to vector<16x32xbf16>
    %102 = vector.extract_strided_slice %55 {offsets = [32, 0], sizes = [32, 128], strides = [1, 1]} : vector<128x128xbf16> to vector<32x128xbf16>
    %cst_47 = arith.constant dense<0.000000e+00> : vector<16x128xf32>
    %103 = tpu.matmul %101, %102, %cst_47 {dimension_numbers = #tpu.dot_dimension_numbers<[1], [0], [0], [1], [0, 0, 1, 1], [], []>} : vector<16x32xbf16>, vector<32x128xbf16>, vector<16x128xf32> -> vector<16x128xf32>
    %104 = arith.addf %80, %103 : vector<16x128xf32>
    %105 = vector.extract_strided_slice %53 {offsets = [0, 64], sizes = [16, 32], strides = [1, 1]} : vector<16x384xbf16> to vector<16x32xbf16>
    %106 = vector.extract_strided_slice %53 {offsets = [0, 192], sizes = [16, 32], strides = [1, 1]} : vector<16x384xbf16> to vector<16x32xbf16>
    %107 = vector.extract_strided_slice %53 {offsets = [0, 320], sizes = [16, 32], strides = [1, 1]} : vector<16x384xbf16> to vector<16x32xbf16>
    %cst_48 = arith.constant dense<0.000000e+00> : vector<16x16xf32>
    %108 = tpu.matmul %105, %106, %cst_48 {dimension_numbers = #tpu.dot_dimension_numbers<[1], [1], [0], [0], [0, 0, 1, 0], [], []>} : vector<16x32xbf16>, vector<16x32xbf16>, vector<16x16xf32> -> vector<16x16xf32>
    %cst_49 = arith.constant 0.176776692 : f32
    %109 = vector.broadcast %cst_49 : f32 to vector<16x16xf32>
    %110 = arith.mulf %108, %109 : vector<16x16xf32>
    %111 = vector.broadcast %44 : vector<1x16xf32> to vector<16x16xf32>
    %112 = arith.addf %110, %111 : vector<16x16xf32>
    %cst_50 = arith.constant dense<0xFF800000> : vector<16xf32>
    %113 = vector.multi_reduction <maximumf>, %112, %cst_50 [1] : vector<16x16xf32> to vector<16xf32>
    %114 = vector.shape_cast %113 : vector<16xf32> to vector<16x1xf32>
    %115 = vector.broadcast %114 : vector<16x1xf32> to vector<16x16xf32>
    %116 = arith.subf %112, %115 : vector<16x16xf32>
    %117 = math.exp %116 : vector<16x16xf32>
    %cst_51 = arith.constant dense<0.000000e+00> : vector<16xf32>
    %118 = vector.multi_reduction <add>, %117, %cst_51 [1] : vector<16x16xf32> to vector<16xf32>
    %119 = vector.shape_cast %118 : vector<16xf32> to vector<16x1xf32>
    %120 = tpu.reciprocal %119 {approx = true} : vector<16x1xf32> -> vector<16x1xf32>
    %121 = vector.broadcast %120 : vector<16x1xf32> to vector<16x16xf32>
    %122 = arith.mulf %117, %121 : vector<16x16xf32>
    %123 = arith.truncf %122 : vector<16x16xf32> to vector<16x16xbf16>
    %cst_52 = arith.constant dense<0.000000e+00> : vector<16x32xf32>
    %124 = tpu.matmul %123, %107, %cst_52 {dimension_numbers = #tpu.dot_dimension_numbers<[1], [0], [0], [1], [0, 0, 1, 1], [], []>} : vector<16x16xbf16>, vector<16x32xbf16>, vector<16x32xf32> -> vector<16x32xf32>
    %125 = arith.truncf %124 : vector<16x32xf32> to vector<16x32xbf16>
    %126 = vector.extract_strided_slice %55 {offsets = [64, 0], sizes = [32, 128], strides = [1, 1]} : vector<128x128xbf16> to vector<32x128xbf16>
    %cst_53 = arith.constant dense<0.000000e+00> : vector<16x128xf32>
    %127 = tpu.matmul %125, %126, %cst_53 {dimension_numbers = #tpu.dot_dimension_numbers<[1], [0], [0], [1], [0, 0, 1, 1], [], []>} : vector<16x32xbf16>, vector<32x128xbf16>, vector<16x128xf32> -> vector<16x128xf32>
    %128 = arith.addf %104, %127 : vector<16x128xf32>
    %129 = vector.extract_strided_slice %53 {offsets = [0, 96], sizes = [16, 32], strides = [1, 1]} : vector<16x384xbf16> to vector<16x32xbf16>
    %130 = vector.extract_strided_slice %53 {offsets = [0, 224], sizes = [16, 32], strides = [1, 1]} : vector<16x384xbf16> to vector<16x32xbf16>
    %131 = vector.extract_strided_slice %53 {offsets = [0, 352], sizes = [16, 32], strides = [1, 1]} : vector<16x384xbf16> to vector<16x32xbf16>
    %cst_54 = arith.constant dense<0.000000e+00> : vector<16x16xf32>
    %132 = tpu.matmul %129, %130, %cst_54 {dimension_numbers = #tpu.dot_dimension_numbers<[1], [1], [0], [0], [0, 0, 1, 0], [], []>} : vector<16x32xbf16>, vector<16x32xbf16>, vector<16x16xf32> -> vector<16x16xf32>
    %cst_55 = arith.constant 0.176776692 : f32
    %133 = vector.broadcast %cst_55 : f32 to vector<16x16xf32>
    %134 = arith.mulf %132, %133 : vector<16x16xf32>
    %135 = vector.broadcast %44 : vector<1x16xf32> to vector<16x16xf32>
    %136 = arith.addf %134, %135 : vector<16x16xf32>
    %cst_56 = arith.constant dense<0xFF800000> : vector<16xf32>
    %137 = vector.multi_reduction <maximumf>, %136, %cst_56 [1] : vector<16x16xf32> to vector<16xf32>
    %138 = vector.shape_cast %137 : vector<16xf32> to vector<16x1xf32>
    %139 = vector.broadcast %138 : vector<16x1xf32> to vector<16x16xf32>
    %140 = arith.subf %136, %139 : vector<16x16xf32>
    %141 = math.exp %140 : vector<16x16xf32>
    %cst_57 = arith.constant dense<0.000000e+00> : vector<16xf32>
    %142 = vector.multi_reduction <add>, %141, %cst_57 [1] : vector<16x16xf32> to vector<16xf32>
    %143 = vector.shape_cast %142 : vector<16xf32> to vector<16x1xf32>
    %144 = tpu.reciprocal %143 {approx = true} : vector<16x1xf32> -> vector<16x1xf32>
    %145 = vector.broadcast %144 : vector<16x1xf32> to vector<16x16xf32>
    %146 = arith.mulf %141, %145 : vector<16x16xf32>
    %147 = arith.truncf %146 : vector<16x16xf32> to vector<16x16xbf16>
    %cst_58 = arith.constant dense<0.000000e+00> : vector<16x32xf32>
    %148 = tpu.matmul %147, %131, %cst_58 {dimension_numbers = #tpu.dot_dimension_numbers<[1], [0], [0], [1], [0, 0, 1, 1], [], []>} : vector<16x16xbf16>, vector<16x32xbf16>, vector<16x32xf32> -> vector<16x32xf32>
    %149 = arith.truncf %148 : vector<16x32xf32> to vector<16x32xbf16>
    %150 = vector.extract_strided_slice %55 {offsets = [96, 0], sizes = [32, 128], strides = [1, 1]} : vector<128x128xbf16> to vector<32x128xbf16>
    %cst_59 = arith.constant dense<0.000000e+00> : vector<16x128xf32>
    %151 = tpu.matmul %149, %150, %cst_59 {dimension_numbers = #tpu.dot_dimension_numbers<[1], [0], [0], [1], [0, 0, 1, 1], [], []>} : vector<16x32xbf16>, vector<32x128xbf16>, vector<16x128xf32> -> vector<16x128xf32>
    %152 = arith.addf %128, %151 : vector<16x128xf32>
    %c0_60 = arith.constant 0 : index
    %c0_61 = arith.constant 0 : index
    %c0_62 = arith.constant 0 : index
    %153 = vector.load %arg11[%c0_60, %c0_61, %c0_62] : memref<2x1x128xf32, #tpu.memory_space<vmem>>, vector<1x1x128xf32>
    %154 = vector.shape_cast %153 : vector<1x1x128xf32> to vector<1x128xf32>
    %155 = vector.broadcast %154 : vector<1x128xf32> to vector<16x128xf32>
    %156 = arith.addf %152, %155 : vector<16x128xf32>
    %157 = arith.addf %156, %37 : vector<16x128xf32>
    %c0_63 = arith.constant 0 : index
    %c0_64 = arith.constant 0 : index
    %c0_65 = arith.constant 0 : index
    %158 = vector.load %arg12[%c0_63, %c0_64, %c0_65] : memref<2x1x128xf32, #tpu.memory_space<vmem>>, vector<1x1x128xf32>
    %159 = vector.shape_cast %158 : vector<1x1x128xf32> to vector<1x128xf32>
    %c0_66 = arith.constant 0 : index
    %c0_67 = arith.constant 0 : index
    %c0_68 = arith.constant 0 : index
    %160 = vector.load %arg13[%c0_66, %c0_67, %c0_68] : memref<2x1x128xf32, #tpu.memory_space<vmem>>, vector<1x1x128xf32>
    %161 = vector.shape_cast %160 : vector<1x1x128xf32> to vector<1x128xf32>
    %cst_69 = arith.constant dense<0.000000e+00> : vector<16xf32>
    %162 = vector.multi_reduction <add>, %157, %cst_69 [1] : vector<16x128xf32> to vector<16xf32>
    %163 = vector.shape_cast %162 : vector<16xf32> to vector<16x1xf32>
    %cst_70 = arith.constant 1.280000e+02 : f32
    %164 = vector.broadcast %cst_70 : f32 to vector<16x1xf32>
    %165 = arith.divf %163, %164 : vector<16x1xf32>
    %166 = vector.broadcast %165 : vector<16x1xf32> to vector<16x128xf32>
    %167 = arith.subf %157, %166 : vector<16x128xf32>
    %168 = arith.mulf %167, %167 : vector<16x128xf32>
    %cst_71 = arith.constant dense<0.000000e+00> : vector<16xf32>
    %169 = vector.multi_reduction <add>, %168, %cst_71 [1] : vector<16x128xf32> to vector<16xf32>
    %170 = vector.shape_cast %169 : vector<16xf32> to vector<16x1xf32>
    %cst_72 = arith.constant 1.280000e+02 : f32
    %171 = vector.broadcast %cst_72 : f32 to vector<16x1xf32>
    %172 = arith.divf %170, %171 : vector<16x1xf32>
    %cst_73 = arith.constant 9.99999996E-13 : f32
    %173 = vector.broadcast %cst_73 : f32 to vector<16x1xf32>
    %174 = arith.addf %172, %173 : vector<16x1xf32>
    %175 = math.rsqrt %174 : vector<16x1xf32>
    %176 = vector.broadcast %175 : vector<16x1xf32> to vector<16x128xf32>
    %177 = arith.mulf %167, %176 : vector<16x128xf32>
    %178 = vector.broadcast %159 : vector<1x128xf32> to vector<16x128xf32>
    %179 = arith.mulf %177, %178 : vector<16x128xf32>
    %180 = vector.broadcast %161 : vector<1x128xf32> to vector<16x128xf32>
    %181 = arith.addf %179, %180 : vector<16x128xf32>
    %c0_74 = arith.constant 0 : index
    %c0_75 = arith.constant 0 : index
    %c0_76 = arith.constant 0 : index
    %182 = vector.load %arg14[%c0_74, %c0_75, %c0_76] : memref<2x128x256xbf16, #tpu.memory_space<vmem>>, vector<1x128x256xbf16>
    %183 = vector.shape_cast %182 : vector<1x128x256xbf16> to vector<128x256xbf16>
    %184 = arith.truncf %181 : vector<16x128xf32> to vector<16x128xbf16>
    %cst_77 = arith.constant dense<0.000000e+00> : vector<16x256xf32>
    %185 = tpu.matmul %184, %183, %cst_77 {dimension_numbers = #tpu.dot_dimension_numbers<[1], [0], [0], [1], [0, 0, 1, 1], [], []>} : vector<16x128xbf16>, vector<128x256xbf16>, vector<16x256xf32> -> vector<16x256xf32>
    %c0_78 = arith.constant 0 : index
    %c0_79 = arith.constant 0 : index
    %c0_80 = arith.constant 0 : index
    %186 = vector.load %arg15[%c0_78, %c0_79, %c0_80] : memref<2x1x256xf32, #tpu.memory_space<vmem>>, vector<1x1x256xf32>
    %187 = vector.shape_cast %186 : vector<1x1x256xf32> to vector<1x256xf32>
    %188 = vector.broadcast %187 : vector<1x256xf32> to vector<16x256xf32>
    %189 = arith.addf %185, %188 : vector<16x256xf32>
    %190 = arith.mulf %189, %189 : vector<16x256xf32>
    %191 = arith.mulf %189, %190 : vector<16x256xf32>
    %cst_81 = arith.constant 4.471500e-02 : f32
    %192 = vector.broadcast %cst_81 : f32 to vector<16x256xf32>
    %193 = arith.mulf %192, %191 : vector<16x256xf32>
    %194 = arith.addf %189, %193 : vector<16x256xf32>
    %cst_82 = arith.constant 0.797884583 : f32
    %195 = vector.broadcast %cst_82 : f32 to vector<16x256xf32>
    %196 = arith.mulf %195, %194 : vector<16x256xf32>
    %197 = math.tanh %196 : vector<16x256xf32>
    %cst_83 = arith.constant 1.000000e+00 : f32
    %198 = vector.broadcast %cst_83 : f32 to vector<16x256xf32>
    %199 = arith.addf %198, %197 : vector<16x256xf32>
    %cst_84 = arith.constant 5.000000e-01 : f32
    %200 = vector.broadcast %cst_84 : f32 to vector<16x256xf32>
    %201 = arith.mulf %200, %199 : vector<16x256xf32>
    %202 = arith.mulf %189, %201 : vector<16x256xf32>
    %c0_85 = arith.constant 0 : index
    %c0_86 = arith.constant 0 : index
    %c0_87 = arith.constant 0 : index
    %203 = vector.load %arg16[%c0_85, %c0_86, %c0_87] : memref<2x256x128xbf16, #tpu.memory_space<vmem>>, vector<1x256x128xbf16>
    %204 = vector.shape_cast %203 : vector<1x256x128xbf16> to vector<256x128xbf16>
    %205 = arith.truncf %202 : vector<16x256xf32> to vector<16x256xbf16>
    %cst_88 = arith.constant dense<0.000000e+00> : vector<16x128xf32>
    %206 = tpu.matmul %205, %204, %cst_88 {dimension_numbers = #tpu.dot_dimension_numbers<[1], [0], [0], [1], [0, 0, 1, 1], [], []>} : vector<16x256xbf16>, vector<256x128xbf16>, vector<16x128xf32> -> vector<16x128xf32>
    %c0_89 = arith.constant 0 : index
    %c0_90 = arith.constant 0 : index
    %c0_91 = arith.constant 0 : index
    %207 = vector.load %arg17[%c0_89, %c0_90, %c0_91] : memref<2x1x128xf32, #tpu.memory_space<vmem>>, vector<1x1x128xf32>
    %208 = vector.shape_cast %207 : vector<1x1x128xf32> to vector<1x128xf32>
    %209 = vector.broadcast %208 : vector<1x128xf32> to vector<16x128xf32>
    %210 = arith.addf %206, %209 : vector<16x128xf32>
    %211 = arith.addf %210, %181 : vector<16x128xf32>
    %c0_92 = arith.constant 0 : index
    %c0_93 = arith.constant 0 : index
    %c0_94 = arith.constant 0 : index
    %212 = vector.load %arg18[%c0_92, %c0_93, %c0_94] : memref<2x1x128xf32, #tpu.memory_space<vmem>>, vector<1x1x128xf32>
    %213 = vector.shape_cast %212 : vector<1x1x128xf32> to vector<1x128xf32>
    %c0_95 = arith.constant 0 : index
    %c0_96 = arith.constant 0 : index
    %c0_97 = arith.constant 0 : index
    %214 = vector.load %arg19[%c0_95, %c0_96, %c0_97] : memref<2x1x128xf32, #tpu.memory_space<vmem>>, vector<1x1x128xf32>
    %215 = vector.shape_cast %214 : vector<1x1x128xf32> to vector<1x128xf32>
    %cst_98 = arith.constant dense<0.000000e+00> : vector<16xf32>
    %216 = vector.multi_reduction <add>, %211, %cst_98 [1] : vector<16x128xf32> to vector<16xf32>
    %217 = vector.shape_cast %216 : vector<16xf32> to vector<16x1xf32>
    %cst_99 = arith.constant 1.280000e+02 : f32
    %218 = vector.broadcast %cst_99 : f32 to vector<16x1xf32>
    %219 = arith.divf %217, %218 : vector<16x1xf32>
    %220 = vector.broadcast %219 : vector<16x1xf32> to vector<16x128xf32>
    %221 = arith.subf %211, %220 : vector<16x128xf32>
    %222 = arith.mulf %221, %221 : vector<16x128xf32>
    %cst_100 = arith.constant dense<0.000000e+00> : vector<16xf32>
    %223 = vector.multi_reduction <add>, %222, %cst_100 [1] : vector<16x128xf32> to vector<16xf32>
    %224 = vector.shape_cast %223 : vector<16xf32> to vector<16x1xf32>
    %cst_101 = arith.constant 1.280000e+02 : f32
    %225 = vector.broadcast %cst_101 : f32 to vector<16x1xf32>
    %226 = arith.divf %224, %225 : vector<16x1xf32>
    %cst_102 = arith.constant 9.99999996E-13 : f32
    %227 = vector.broadcast %cst_102 : f32 to vector<16x1xf32>
    %228 = arith.addf %226, %227 : vector<16x1xf32>
    %229 = math.rsqrt %228 : vector<16x1xf32>
    %230 = vector.broadcast %229 : vector<16x1xf32> to vector<16x128xf32>
    %231 = arith.mulf %221, %230 : vector<16x128xf32>
    %232 = vector.broadcast %213 : vector<1x128xf32> to vector<16x128xf32>
    %233 = arith.mulf %231, %232 : vector<16x128xf32>
    %234 = vector.broadcast %215 : vector<1x128xf32> to vector<16x128xf32>
    %235 = arith.addf %233, %234 : vector<16x128xf32>
    %c1 = arith.constant 1 : index
    %c0_103 = arith.constant 0 : index
    %c0_104 = arith.constant 0 : index
    %236 = vector.load %arg8[%c1, %c0_103, %c0_104] : memref<2x128x384xbf16, #tpu.memory_space<vmem>>, vector<1x128x384xbf16>
    %237 = vector.shape_cast %236 : vector<1x128x384xbf16> to vector<128x384xbf16>
    %238 = arith.truncf %235 : vector<16x128xf32> to vector<16x128xbf16>
    %cst_105 = arith.constant dense<0.000000e+00> : vector<16x384xf32>
    %239 = tpu.matmul %238, %237, %cst_105 {dimension_numbers = #tpu.dot_dimension_numbers<[1], [0], [0], [1], [0, 0, 1, 1], [], []>} : vector<16x128xbf16>, vector<128x384xbf16>, vector<16x384xf32> -> vector<16x384xf32>
    %c1_106 = arith.constant 1 : index
    %c0_107 = arith.constant 0 : index
    %c0_108 = arith.constant 0 : index
    %240 = vector.load %arg9[%c1_106, %c0_107, %c0_108] : memref<2x1x384xf32, #tpu.memory_space<vmem>>, vector<1x1x384xf32>
    %241 = vector.shape_cast %240 : vector<1x1x384xf32> to vector<1x384xf32>
    %242 = vector.broadcast %241 : vector<1x384xf32> to vector<16x384xf32>
    %243 = arith.addf %239, %242 : vector<16x384xf32>
    %244 = arith.truncf %243 : vector<16x384xf32> to vector<16x384xbf16>
    %c1_109 = arith.constant 1 : index
    %c0_110 = arith.constant 0 : index
    %c0_111 = arith.constant 0 : index
    %245 = vector.load %arg10[%c1_109, %c0_110, %c0_111] : memref<2x128x128xbf16, #tpu.memory_space<vmem>>, vector<1x128x128xbf16>
    %246 = vector.shape_cast %245 : vector<1x128x128xbf16> to vector<128x128xbf16>
    %cst_112 = arith.constant 0.000000e+00 : f32
    %247 = vector.broadcast %cst_112 : f32 to vector<16x128xf32>
    %248 = vector.extract_strided_slice %244 {offsets = [0, 0], sizes = [16, 32], strides = [1, 1]} : vector<16x384xbf16> to vector<16x32xbf16>
    %249 = vector.extract_strided_slice %244 {offsets = [0, 128], sizes = [16, 32], strides = [1, 1]} : vector<16x384xbf16> to vector<16x32xbf16>
    %250 = vector.extract_strided_slice %244 {offsets = [0, 256], sizes = [16, 32], strides = [1, 1]} : vector<16x384xbf16> to vector<16x32xbf16>
    %cst_113 = arith.constant dense<0.000000e+00> : vector<16x16xf32>
    %251 = tpu.matmul %248, %249, %cst_113 {dimension_numbers = #tpu.dot_dimension_numbers<[1], [1], [0], [0], [0, 0, 1, 0], [], []>} : vector<16x32xbf16>, vector<16x32xbf16>, vector<16x16xf32> -> vector<16x16xf32>
    %cst_114 = arith.constant 0.176776692 : f32
    %252 = vector.broadcast %cst_114 : f32 to vector<16x16xf32>
    %253 = arith.mulf %251, %252 : vector<16x16xf32>
    %254 = vector.broadcast %44 : vector<1x16xf32> to vector<16x16xf32>
    %255 = arith.addf %253, %254 : vector<16x16xf32>
    %cst_115 = arith.constant dense<0xFF800000> : vector<16xf32>
    %256 = vector.multi_reduction <maximumf>, %255, %cst_115 [1] : vector<16x16xf32> to vector<16xf32>
    %257 = vector.shape_cast %256 : vector<16xf32> to vector<16x1xf32>
    %258 = vector.broadcast %257 : vector<16x1xf32> to vector<16x16xf32>
    %259 = arith.subf %255, %258 : vector<16x16xf32>
    %260 = math.exp %259 : vector<16x16xf32>
    %cst_116 = arith.constant dense<0.000000e+00> : vector<16xf32>
    %261 = vector.multi_reduction <add>, %260, %cst_116 [1] : vector<16x16xf32> to vector<16xf32>
    %262 = vector.shape_cast %261 : vector<16xf32> to vector<16x1xf32>
    %263 = tpu.reciprocal %262 {approx = true} : vector<16x1xf32> -> vector<16x1xf32>
    %264 = vector.broadcast %263 : vector<16x1xf32> to vector<16x16xf32>
    %265 = arith.mulf %260, %264 : vector<16x16xf32>
    %266 = arith.truncf %265 : vector<16x16xf32> to vector<16x16xbf16>
    %cst_117 = arith.constant dense<0.000000e+00> : vector<16x32xf32>
    %267 = tpu.matmul %266, %250, %cst_117 {dimension_numbers = #tpu.dot_dimension_numbers<[1], [0], [0], [1], [0, 0, 1, 1], [], []>} : vector<16x16xbf16>, vector<16x32xbf16>, vector<16x32xf32> -> vector<16x32xf32>
    %268 = arith.truncf %267 : vector<16x32xf32> to vector<16x32xbf16>
    %269 = vector.extract_strided_slice %246 {offsets = [0, 0], sizes = [32, 128], strides = [1, 1]} : vector<128x128xbf16> to vector<32x128xbf16>
    %cst_118 = arith.constant dense<0.000000e+00> : vector<16x128xf32>
    %270 = tpu.matmul %268, %269, %cst_118 {dimension_numbers = #tpu.dot_dimension_numbers<[1], [0], [0], [1], [0, 0, 1, 1], [], []>} : vector<16x32xbf16>, vector<32x128xbf16>, vector<16x128xf32> -> vector<16x128xf32>
    %271 = arith.addf %247, %270 : vector<16x128xf32>
    %272 = vector.extract_strided_slice %244 {offsets = [0, 32], sizes = [16, 32], strides = [1, 1]} : vector<16x384xbf16> to vector<16x32xbf16>
    %273 = vector.extract_strided_slice %244 {offsets = [0, 160], sizes = [16, 32], strides = [1, 1]} : vector<16x384xbf16> to vector<16x32xbf16>
    %274 = vector.extract_strided_slice %244 {offsets = [0, 288], sizes = [16, 32], strides = [1, 1]} : vector<16x384xbf16> to vector<16x32xbf16>
    %cst_119 = arith.constant dense<0.000000e+00> : vector<16x16xf32>
    %275 = tpu.matmul %272, %273, %cst_119 {dimension_numbers = #tpu.dot_dimension_numbers<[1], [1], [0], [0], [0, 0, 1, 0], [], []>} : vector<16x32xbf16>, vector<16x32xbf16>, vector<16x16xf32> -> vector<16x16xf32>
    %cst_120 = arith.constant 0.176776692 : f32
    %276 = vector.broadcast %cst_120 : f32 to vector<16x16xf32>
    %277 = arith.mulf %275, %276 : vector<16x16xf32>
    %278 = vector.broadcast %44 : vector<1x16xf32> to vector<16x16xf32>
    %279 = arith.addf %277, %278 : vector<16x16xf32>
    %cst_121 = arith.constant dense<0xFF800000> : vector<16xf32>
    %280 = vector.multi_reduction <maximumf>, %279, %cst_121 [1] : vector<16x16xf32> to vector<16xf32>
    %281 = vector.shape_cast %280 : vector<16xf32> to vector<16x1xf32>
    %282 = vector.broadcast %281 : vector<16x1xf32> to vector<16x16xf32>
    %283 = arith.subf %279, %282 : vector<16x16xf32>
    %284 = math.exp %283 : vector<16x16xf32>
    %cst_122 = arith.constant dense<0.000000e+00> : vector<16xf32>
    %285 = vector.multi_reduction <add>, %284, %cst_122 [1] : vector<16x16xf32> to vector<16xf32>
    %286 = vector.shape_cast %285 : vector<16xf32> to vector<16x1xf32>
    %287 = tpu.reciprocal %286 {approx = true} : vector<16x1xf32> -> vector<16x1xf32>
    %288 = vector.broadcast %287 : vector<16x1xf32> to vector<16x16xf32>
    %289 = arith.mulf %284, %288 : vector<16x16xf32>
    %290 = arith.truncf %289 : vector<16x16xf32> to vector<16x16xbf16>
    %cst_123 = arith.constant dense<0.000000e+00> : vector<16x32xf32>
    %291 = tpu.matmul %290, %274, %cst_123 {dimension_numbers = #tpu.dot_dimension_numbers<[1], [0], [0], [1], [0, 0, 1, 1], [], []>} : vector<16x16xbf16>, vector<16x32xbf16>, vector<16x32xf32> -> vector<16x32xf32>
    %292 = arith.truncf %291 : vector<16x32xf32> to vector<16x32xbf16>
    %293 = vector.extract_strided_slice %246 {offsets = [32, 0], sizes = [32, 128], strides = [1, 1]} : vector<128x128xbf16> to vector<32x128xbf16>
    %cst_124 = arith.constant dense<0.000000e+00> : vector<16x128xf32>
    %294 = tpu.matmul %292, %293, %cst_124 {dimension_numbers = #tpu.dot_dimension_numbers<[1], [0], [0], [1], [0, 0, 1, 1], [], []>} : vector<16x32xbf16>, vector<32x128xbf16>, vector<16x128xf32> -> vector<16x128xf32>
    %295 = arith.addf %271, %294 : vector<16x128xf32>
    %296 = vector.extract_strided_slice %244 {offsets = [0, 64], sizes = [16, 32], strides = [1, 1]} : vector<16x384xbf16> to vector<16x32xbf16>
    %297 = vector.extract_strided_slice %244 {offsets = [0, 192], sizes = [16, 32], strides = [1, 1]} : vector<16x384xbf16> to vector<16x32xbf16>
    %298 = vector.extract_strided_slice %244 {offsets = [0, 320], sizes = [16, 32], strides = [1, 1]} : vector<16x384xbf16> to vector<16x32xbf16>
    %cst_125 = arith.constant dense<0.000000e+00> : vector<16x16xf32>
    %299 = tpu.matmul %296, %297, %cst_125 {dimension_numbers = #tpu.dot_dimension_numbers<[1], [1], [0], [0], [0, 0, 1, 0], [], []>} : vector<16x32xbf16>, vector<16x32xbf16>, vector<16x16xf32> -> vector<16x16xf32>
    %cst_126 = arith.constant 0.176776692 : f32
    %300 = vector.broadcast %cst_126 : f32 to vector<16x16xf32>
    %301 = arith.mulf %299, %300 : vector<16x16xf32>
    %302 = vector.broadcast %44 : vector<1x16xf32> to vector<16x16xf32>
    %303 = arith.addf %301, %302 : vector<16x16xf32>
    %cst_127 = arith.constant dense<0xFF800000> : vector<16xf32>
    %304 = vector.multi_reduction <maximumf>, %303, %cst_127 [1] : vector<16x16xf32> to vector<16xf32>
    %305 = vector.shape_cast %304 : vector<16xf32> to vector<16x1xf32>
    %306 = vector.broadcast %305 : vector<16x1xf32> to vector<16x16xf32>
    %307 = arith.subf %303, %306 : vector<16x16xf32>
    %308 = math.exp %307 : vector<16x16xf32>
    %cst_128 = arith.constant dense<0.000000e+00> : vector<16xf32>
    %309 = vector.multi_reduction <add>, %308, %cst_128 [1] : vector<16x16xf32> to vector<16xf32>
    %310 = vector.shape_cast %309 : vector<16xf32> to vector<16x1xf32>
    %311 = tpu.reciprocal %310 {approx = true} : vector<16x1xf32> -> vector<16x1xf32>
    %312 = vector.broadcast %311 : vector<16x1xf32> to vector<16x16xf32>
    %313 = arith.mulf %308, %312 : vector<16x16xf32>
    %314 = arith.truncf %313 : vector<16x16xf32> to vector<16x16xbf16>
    %cst_129 = arith.constant dense<0.000000e+00> : vector<16x32xf32>
    %315 = tpu.matmul %314, %298, %cst_129 {dimension_numbers = #tpu.dot_dimension_numbers<[1], [0], [0], [1], [0, 0, 1, 1], [], []>} : vector<16x16xbf16>, vector<16x32xbf16>, vector<16x32xf32> -> vector<16x32xf32>
    %316 = arith.truncf %315 : vector<16x32xf32> to vector<16x32xbf16>
    %317 = vector.extract_strided_slice %246 {offsets = [64, 0], sizes = [32, 128], strides = [1, 1]} : vector<128x128xbf16> to vector<32x128xbf16>
    %cst_130 = arith.constant dense<0.000000e+00> : vector<16x128xf32>
    %318 = tpu.matmul %316, %317, %cst_130 {dimension_numbers = #tpu.dot_dimension_numbers<[1], [0], [0], [1], [0, 0, 1, 1], [], []>} : vector<16x32xbf16>, vector<32x128xbf16>, vector<16x128xf32> -> vector<16x128xf32>
    %319 = arith.addf %295, %318 : vector<16x128xf32>
    %320 = vector.extract_strided_slice %244 {offsets = [0, 96], sizes = [16, 32], strides = [1, 1]} : vector<16x384xbf16> to vector<16x32xbf16>
    %321 = vector.extract_strided_slice %244 {offsets = [0, 224], sizes = [16, 32], strides = [1, 1]} : vector<16x384xbf16> to vector<16x32xbf16>
    %322 = vector.extract_strided_slice %244 {offsets = [0, 352], sizes = [16, 32], strides = [1, 1]} : vector<16x384xbf16> to vector<16x32xbf16>
    %cst_131 = arith.constant dense<0.000000e+00> : vector<16x16xf32>
    %323 = tpu.matmul %320, %321, %cst_131 {dimension_numbers = #tpu.dot_dimension_numbers<[1], [1], [0], [0], [0, 0, 1, 0], [], []>} : vector<16x32xbf16>, vector<16x32xbf16>, vector<16x16xf32> -> vector<16x16xf32>
    %cst_132 = arith.constant 0.176776692 : f32
    %324 = vector.broadcast %cst_132 : f32 to vector<16x16xf32>
    %325 = arith.mulf %323, %324 : vector<16x16xf32>
    %326 = vector.broadcast %44 : vector<1x16xf32> to vector<16x16xf32>
    %327 = arith.addf %325, %326 : vector<16x16xf32>
    %cst_133 = arith.constant dense<0xFF800000> : vector<16xf32>
    %328 = vector.multi_reduction <maximumf>, %327, %cst_133 [1] : vector<16x16xf32> to vector<16xf32>
    %329 = vector.shape_cast %328 : vector<16xf32> to vector<16x1xf32>
    %330 = vector.broadcast %329 : vector<16x1xf32> to vector<16x16xf32>
    %331 = arith.subf %327, %330 : vector<16x16xf32>
    %332 = math.exp %331 : vector<16x16xf32>
    %cst_134 = arith.constant dense<0.000000e+00> : vector<16xf32>
    %333 = vector.multi_reduction <add>, %332, %cst_134 [1] : vector<16x16xf32> to vector<16xf32>
    %334 = vector.shape_cast %333 : vector<16xf32> to vector<16x1xf32>
    %335 = tpu.reciprocal %334 {approx = true} : vector<16x1xf32> -> vector<16x1xf32>
    %336 = vector.broadcast %335 : vector<16x1xf32> to vector<16x16xf32>
    %337 = arith.mulf %332, %336 : vector<16x16xf32>
    %338 = arith.truncf %337 : vector<16x16xf32> to vector<16x16xbf16>
    %cst_135 = arith.constant dense<0.000000e+00> : vector<16x32xf32>
    %339 = tpu.matmul %338, %322, %cst_135 {dimension_numbers = #tpu.dot_dimension_numbers<[1], [0], [0], [1], [0, 0, 1, 1], [], []>} : vector<16x16xbf16>, vector<16x32xbf16>, vector<16x32xf32> -> vector<16x32xf32>
    %340 = arith.truncf %339 : vector<16x32xf32> to vector<16x32xbf16>
    %341 = vector.extract_strided_slice %246 {offsets = [96, 0], sizes = [32, 128], strides = [1, 1]} : vector<128x128xbf16> to vector<32x128xbf16>
    %cst_136 = arith.constant dense<0.000000e+00> : vector<16x128xf32>
    %342 = tpu.matmul %340, %341, %cst_136 {dimension_numbers = #tpu.dot_dimension_numbers<[1], [0], [0], [1], [0, 0, 1, 1], [], []>} : vector<16x32xbf16>, vector<32x128xbf16>, vector<16x128xf32> -> vector<16x128xf32>
    %343 = arith.addf %319, %342 : vector<16x128xf32>
    %c1_137 = arith.constant 1 : index
    %c0_138 = arith.constant 0 : index
    %c0_139 = arith.constant 0 : index
    %344 = vector.load %arg11[%c1_137, %c0_138, %c0_139] : memref<2x1x128xf32, #tpu.memory_space<vmem>>, vector<1x1x128xf32>
    %345 = vector.shape_cast %344 : vector<1x1x128xf32> to vector<1x128xf32>
    %346 = vector.broadcast %345 : vector<1x128xf32> to vector<16x128xf32>
    %347 = arith.addf %343, %346 : vector<16x128xf32>
    %348 = arith.addf %347, %235 : vector<16x128xf32>
    %c1_140 = arith.constant 1 : index
    %c0_141 = arith.constant 0 : index
    %c0_142 = arith.constant 0 : index
    %349 = vector.load %arg12[%c1_140, %c0_141, %c0_142] : memref<2x1x128xf32, #tpu.memory_space<vmem>>, vector<1x1x128xf32>
    %350 = vector.shape_cast %349 : vector<1x1x128xf32> to vector<1x128xf32>
    %c1_143 = arith.constant 1 : index
    %c0_144 = arith.constant 0 : index
    %c0_145 = arith.constant 0 : index
    %351 = vector.load %arg13[%c1_143, %c0_144, %c0_145] : memref<2x1x128xf32, #tpu.memory_space<vmem>>, vector<1x1x128xf32>
    %352 = vector.shape_cast %351 : vector<1x1x128xf32> to vector<1x128xf32>
    %cst_146 = arith.constant dense<0.000000e+00> : vector<16xf32>
    %353 = vector.multi_reduction <add>, %348, %cst_146 [1] : vector<16x128xf32> to vector<16xf32>
    %354 = vector.shape_cast %353 : vector<16xf32> to vector<16x1xf32>
    %cst_147 = arith.constant 1.280000e+02 : f32
    %355 = vector.broadcast %cst_147 : f32 to vector<16x1xf32>
    %356 = arith.divf %354, %355 : vector<16x1xf32>
    %357 = vector.broadcast %356 : vector<16x1xf32> to vector<16x128xf32>
    %358 = arith.subf %348, %357 : vector<16x128xf32>
    %359 = arith.mulf %358, %358 : vector<16x128xf32>
    %cst_148 = arith.constant dense<0.000000e+00> : vector<16xf32>
    %360 = vector.multi_reduction <add>, %359, %cst_148 [1] : vector<16x128xf32> to vector<16xf32>
    %361 = vector.shape_cast %360 : vector<16xf32> to vector<16x1xf32>
    %cst_149 = arith.constant 1.280000e+02 : f32
    %362 = vector.broadcast %cst_149 : f32 to vector<16x1xf32>
    %363 = arith.divf %361, %362 : vector<16x1xf32>
    %cst_150 = arith.constant 9.99999996E-13 : f32
    %364 = vector.broadcast %cst_150 : f32 to vector<16x1xf32>
    %365 = arith.addf %363, %364 : vector<16x1xf32>
    %366 = math.rsqrt %365 : vector<16x1xf32>
    %367 = vector.broadcast %366 : vector<16x1xf32> to vector<16x128xf32>
    %368 = arith.mulf %358, %367 : vector<16x128xf32>
    %369 = vector.broadcast %350 : vector<1x128xf32> to vector<16x128xf32>
    %370 = arith.mulf %368, %369 : vector<16x128xf32>
    %371 = vector.broadcast %352 : vector<1x128xf32> to vector<16x128xf32>
    %372 = arith.addf %370, %371 : vector<16x128xf32>
    %c1_151 = arith.constant 1 : index
    %c0_152 = arith.constant 0 : index
    %c0_153 = arith.constant 0 : index
    %373 = vector.load %arg14[%c1_151, %c0_152, %c0_153] : memref<2x128x256xbf16, #tpu.memory_space<vmem>>, vector<1x128x256xbf16>
    %374 = vector.shape_cast %373 : vector<1x128x256xbf16> to vector<128x256xbf16>
    %375 = arith.truncf %372 : vector<16x128xf32> to vector<16x128xbf16>
    %cst_154 = arith.constant dense<0.000000e+00> : vector<16x256xf32>
    %376 = tpu.matmul %375, %374, %cst_154 {dimension_numbers = #tpu.dot_dimension_numbers<[1], [0], [0], [1], [0, 0, 1, 1], [], []>} : vector<16x128xbf16>, vector<128x256xbf16>, vector<16x256xf32> -> vector<16x256xf32>
    %c1_155 = arith.constant 1 : index
    %c0_156 = arith.constant 0 : index
    %c0_157 = arith.constant 0 : index
    %377 = vector.load %arg15[%c1_155, %c0_156, %c0_157] : memref<2x1x256xf32, #tpu.memory_space<vmem>>, vector<1x1x256xf32>
    %378 = vector.shape_cast %377 : vector<1x1x256xf32> to vector<1x256xf32>
    %379 = vector.broadcast %378 : vector<1x256xf32> to vector<16x256xf32>
    %380 = arith.addf %376, %379 : vector<16x256xf32>
    %381 = arith.mulf %380, %380 : vector<16x256xf32>
    %382 = arith.mulf %380, %381 : vector<16x256xf32>
    %cst_158 = arith.constant 4.471500e-02 : f32
    %383 = vector.broadcast %cst_158 : f32 to vector<16x256xf32>
    %384 = arith.mulf %383, %382 : vector<16x256xf32>
    %385 = arith.addf %380, %384 : vector<16x256xf32>
    %cst_159 = arith.constant 0.797884583 : f32
    %386 = vector.broadcast %cst_159 : f32 to vector<16x256xf32>
    %387 = arith.mulf %386, %385 : vector<16x256xf32>
    %388 = math.tanh %387 : vector<16x256xf32>
    %cst_160 = arith.constant 1.000000e+00 : f32
    %389 = vector.broadcast %cst_160 : f32 to vector<16x256xf32>
    %390 = arith.addf %389, %388 : vector<16x256xf32>
    %cst_161 = arith.constant 5.000000e-01 : f32
    %391 = vector.broadcast %cst_161 : f32 to vector<16x256xf32>
    %392 = arith.mulf %391, %390 : vector<16x256xf32>
    %393 = arith.mulf %380, %392 : vector<16x256xf32>
    %c1_162 = arith.constant 1 : index
    %c0_163 = arith.constant 0 : index
    %c0_164 = arith.constant 0 : index
    %394 = vector.load %arg16[%c1_162, %c0_163, %c0_164] : memref<2x256x128xbf16, #tpu.memory_space<vmem>>, vector<1x256x128xbf16>
    %395 = vector.shape_cast %394 : vector<1x256x128xbf16> to vector<256x128xbf16>
    %396 = arith.truncf %393 : vector<16x256xf32> to vector<16x256xbf16>
    %cst_165 = arith.constant dense<0.000000e+00> : vector<16x128xf32>
    %397 = tpu.matmul %396, %395, %cst_165 {dimension_numbers = #tpu.dot_dimension_numbers<[1], [0], [0], [1], [0, 0, 1, 1], [], []>} : vector<16x256xbf16>, vector<256x128xbf16>, vector<16x128xf32> -> vector<16x128xf32>
    %c1_166 = arith.constant 1 : index
    %c0_167 = arith.constant 0 : index
    %c0_168 = arith.constant 0 : index
    %398 = vector.load %arg17[%c1_166, %c0_167, %c0_168] : memref<2x1x128xf32, #tpu.memory_space<vmem>>, vector<1x1x128xf32>
    %399 = vector.shape_cast %398 : vector<1x1x128xf32> to vector<1x128xf32>
    %400 = vector.broadcast %399 : vector<1x128xf32> to vector<16x128xf32>
    %401 = arith.addf %397, %400 : vector<16x128xf32>
    %402 = arith.addf %401, %372 : vector<16x128xf32>
    %c1_169 = arith.constant 1 : index
    %c0_170 = arith.constant 0 : index
    %c0_171 = arith.constant 0 : index
    %403 = vector.load %arg18[%c1_169, %c0_170, %c0_171] : memref<2x1x128xf32, #tpu.memory_space<vmem>>, vector<1x1x128xf32>
    %404 = vector.shape_cast %403 : vector<1x1x128xf32> to vector<1x128xf32>
    %c1_172 = arith.constant 1 : index
    %c0_173 = arith.constant 0 : index
    %c0_174 = arith.constant 0 : index
    %405 = vector.load %arg19[%c1_172, %c0_173, %c0_174] : memref<2x1x128xf32, #tpu.memory_space<vmem>>, vector<1x1x128xf32>
    %406 = vector.shape_cast %405 : vector<1x1x128xf32> to vector<1x128xf32>
    %cst_175 = arith.constant dense<0.000000e+00> : vector<16xf32>
    %407 = vector.multi_reduction <add>, %402, %cst_175 [1] : vector<16x128xf32> to vector<16xf32>
    %408 = vector.shape_cast %407 : vector<16xf32> to vector<16x1xf32>
    %cst_176 = arith.constant 1.280000e+02 : f32
    %409 = vector.broadcast %cst_176 : f32 to vector<16x1xf32>
    %410 = arith.divf %408, %409 : vector<16x1xf32>
    %411 = vector.broadcast %410 : vector<16x1xf32> to vector<16x128xf32>
    %412 = arith.subf %402, %411 : vector<16x128xf32>
    %413 = arith.mulf %412, %412 : vector<16x128xf32>
    %cst_177 = arith.constant dense<0.000000e+00> : vector<16xf32>
    %414 = vector.multi_reduction <add>, %413, %cst_177 [1] : vector<16x128xf32> to vector<16xf32>
    %415 = vector.shape_cast %414 : vector<16xf32> to vector<16x1xf32>
    %cst_178 = arith.constant 1.280000e+02 : f32
    %416 = vector.broadcast %cst_178 : f32 to vector<16x1xf32>
    %417 = arith.divf %415, %416 : vector<16x1xf32>
    %cst_179 = arith.constant 9.99999996E-13 : f32
    %418 = vector.broadcast %cst_179 : f32 to vector<16x1xf32>
    %419 = arith.addf %417, %418 : vector<16x1xf32>
    %420 = math.rsqrt %419 : vector<16x1xf32>
    %421 = vector.broadcast %420 : vector<16x1xf32> to vector<16x128xf32>
    %422 = arith.mulf %412, %421 : vector<16x128xf32>
    %423 = vector.broadcast %404 : vector<1x128xf32> to vector<16x128xf32>
    %424 = arith.mulf %422, %423 : vector<16x128xf32>
    %425 = vector.broadcast %406 : vector<1x128xf32> to vector<16x128xf32>
    %426 = arith.addf %424, %425 : vector<16x128xf32>
    %c0_180 = arith.constant 0 : index
    %c0_181 = arith.constant 0 : index
    %427 = vector.load %arg20[%c0_180, %c0_181] : memref<128x384xbf16, #tpu.memory_space<vmem>>, vector<128x384xbf16>
    %428 = arith.truncf %426 : vector<16x128xf32> to vector<16x128xbf16>
    %cst_182 = arith.constant dense<0.000000e+00> : vector<16x384xf32>
    %429 = tpu.matmul %428, %427, %cst_182 {dimension_numbers = #tpu.dot_dimension_numbers<[1], [0], [0], [1], [0, 0, 1, 1], [], []>} : vector<16x128xbf16>, vector<128x384xbf16>, vector<16x384xf32> -> vector<16x384xf32>
    %c0_183 = arith.constant 0 : index
    %c0_184 = arith.constant 0 : index
    %430 = vector.load %arg21[%c0_183, %c0_184] : memref<1x384xf32, #tpu.memory_space<vmem>>, vector<1x384xf32>
    %431 = vector.broadcast %430 : vector<1x384xf32> to vector<16x384xf32>
    %432 = arith.addf %429, %431 : vector<16x384xf32>
    %cst_185 = arith.constant dense<0xFF800000> : vector<16xf32>
    %433 = vector.multi_reduction <maximumf>, %432, %cst_185 [1] : vector<16x384xf32> to vector<16xf32>
    %434 = vector.shape_cast %433 : vector<16xf32> to vector<16x1xf32>
    %435 = vector.broadcast %434 : vector<16x1xf32> to vector<16x384xf32>
    %436 = arith.subf %432, %435 : vector<16x384xf32>
    %437 = math.exp %436 : vector<16x384xf32>
    %cst_186 = arith.constant dense<0.000000e+00> : vector<16xf32>
    %438 = vector.multi_reduction <add>, %437, %cst_186 [1] : vector<16x384xf32> to vector<16xf32>
    %439 = vector.shape_cast %438 : vector<16xf32> to vector<16x1xf32>
    %440 = tpu.reciprocal %439 {approx = true} : vector<16x1xf32> -> vector<16x1xf32>
    %441 = vector.broadcast %440 : vector<16x1xf32> to vector<16x384xf32>
    %442 = arith.mulf %437, %441 : vector<16x384xf32>
    %c0_187 = arith.constant 0 : index
    %c0_188 = arith.constant 0 : index
    %c0_189 = arith.constant 0 : index
    %443 = vector.load %arg22[%c0_187, %c0_188, %c0_189] : memref<1x16x384xf32, #tpu.memory_space<vmem>>, vector<1x16x384xf32>
    %444 = vector.shape_cast %443 : vector<1x16x384xf32> to vector<16x384xf32>
    %445 = vector.shape_cast %442 : vector<16x384xf32> to vector<1x16x384xf32>
    tpu.vector_store %arg22[%c0_187, %c0_188, %c0_189], %445 {strides = array<i32>} : memref<1x16x384xf32, #tpu.memory_space<vmem>>, vector<1x16x384xf32>,
    return
  }
  func.func @transform_0(%arg0: i32) -> (i32, i32, i32) {
    %c0_i32 = arith.constant 0 : i32
    %c0_i32_0 = arith.constant 0 : i32
    %c0_i32_1 = arith.constant 0 : i32
    return %arg0, %c0_i32, %c0_i32_0 : i32, i32, i32
  }
  func.func @transform_1(%arg0: i32) -> (i32, i32, i32) {
    %c0_i32 = arith.constant 0 : i32
    %c0_i32_0 = arith.constant 0 : i32
    %c0_i32_1 = arith.constant 0 : i32
    return %arg0, %c0_i32, %c0_i32_0 : i32, i32, i32
  }
  func.func @transform_2(%arg0: i32) -> (i32, i32) {
    %c0_i32 = arith.constant 0 : i32
    %c0_i32_0 = arith.constant 0 : i32
    %c0_i32_1 = arith.constant 0 : i32
    return %c0_i32, %c0_i32_0 : i32, i32
  }
  func.func @transform_3(%arg0: i32) -> (i32, i32) {
    %c0_i32 = arith.constant 0 : i32
    %c0_i32_0 = arith.constant 0 : i32
    %c0_i32_1 = arith.constant 0 : i32
    return %c0_i32, %c0_i32_0 : i32, i32
  }
  func.func @transform_4(%arg0: i32) -> (i32, i32) {
    %c0_i32 = arith.constant 0 : i32
    %c0_i32_0 = arith.constant 0 : i32
    %c0_i32_1 = arith.constant 0 : i32
    return %c0_i32, %c0_i32_0 : i32, i32
  }
  func.func @transform_5(%arg0: i32) -> (i32, i32) {
    %c0_i32 = arith.constant 0 : i32
    %c0_i32_0 = arith.constant 0 : i32
    %c0_i32_1 = arith.constant 0 : i32
    return %c0_i32, %c0_i32_0 : i32, i32
  }
  func.func @transform_6(%arg0: i32) -> (i32, i32) {
    %c0_i32 = arith.constant 0 : i32
    %c0_i32_0 = arith.constant 0 : i32
    %c0_i32_1 = arith.constant 0 : i32
    return %c0_i32, %c0_i32_0 : i32, i32
  }
  func.func @transform_7(%arg0: i32) -> (i32, i32, i32) {
    %c0_i32 = arith.constant 0 : i32
    %c0_i32_0 = arith.constant 0 : i32
    %c0_i32_1 = arith.constant 0 : i32
    %c0_i32_2 = arith.constant 0 : i32
    return %c0_i32, %c0_i32_0, %c0_i32_1 : i32, i32, i32
  }
  func.func @transform_8(%arg0: i32) -> (i32, i32, i32) {
    %c0_i32 = arith.constant 0 : i32
    %c0_i32_0 = arith.constant 0 : i32
    %c0_i32_1 = arith.constant 0 : i32
    %c0_i32_2 = arith.constant 0 : i32
    return %c0_i32, %c0_i32_0, %c0_i32_1 : i32, i32, i32
  }
  func.func @transform_9(%arg0: i32) -> (i32, i32, i32) {
    %c0_i32 = arith.constant 0 : i32
    %c0_i32_0 = arith.constant 0 : i32
    %c0_i32_1 = arith.constant 0 : i32
    %c0_i32_2 = arith.constant 0 : i32
    return %c0_i32, %c0_i32_0, %c0_i32_1 : i32, i32, i32
  }
  func.func @transform_10(%arg0: i32) -> (i32, i32, i32) {
    %c0_i32 = arith.constant 0 : i32
    %c0_i32_0 = arith.constant 0 : i32
    %c0_i32_1 = arith.constant 0 : i32
    %c0_i32_2 = arith.constant 0 : i32
    return %c0_i32, %c0_i32_0, %c0_i32_1 : i32, i32, i32
  }
  func.func @transform_11(%arg0: i32) -> (i32, i32, i32) {
    %c0_i32 = arith.constant 0 : i32
    %c0_i32_0 = arith.constant 0 : i32
    %c0_i32_1 = arith.constant 0 : i32
    %c0_i32_2 = arith.constant 0 : i32
    return %c0_i32, %c0_i32_0, %c0_i32_1 : i32, i32, i32
  }
  func.func @transform_12(%arg0: i32) -> (i32, i32, i32) {
    %c0_i32 = arith.constant 0 : i32
    %c0_i32_0 = arith.constant 0 : i32
    %c0_i32_1 = arith.constant 0 : i32
    %c0_i32_2 = arith.constant 0 : i32
    return %c0_i32, %c0_i32_0, %c0_i32_1 : i32, i32, i32
  }
  func.func @transform_13(%arg0: i32) -> (i32, i32, i32) {
    %c0_i32 = arith.constant 0 : i32
    %c0_i32_0 = arith.constant 0 : i32
    %c0_i32_1 = arith.constant 0 : i32
    %c0_i32_2 = arith.constant 0 : i32
    return %c0_i32, %c0_i32_0, %c0_i32_1 : i32, i32, i32
  }
  func.func @transform_14(%arg0: i32) -> (i32, i32, i32) {
    %c0_i32 = arith.constant 0 : i32
    %c0_i32_0 = arith.constant 0 : i32
    %c0_i32_1 = arith.constant 0 : i32
    %c0_i32_2 = arith.constant 0 : i32
    return %c0_i32, %c0_i32_0, %c0_i32_1 : i32, i32, i32
  }
  func.func @transform_15(%arg0: i32) -> (i32, i32, i32) {
    %c0_i32 = arith.constant 0 : i32
    %c0_i32_0 = arith.constant 0 : i32
    %c0_i32_1 = arith.constant 0 : i32
    %c0_i32_2 = arith.constant 0 : i32
    return %c0_i32, %c0_i32_0, %c0_i32_1 : i32, i32, i32
  }
  func.func @transform_16(%arg0: i32) -> (i32, i32, i32) {
    %c0_i32 = arith.constant 0 : i32
    %c0_i32_0 = arith.constant 0 : i32
    %c0_i32_1 = arith.constant 0 : i32
    %c0_i32_2 = arith.constant 0 : i32
    return %c0_i32, %c0_i32_0, %c0_i32_1 : i32, i32, i32
  }
  func.func @transform_17(%arg0: i32) -> (i32, i32, i32) {
    %c0_i32 = arith.constant 0 : i32
    %c0_i32_0 = arith.constant 0 : i32
    %c0_i32_1 = arith.constant 0 : i32
    %c0_i32_2 = arith.constant 0 : i32
    return %c0_i32, %c0_i32_0, %c0_i32_1 : i32, i32, i32
  }
  func.func @transform_18(%arg0: i32) -> (i32, i32, i32) {
    %c0_i32 = arith.constant 0 : i32
    %c0_i32_0 = arith.constant 0 : i32
    %c0_i32_1 = arith.constant 0 : i32
    %c0_i32_2 = arith.constant 0 : i32
    return %c0_i32, %c0_i32_0, %c0_i32_1 : i32, i32, i32
  }
  func.func @transform_19(%arg0: i32) -> (i32, i32) {
    %c0_i32 = arith.constant 0 : i32
    %c0_i32_0 = arith.constant 0 : i32
    %c0_i32_1 = arith.constant 0 : i32
    return %c0_i32, %c0_i32_0 : i32, i32
  }
  func.func @transform_20(%arg0: i32) -> (i32, i32) {
    %c0_i32 = arith.constant 0 : i32
    %c0_i32_0 = arith.constant 0 : i32
    %c0_i32_1 = arith.constant 0 : i32
    return %c0_i32, %c0_i32_0 : i32, i32
  }
  func.func @transform_21(%arg0: i32) -> (i32, i32, i32) {
    %c0_i32 = arith.constant 0 : i32
    %c0_i32_0 = arith.constant 0 : i32
    %c0_i32_1 = arith.constant 0 : i32
    return %arg0, %c0_i32, %c0_i32_0 : i32, i32, i32
  }
}

</mosaic_0001>

<bundles_post_ra>
// kernel: _predict.1
= control target key start
LH: loop header
LB: loop body
LE: loop exit
PB: predicated region body
PF: predicated region fallthrough
CT: control target
= control target key end

     0   :  { %s5887_s0 = inlined_call_operand.vmem [shape: s32[2,16,1], index: 0, kind: input, shape index: {}]   ;;  %s5888_s1 = inlined_call_operand.vmem [shape: f32[2,1,16], index: 1, kind: input, shape index: {}]   ;;  %s5889_s2 = inlined_call_operand.hbm [shape: bf16[384,128], index: 2, kind: input, shape index: {}]   ;;  %s5890_s3 = inlined_call_operand.vmem [shape: f32[16,128], index: 3, kind: input, shape index: {}]   ;;  %s5891_s4 = inlined_call_operand.vmem [shape: f32[2,128], index: 4, kind: input, shape index: {}]   ;;  %s5892_s5 = inlined_call_operand.vmem [shape: f32[1,128], index: 5, kind: input, shape index: {}]   ;;  %s5893_s6 = inlined_call_operand.hbm [shape: f32[1,128], index: 6, kind: input, shape index: {}]   ;;  %s5894_s7 = inlined_call_operand.hbm [shape: bf16[2,128,384], index: 7, kind: input, shape index: {}]   ;;  %s5895_s8 = inlined_call_operand.vmem [shape: f32[2,1,384], index: 8, kind: input, shape index: {}]   ;;  %s5896_s9 = inlined_call_operand.hbm [shape: bf16[2,128,128], index: 9, kind: input, shape index: {}]   ;;  %s5897_s10 = inlined_call_operand.vmem [shape: f32[2,1,128], index: 10, kind: input, shape index: {}]   ;;  %s5898_s11 = inlined_call_operand.vmem [shape: f32[2,1,128], index: 11, kind: input, shape index: {}]   ;;  %s5899_s12 = inlined_call_operand.vmem [shape: f32[2,1,128], index: 12, kind: input, shape index: {}]   ;;  %s5900_s13 = inlined_call_operand.hbm [shape: bf16[2,128,256], index: 13, kind: input, shape index: {}]   ;;  %s5901_s14 = inlined_call_operand.vmem [shape: f32[2,1,256], index: 14, kind: input, shape index: {}]   ;;  %s5902_s15 = inlined_call_operand.hbm [shape: bf16[2,256,128], index: 15, kind: input, shape index: {}]   ;;  %s5903_s16 = inlined_call_operand.hbm [shape: f32[2,1,128], index: 16, kind: input, shape index: {}]   ;;  %s5904_s17 = inlined_call_operand.vmem [shape: f32[2,1,128], index: 17, kind: input, shape index: {}]   ;;  %s5905_s18 = inlined_call_operand.vmem [shape: f32[2,1,128], index: 18, kind: input, shape index: {}]   ;;  %s5906_s19 = inlined_call_operand.hbm [shape: bf16[128,384], index: 19, kind: input, shape index: {}]   ;;  %s5907_s20 = inlined_call_operand.vmem [shape: f32[1,384], index: 20, kind: input, shape index: {}]   ;;  %s5908_s21 = inlined_call_operand.hbm [shape: f32[2,16,384], index: 21, kind: output, shape index: {}]  }
   0x1   :  { %5920 = sst [smem:[#allocation31_spill]] %s5887_s0 }
   0x2   :  { %5921 = sst [smem:[#allocation32_spill]] %s5888_s1 }
   0x3   :  { %5922 = sst [smem:[#allocation33_spill]] %s5889_s2 }
   0x4   :  { %5923 = sst [smem:[#allocation34_spill]] %s5890_s3 }
   0x5   :  { %5924 = sst [smem:[#allocation35_spill]] %s5891_s4 }
   0x6   :  { %5925 = sst [smem:[#allocation36_spill]] %s5892_s5 }
   0x7   :  { %5926 = sst [smem:[#allocation37_spill]] %s5893_s6 }
   0x8   :  { %5927 = sst [smem:[#allocation38_spill]] %s5894_s7 }
   0x9   :  { %5928 = sst [smem:[#allocation39_spill]] %s5896_s9 }
   0xa   :  { %5929 = sst [smem:[#allocation40_spill]] %s5900_s13 }
   0xb   :  { %5930 = sst [smem:[#allocation41_spill]] %s5907_s20 }
   0xc   :  { %5931 = sst [smem:[#allocation42_spill]] %s5908_s21 }
   0xd   :  { %26 = vsyncpa [#allocation3], 0 }
   0xe   :  { %27 = vsyncpa [#allocation6], 0 }
   0xf   :  { %28 = vsyncpa [#allocation9], 0 }
  0x10   :  { %29 = vsyncpa [#allocation12], 0 }
  0x11   :  { %30 = vsyncpa [#allocation15], 0 }
  0x12   :  { %31 = vsyncpa [#allocation4], 0 }
  0x13   :  { %33 = vsyncpa [#allocation4 + $0x1], 0  ;;  %s5425_s2 = smov 0   ;;  %s5427_s25 = smov 0  }
  0x14   :  { %s5429_s26 = smov 0   ;;  %s5431_s27 = smov 0  }
  0x15 LB: > { %5932 = sst [smem:[#allocation23_spill]] %s5276_s2  ;;  %s5446_s3 = sadd.s32 4294967295, %s5288_s27   ;;  %s5288_s27 = sphi %s5431_s27, %s5961_s27   ;;  %s5284_s26 = sphi %s5429_s26, %s5964_s26   ;;  %s5280_s25 = sphi %s5427_s25, %s5963_s25   ;;  %s5276_s2 = sphi %s5425_s2, %s5962_s2  }
  0x16   : > { %5933 = sst [smem:[#allocation24_spill]] %s5280_s25  ;;  %s3750_s28 = sadd.s32 4294967294, %s5288_s27  }
  0x17   : > { %5934 = sst [smem:[#allocation25_spill]] %s5284_s26  ;;  %s5450_s29 = sadd.s32 1, %s5288_s27  }
  0x18   : > { %5935 = sst [smem:[#allocation26_spill]] %s5288_s27  ;;  %s497_s0 = sadd.s32 1, %s5284_s26 }
  0x19   : > { %5936 = sst [smem:[#allocation27_spill]] %s5450_s29  ;;  %s494_s4 = ssub.s32 %s5288_s27, %s5450_s29 }
  0x1a   : > { %p507_p0 = scmp.ne.s32.totalorder %s5284_s26, %s5280_s25  ;;  %p495_p1 = scmp.eq.s32.totalorder %s494_s4, 0 }
  0x1b   : > { %p508_p2 = scmp.eq.s32.totalorder %s5446_s3, 1  ;;  %p513_p3 = scmp.ne.s32.totalorder %s5280_s25, %s5276_s2 }
  0x1c   : > { %p514_p4 = scmp.eq.s32.totalorder %s3750_s28, 1  ;;  %p3751_p7 = scmp.ge.s32.totalorder %s5288_s27, 1 }
  0x1d   : > { %s5461_s30 = scalar_select %p495_p1, %s5284_s26, %s497_s0  }
  0x1e   : > { %p5463_p5 = por %p508_p2, %p507_p0  ;;  %p5467_p6 = por %p514_p4, %p513_p3 }
  0x1f   : > { %5937 = sst [smem:[#allocation28_spill]] %s5461_s30  ;;  %p521_p8 = scmp.lt.s32.totalorder %s5288_s27, 3 }
  0x20   : > { %s5938_s5 = scalar_select %p5463_p5, 1, 0 }
  0x21   : > { %s5940_s22 = scalar_select %p5467_p6, 1, 0 }
  0x22   : > { %5939 = sst [smem:[#allocation29_spill]] %s5938_s5  ;;  %p4758_p9 = scmp.eq.s32.totalorder %s5446_s3, 0 }
  0x23   : > { %5941 = sst [smem:[#allocation30_spill]] %s5940_s22  ;;  %p5474_p10 = pnand %p3751_p7, %p521_p8 }
  0x24   : > { %s5943_s6 = sld [smem:[#allocation37_spill]]  ;;  %s5290_s0 = smov [#allocation5]  }
  0x25   : > { %p4729_p11 = pneg %p5474_p10  ;;  %s558_s4 = sshll.u32 %s5290_s0, 4  ;;  %s559_s4 = int_to_ptr.vmem [resolvable:$true] %s558_s4 }
  0x26   : > { %s5945_s9 = sld [smem:[#allocation39_spill]]  ;;  %s5291_s1 = smov [#allocation8]  }
  0x27   : > { %p5485_p12 = pnand %p4758_p9, %p4729_p11  ;;  %s586_s24 = sshll.u32 %s5291_s1, 4  ;;  %s587_s24 = int_to_ptr.vmem [resolvable:$true] %s586_s24 }
  0x28   : > { %s624_s2 = sshll.u32 %s5902_s15, 4  ;;  %s5292_s27 = smov 64   ;;  %s625_s2 = int_to_ptr.hbm [resolvable:$true] %s624_s2 }
  0x29   : > { %s5293_s5 = smov 4   ;;  %s5294_s25 = smov [#allocation11]  }
  0x2a   : > { %s556_s28 = sshll.u32 %s5943_s6, 4  ;;  %s626_s20 = sshll.u32 %s5294_s25, 4  ;;  %s557_s28 = int_to_ptr.hbm [resolvable:$true] %s556_s28  ;;  %s627_s20 = int_to_ptr.vmem [resolvable:$true] %s626_s20 }
  0x2b   : > { %4735 = dma.hbm_to_vmem [thread:$0]  (!%p5485_p12), %s557_s28, 16, %s559_s4, [#allocation6]  }
  0x2c   : > { %s584_s22 = sshll.u32 %s5945_s9, 4  ;;  %s5946_s9 = sld [smem:[#allocation33_spill]]  ;;  %s585_s22 = int_to_ptr.hbm [resolvable:$true] %s584_s22 }
  0x2d   : > { %4741 = dma.hbm_to_vmem [thread:$0]  (!%p5485_p12), %s585_s22, 2048, %s587_s24, [#allocation9], %s5292_s27, %s5292_s27, %s5293_s5  }
  0x2e   : > { %4747 = dma.hbm_to_vmem [thread:$0]  (!%p5485_p12), %s625_s2, 4096, %s627_s20, [#allocation12], %s5292_s27, %s5292_s27, %s5293_s5  }
  0x2f   : > { %s5295_s6 = smov [#allocation2]   ;;  %s5947_s7 = sld [smem:[#allocation38_spill]] }
  0x30   : > { %s534_s28 = sshll.u32 %s5295_s6, 4  ;;  %s5296_s22 = smov [#allocation7]   ;;  %s535_s28 = int_to_ptr.vmem [resolvable:$true] %s534_s28 }
  0x31   : > { %s5948_s13 = sld [smem:[#allocation40_spill]]  ;;  %s5297_s29 = smov 192  }
  0x32   : > { %s532_s21 = sshll.u32 %s5946_s9, 4  ;;  %s569_s9 = sshll.u32 %s5296_s22, 4  ;;  %s533_s21 = int_to_ptr.hbm [resolvable:$true] %s532_s21  ;;  %s570_s9 = int_to_ptr.vmem [resolvable:$true] %s569_s9 }
  0x33   : > { %4732 = dma.hbm_to_vmem [thread:$0]  (!%p5485_p12), %s533_s21, 3072, %s535_s28, [#allocation3], %s5292_s27, %s5292_s27, %s5293_s5  }
  0x34   : > { %s5298_s20 = smov 12   ;;  %s5299_s2 = smov [#allocation10]  }
  0x35   : > { %s567_s0 = sshll.u32 %s5947_s7, 4  ;;  %s609_s6 = sshll.u32 %s5299_s2, 4  ;;  %s568_s0 = int_to_ptr.hbm [resolvable:$true] %s567_s0  ;;  %s610_s6 = int_to_ptr.vmem [resolvable:$true] %s609_s6 }
  0x36   : > { %4738 = dma.hbm_to_vmem [thread:$0]  (!%p5485_p12), %s568_s0, 6144, %s570_s9, [#allocation6], %s5297_s29, %s5297_s29, %s5298_s20  }
  0x37   : > { %s607_s26 = sshll.u32 %s5948_s13, 4  ;;  %s5300_s4 = smov 128   ;;  %s608_s26 = int_to_ptr.hbm [resolvable:$true] %s607_s26 }
  0x38   : > { %s5301_s1 = smov 8   ;;  %s638_s5 = sshll.u32 %s5903_s16, 4  ;;  %s639_s5 = int_to_ptr.hbm [resolvable:$true] %s638_s5 }
  0x39   : > { %4744 = dma.hbm_to_vmem [thread:$0]  (!%p5485_p12), %s608_s26, 4096, %s610_s6, [#allocation9], %s5300_s4, %s5300_s4, %s5301_s1  }
  0x3a   : > { %s5302_s28 = smov [#allocation13]   ;;  %s658_s9 = sshll.u32 %s5906_s19, 4  ;;  %s659_s9 = int_to_ptr.hbm [resolvable:$true] %s658_s9 }
  0x3b   : > { %s640_s22 = sshll.u32 %s5302_s28, 4  ;;  %s5303_s24 = smov 16   ;;  %s641_s22 = int_to_ptr.vmem [resolvable:$true] %s640_s22 }
  0x3c   : > { %s5304_s2 = smov 1   ;;  %s5305_s7 = smov [#allocation14]  }
  0x3d   : > { %4750 = dma.hbm_to_vmem [thread:$0]  (!%p5485_p12), %s639_s5, 32, %s641_s22, [#allocation12], %s5303_s24, %s5303_s24, %s5304_s2  }
  0x3e   : > { %s660_s13 = sshll.u32 %s5305_s7, 4  ;;  %693 = sbr.rel (%p5474_p10) target bundleno = 5656 (0x1618), region = 104  ;;  %s661_s13 = int_to_ptr.vmem [resolvable:$true] %s660_s13 }
  0x3f   : > { %4753 = dma.hbm_to_vmem [thread:$0]  (!%p5485_p12), %s659_s9, 3072, %s661_s13, [#allocation15], %s5297_s29, %s5297_s29, %s5298_s20  }
  0x43   : > { %5251 = dma.done.wait (%p4758_p9), [#allocation3], 3072  }
  0x44   : > { %5253 = vsyncadd (%p4758_p9), [#allocation3], 4294964224 }
  0x45   : > { %5255 = dma.done.wait (%p4758_p9), [#allocation6], 6160  }
  0x46   : > { %5257 = vsyncadd (%p4758_p9), [#allocation6], 4294961136 }
  0x47   : > { %5259 = dma.done.wait (%p4758_p9), [#allocation9], 6144  }
  0x48   : > { %5261 = vsyncadd (%p4758_p9), [#allocation9], 4294961152 }
  0x49   : > { %5263 = dma.done.wait (%p4758_p9), [#allocation12], 4128  }
  0x4a   : > { %5265 = vsyncadd (%p4758_p9), [#allocation12], 4294963168 }
  0x4b   : > { %5267 = dma.done.wait (%p4758_p9), [#allocation15], 3072  }
  0x4c   : > { %5269 = vsyncadd (%p4758_p9), [#allocation15], 4294964224  ;;  %p792_p13 = scmp.lt.s32.totalorder %s5446_s3, 1  ;;  %v5306_v0 = vmov 0   ;;  %s5949_s26 = sld [smem:[#allocation31_spill]]  ;;  %v4524_v2 = vld [vmem:[#allocation2 + $0x38] sm:$0xff]  ;;  %v803_v27 = vlaneseq }
  0x4d   : > { %4832 = vset.pattern.permute.xlu0 %v5306_v0  ;;  %v4532_v3 = vld [vmem:[#allocation2 + $0x78] sm:$0xff]  ;;  %1022 = vmatpush.bf16.msra.mxu0 %v4524_v2  ;;  %v4523_v5 = vld [vmem:[#allocation2 + $0x30] sm:$0xff]  ;;  %v4522_v9 = vld [vmem:[#allocation2 + $0x28] sm:$0xff]  ;;  %v5307_v33 = vmov 1.0|1.0   ;;  %s5950_s4 = sld [smem:[#allocation34_spill]] }
  0x4e   : > { %s5550_s7 = scalar_select %p792_p13, %s5446_s3, 1  ;;  %v4540_v4 = vld [vmem:[#allocation2 + $0xb8] sm:$0xff]  ;;  %1036 = vmatpush.bf16.msra.mxu1 %v4532_v3  ;;  %v4531_v6 = vld [vmem:[#allocation2 + $0x70] sm:$0xff]  ;;  %v4530_v10 = vld [vmem:[#allocation2 + $0x68] sm:$0xff]  ;;  %v804_v29 = vand.u32 127, %v803_v27  ;;  %v5308_v51 = vmov 128.0  }
  0x4f   : > { %1050 = vmatpush.bf16.msra.mxu2 %v4540_v4  ;;  %v4539_v7 = vld [vmem:[#allocation2 + $0xb0] sm:$0xff]  ;;  %v4538_v11 = vld [vmem:[#allocation2 + $0xa8] sm:$0xff]  ;;  %v4521_v12 = vld [vmem:[#allocation2 + $0x20] sm:$0xff]  ;;  %s5951_s27 = sld [smem:[#allocation35_spill]]  ;;  %4848 = vrcp.f32 %v5308_v51  ;;  %s5309_s2 = smov 96  }
  0x50   : > { %s4516_s13 = sshll.u32 %s5550_s7, 4  ;;  %v4529_v13 = vld [vmem:[#allocation2 + $0x60] sm:$0xff]  ;;  %v4520_v15 = vld [vmem:[#allocation2 + $0x18] sm:$0xff]  ;;  %v4519_v18 = vld [vmem:[#allocation2 + $0x10] sm:$0xff]  ;;  %v805_v30 = vadd.s32 128, %v804_v29  ;;  %v806_v31 = vadd.s32 256, %v804_v29 }
  0x51   : > { %1023 = vmatpush.bf16.msra.mxu0 %v4523_v5  ;;  %v4537_v14 = vld [vmem:[#allocation2 + $0xa0] sm:$0xff]  ;;  %v4528_v16 = vld [vmem:[#allocation2 + $0x58] sm:$0xff]  ;;  %v4527_v19 = vld [vmem:[#allocation2 + $0x50] sm:$0xff]  ;;  %s5952_s0 = sld [smem:[#allocation36_spill]]  ;;  %s4694_s30 = smul.u32 48, %s5446_s3 }
  0x52   : > { %s796_s29 = scalar_lea.vmem %s5949_s26, %s4516_s13  ;;  %1037 = vmatpush.bf16.msra.mxu1 %v4531_v6  ;;  %v4536_v17 = vld [vmem:[#allocation2 + $0x98] sm:$0xff]  ;;  %v4535_v20 = vld [vmem:[#allocation2 + $0x90] sm:$0xff]  ;;  %v4518_v21 = vld [vmem:[#allocation2 + $0x8] sm:$0xff]  ;;  %s5953_s23 = sld [smem:[#allocation32_spill]] }
  0x53   : > { %v801_v1 = vld [vmem:[%s796_s29] sm:$0xff]  ;;  %v802_v8 = vld [vmem:[%s796_s29 + $0x8] sm:$0xff]  ;;  %1051 = vmatpush.bf16.msra.mxu2 %v4539_v7  ;;  %v4563_v3 = vld [vmem:[#allocation7 + $0xb0] sm:$0xf0]  ;;  %s5312_s29 = smov 32   ;;  %s5955_s9 = sld [smem:[#allocation24_spill]] }
  0x54   : > { %808 = vperm.xlu0 %4832, %v801_v1   ;;  %v4526_v22 = vld [vmem:[#allocation2 + $0x48] sm:$0xff]  ;;  %v4517_v24 = vld [vmem:[#allocation2] sm:$0xff]  ;;  %v3962_v6 = vld [vmem:[#allocation7 + $0xb4] sm:$0xf0] }
  0x55   : > { %1024 = vmatpush.bf16.msra.mxu0 %v4522_v9  ;;  %v4534_v23 = vld [vmem:[#allocation2 + $0x88] sm:$0xff]  ;;  %v4525_v25 = vld [vmem:[#allocation2 + $0x40] sm:$0xff]  ;;  %v4849_v52 = vpop.eup %4848  ;;  %v3968_v7 = vld [vmem:[#allocation7 + $0xb0] sm:$0xf] }
  0x56   : > { %1038 = vmatpush.bf16.msra.mxu1 %v4530_v10  ;;  %v4533_v26 = vld [vmem:[#allocation2 + $0x80] sm:$0xff]  ;;  %v877_v41 = vld [vmem:[%s5950_s4 + $0x8] sm:$0xff]  ;;  %v1075_v53 = vmul.f32 128.0, %v4849_v52  ;;  %vm1079_vm9 = vweird.f32 %v4849_v52 }
  0x57   : > { %1052 = vmatpush.bf16.msra.mxu2 %v4538_v11  ;;  %v876_v34 = vld [vmem:[%s5950_s4] sm:$0xff]  ;;  %v3960_v2 = vld [vmem:[#allocation7 + $0xa8] sm:$0xf]  ;;  %v4562_v4 = vld [vmem:[#allocation7 + $0xac] sm:$0xf] }
  0x58   : > { %v4833_v39 = vld [vmem:[%s5951_s27] ss:$0 sm:$0xff]  ;;  %v1076_v54 = vsub.f32 1.0, %v1075_v53  ;;  %v3961_v5 = vor.u32 %v4563_v3, %v3960_v2  ;;  %v3965_v9 = vor.u32 %v4562_v4, %v3962_v6  ;;  %v3948_v11 = vld [vmem:[#allocation7 + $0x90] sm:$0xf]  ;;  %s799_s26 = scalar_lea.vmem %s5953_s23, %s5550_s7  ;;  %s5311_s7 = smov 64  }
  0x59   : > { %1025 = vmatpush.bf16.msra.mxu0 %v4521_v12  ;;  %v4560_v12 = vld [vmem:[#allocation7 + $0x98] sm:$0xf0]  ;;  %v3902_v51 = vld [vmem:[#allocation7 + $0x3c] sm:$0xf0]  ;;  %v4549_v53 = vld [vmem:[#allocation7 + $0x40] sm:$0xf0] }
  0x5a   : > { %1039 = vmatpush.bf16.msra.mxu1 %v4529_v13  ;;  %v1077_v55 = vmul.f32 %v4849_v52, %v1076_v54  ;;  %1299 = vmatpush.bf16.msra.mxu3 %v3961_v5  ;;  %v4559_v13 = vld [vmem:[#allocation7 + $0x94] sm:$0xf]  ;;  %v3876_v4 = vld [vmem:[#allocation7] sm:$0xf]  ;;  %v4542_v5 = vld [vmem:[#allocation7 + $0x8] sm:$0xf0] }
  0x5b   : > { %1053 = vmatpush.bf16.msra.mxu2 %v4537_v14  ;;  %v3949_v14 = vor.u32 %v4560_v12, %v3948_v11  ;;  %v4541_v6 = vld [vmem:[#allocation7 + $0x4] sm:$0xf]  ;;  %v4543_v11 = vld [vmem:[#allocation7 + $0x10] sm:$0xf0]  ;;  %s789_s24 = sand.u32 1, %s5955_s9  }
  0x5c   : > { %811 = vperm.xlu0 %4832, %v802_v8   ;;  %v1078_v56 = vadd.f32 %v4849_v52, %v1077_v55  ;;  %v4564_v8 = vld [vmem:[#allocation7 + $0xb8] sm:$0xf0]  ;;  %s4693_s13 = smul.u32 48, %s789_s24  ;;  %s3585_s3 = scalar_lea.sflag [#allocation4], %s789_s24 }
  0x5d   : > { %1026 = vmatpush.bf16.msra.mxu0 %v4520_v15  ;;  %v3969_v10 = vor.u32 %v4564_v8, %v3968_v7  ;;  %v3950_v15 = vld [vmem:[#allocation7 + $0x9c] sm:$0xf0]  ;;  %v3877_v8 = vor.u32 %v4542_v5, %v3876_v4 }
  0x5e   : > { %1040 = vmatpush.bf16.msra.mxu1 %v4528_v16  ;;  %v5565_v57 = vsel %vm1079_vm9, %v4849_v52, %v1078_v56  ;;  %v3956_v16 = vld [vmem:[#allocation7 + $0x98] sm:$0xf]  ;;  %1300 = vmatpush.bf16.msra.mxu3 %v3949_v14 }
  0x5f   : > { %1054 = vmatpush.bf16.msra.mxu2 %v4536_v17  ;;  %v4561_v17 = vld [vmem:[#allocation7 + $0xa0] sm:$0xf0]  ;;  %v3908_v52 = vld [vmem:[#allocation7 + $0x38] sm:$0xf] }
  0x60   : > { %v3909_v55 = vor.u32 %v4549_v53, %v3908_v52  ;;  %v3888_v56 = vld [vmem:[#allocation7 + $0x18] sm:$0xf] }
  0x61   : > { %1027 = vmatpush.bf16.msra.mxu0 %v4519_v18  ;;  %v3953_v18 = vor.u32 %v4559_v13, %v3950_v15 }
  0x62   : > { %1041 = vmatpush.bf16.msra.mxu1 %v4527_v19  ;;  %v3957_v19 = vor.u32 %v4561_v17, %v3956_v16 }
  0x63   : > { %1055 = vmatpush.bf16.msra.mxu2 %v4535_v20  ;;  %v3936_v20 = vld [vmem:[#allocation7 + $0x78] sm:$0xf] }
  0x65   : > { %1028 = vmatpush.bf16.msra.mxu0 %v4518_v21  ;;  %v4557_v21 = vld [vmem:[#allocation7 + $0x80] sm:$0xf0] }
  0x66   : > { %1042 = vmatpush.bf16.msra.mxu1 %v4526_v22  ;;  %v4556_v22 = vld [vmem:[#allocation7 + $0x7c] sm:$0xf] }
  0x67   : > { %1056 = vmatpush.bf16.msra.mxu2 %v4534_v23  ;;  %v3937_v23 = vor.u32 %v4557_v21, %v3936_v20 }
  0x69   : > { %1029 = vmatpush.bf16.msra.mxu0 %v4517_v24  ;;  %v3938_v24 = vld [vmem:[#allocation7 + $0x84] sm:$0xf0]  ;;  %1301 = vmatpush.bf16.msra.mxu3 %v3937_v23 }
  0x6a   : > { %1043 = vmatpush.bf16.msra.mxu1 %v4525_v25  ;;  %v3944_v25 = vld [vmem:[#allocation7 + $0x80] sm:$0xf]  ;;  %v3941_v27 = vor.u32 %v4556_v22, %v3938_v24 }
  0x6b   : > { %1057 = vmatpush.bf16.msra.mxu2 %v4533_v26  ;;  %v4558_v26 = vld [vmem:[#allocation7 + $0x88] sm:$0xf0] }
  0x6d   : > { %1313 = vmatpush.bf16.msrb.mxu0 %v3965_v9  ;;  %v3878_v9 = vld [vmem:[#allocation7 + $0xc] sm:$0xf0] }
  0x6e   : > { %1327 = vmatpush.bf16.msrb.mxu1 %v3969_v10  ;;  %v3884_v10 = vld [vmem:[#allocation7 + $0x8] sm:$0xf]  ;;  %v3881_v13 = vor.u32 %v4541_v6, %v3878_v9 }
  0x6f   : > { %v3885_v14 = vor.u32 %v4543_v11, %v3884_v10 }
  0x71   : > { %1314 = vmatpush.bf16.msrb.mxu0 %v3953_v18 }
  0x72   : > { %1328 = vmatpush.bf16.msrb.mxu1 %v3957_v19 }
  0x75   : > { %1315 = vmatpush.bf16.msrb.mxu0 %v3941_v27 }
  0xc6   : > { %v809_v28 = vpop.permute.xlu0 %808 }
  0xc7   : > { %vm813_vm0 = vcmp.eq.s32.totalorder %v804_v29, %v809_v28  ;;  %vm814_vm5 = vcmp.eq.s32.totalorder %v805_v30, %v809_v28  ;;  %vm815_vm7 = vcmp.eq.s32.totalorder %v806_v31, %v809_v28  ;;  %v3945_v28 = vor.u32 %v4558_v26, %v3944_v25 }
  0xc9   : > { %1329 = vmatpush.bf16.msrb.mxu1 %v3945_v28 }
  0xce   : > { %v812_v32 = vpop.permute.xlu0 %811 }
  0xcf   : > { %vm816_vm1 = vcmp.eq.s32.totalorder %v804_v29, %v812_v32  ;;  %vm817_vm2 = vcmp.eq.s32.totalorder %v805_v30, %v812_v32  ;;  %vm818_vm3 = vcmp.eq.s32.totalorder %v806_v31, %v812_v32  ;;  %v3924_v29 = vld [vmem:[#allocation7 + $0x60] sm:$0xf]  ;;  %v4554_v30 = vld [vmem:[#allocation7 + $0x68] sm:$0xf0]  ;;  %v4553_v31 = vld [vmem:[#allocation7 + $0x64] sm:$0xf] }
  0xd0   : > { %vm3868_vm4 = vmpackc.low %vm816_vm1, %vm813_vm0  ;;  %v3925_v32 = vor.u32 %v4554_v30, %v3924_v29  ;;  %vm1369_vm0 = vcmask 261120  }
  0xd1   : > { %3869 = vmatmul.msk.bf16.vlgmr.msra.gmra.mxu0 %vm3868_vm4, %v5307_v33  ;;  %vm3870_vm6 = vmpackc.low %vm817_vm2, %vm814_vm5  ;;  %vm1397_vm2 = vcmask 130048  }
  0xd2   : > { %3871 = vmatmul.msk.bf16.vlgmr.msra.gmra.mxu1 %vm3870_vm6, %v5307_v33  ;;  %vm3872_vm8 = vmpackc.low %vm818_vm3, %vm815_vm7  ;;  %1302 = vmatpush.bf16.msra.mxu3 %v3925_v32  ;;  %v4834_v32 = vld [vmem:[%s5952_s0] ss:$0 sm:$0xff]  ;;  %s5954_s0 = sld [smem:[#allocation41_spill]] }
  0xd3   : > { %3873 = vmatmul.msk.bf16.vlgmr.msra.gmra.mxu2 %vm3872_vm8, %v5307_v33  ;;  %v3926_v33 = vld [vmem:[#allocation7 + $0x6c] sm:$0xf0] }
 0x14e   : > { %v1031_v35 = vpop.f32.mrf.mxu0 }
 0x14f   : > { %v1032_v36 = vadd.f32 %v1031_v35, %v876_v34  ;;  %v1045_v37 = vpop.f32.mrf.mxu1  ;;  %v3932_v34 = vld [vmem:[#allocation7 + $0x68] sm:$0xf]  ;;  %v4555_v35 = vld [vmem:[#allocation7 + $0x70] sm:$0xf0] }
 0x151   : > { %v1046_v38 = vadd.f32 %v1045_v37, %v1032_v36  ;;  %v3929_v36 = vor.u32 %v4553_v31, %v3926_v33  ;;  %v3933_v37 = vor.u32 %v4555_v35, %v3932_v34 }
 0x153   : > { %1316 = vmatpush.bf16.msrb.mxu0 %v3929_v36  ;;  %1330 = vmatpush.bf16.msrb.mxu1 %v3933_v37  ;;  %v4835_v37 = vld [vmem:[#allocation5] ss:$0 sm:$0xff] }
 0x156   : > { %v1059_v40 = vpop.f32.mrf.mxu2  ;;  %v1033_v42 = vpop.f32.mrf.mxu0 }
 0x157   : > { %v1060_v43 = vadd.f32 %v1059_v40, %v1046_v38  ;;  %v1034_v44 = vadd.f32 %v1033_v42, %v877_v41  ;;  %v1047_v46 = vpop.f32.mrf.mxu1  ;;  %v3912_v38 = vld [vmem:[#allocation7 + $0x48] sm:$0xf]  ;;  %v4550_v40 = vld [vmem:[#allocation7 + $0x4c] sm:$0xf]  ;;  %v3914_v42 = vld [vmem:[#allocation7 + $0x54] sm:$0xf0] }
 0x159   : > { %v1066_v45 = vadd.f32 %v4833_v39, %v1060_v43  ;;  %v1048_v47 = vadd.f32 %v1047_v46, %v1034_v44  ;;  %v3920_v43 = vld [vmem:[#allocation7 + $0x50] sm:$0xf]  ;;  %v4552_v44 = vld [vmem:[#allocation7 + $0x58] sm:$0xf0] }
 0x15a   : > { %v3921_v46 = vor.u32 %v4552_v44, %v3920_v43 }
 0x15b   : > { %1070 = vadd.xlane.f32.xlu1 %v1066_v45 }
 0x15c   : > { %1331 = vmatpush.bf16.msrb.mxu1 %v3921_v46 }
 0x15e   : > { %v1061_v48 = vpop.f32.mrf.mxu2 }
 0x15f   : > { %v1062_v49 = vadd.f32 %v1061_v48, %v1048_v47  ;;  %v3900_v47 = vld [vmem:[#allocation7 + $0x30] sm:$0xf]  ;;  %v4548_v48 = vld [vmem:[#allocation7 + $0x38] sm:$0xf0] }
 0x160   : > { %1332 = vmatpush.bf16.msrb.mxu1 %v3909_v55 }
 0x161   : > { %v1067_v50 = vadd.f32 %v4833_v39, %v1062_v49  ;;  %v4551_v39 = vld [vmem:[#allocation7 + $0x50] sm:$0xf0] }
 0x162   : > { %v3913_v41 = vor.u32 %v4551_v39, %v3912_v38  ;;  %v4547_v49 = vld [vmem:[#allocation7 + $0x34] sm:$0xf] }
 0x163   : > { %1072 = vadd.xlane.f32.xlu1 %v1067_v50  ;;  %v3905_v54 = vor.u32 %v4547_v49, %v3902_v51 }
 0x164   : > { %1303 = vmatpush.bf16.msra.mxu3 %v3913_v41  ;;  %v1163_v41 = vld [vmem:[%s5895_s8] sm:$0x7] }
 0x165   : > { %v1165_v46 = vperm.slane %v1163_v41, 0 }
 0x1ce   : > { %v1071_v58 = vpop.xlane.xlu1 %1070 }
 0x1cf   : > { %v1081_v59 = vmul.f32 %v5565_v57, %v1071_v58  ;;  %v4545_v58 = vld [vmem:[#allocation7 + $0x20] sm:$0xf0] }
 0x1d1   : > { %v5568_v60 = vsub.f32 %v1066_v45, %v1081_v59  ;;  %v3917_v45 = vor.u32 %v4550_v40, %v3914_v42  ;;  %v4544_v59 = vld [vmem:[#allocation7 + $0x1c] sm:$0xf] }
 0x1d3   : > { %v1085_v61 = vmul.f32 %v5568_v60, %v5568_v60  ;;  %1317 = vmatpush.bf16.msrb.mxu0 %v3917_v45 }
 0x1d5   : > { %1087 = vadd.xlane.f32.xlu2 %v1085_v61  ;;  %v3889_v61 = vor.u32 %v4545_v58, %v3888_v56 }
 0x1d6   : > { %v1073_v62 = vpop.xlane.xlu1 %1072 }
 0x1d7   : > { %v1082_v63 = vmul.f32 %v5565_v57, %v1073_v62  ;;  %1318 = vmatpush.bf16.msrb.mxu0 %v3905_v54  ;;  %v3890_v62 = vld [vmem:[#allocation7 + $0x24] sm:$0xf0] }
 0x1d8   : > { %v3893_v2 = vor.u32 %v4544_v59, %v3890_v62 }
 0x1d9   : > { %v5573_v0 = vsub.f32 %v1067_v50, %v1082_v63  ;;  %v3901_v50 = vor.u32 %v4548_v48, %v3900_v47  ;;  %v3896_v63 = vld [vmem:[#allocation7 + $0x20] sm:$0xf]  ;;  %v1166_v47 = vperm.slane %v1163_v41, 1 }
 0x1db   : > { %v1086_v1 = vmul.f32 %v5573_v0, %v5573_v0  ;;  %1304 = vmatpush.bf16.msra.mxu3 %v3901_v50  ;;  %1319 = vmatpush.bf16.msrb.mxu0 %v3893_v2 }
 0x1dd   : > { %1089 = vadd.xlane.f32.xlu2 %v1086_v1  ;;  %v4546_v1 = vld [vmem:[#allocation7 + $0x28] sm:$0xf0] }
 0x1de   : > { %v3897_v3 = vor.u32 %v4546_v1, %v3896_v63 }
 0x1df   : > { %1305 = vmatpush.bf16.msra.mxu3 %v3889_v61  ;;  %1320 = vmatpush.bf16.msrb.mxu0 %v3881_v13  ;;  %v5310_v13 = vmov -1e+09  }
 0x1e0   : > { %1333 = vmatpush.bf16.msrb.mxu1 %v3897_v3 }
 0x1e3   : > { %1306 = vmatpush.bf16.msra.mxu3 %v3877_v8 }
 0x1e4   : > { %1334 = vmatpush.bf16.msrb.mxu1 %v3885_v14 }
 0x248   : > { %v1088_v7 = vpop.xlane.xlu2 %1087 }
 0x249   : > { %v1091_v12 = vmul.f32 %v1088_v7, %v5565_v57 }
 0x24b   : > { %v1093_v15 = vadd.f32 1e-12, %v1091_v12  ;;  %v1127_v12 = vld [vmem:[%s799_s26] sm:$0x1] }
 0x24c   : > { %vm1128_vm1 = vcmp.gt.f32.partialorder %v1127_v12, 0.5 }
 0x24d   : > { %4850 = vrsqrt.f32 %v1093_v15  ;;  %vm1101_vm11 = vweird.f32 %v1093_v15  ;;  %v1129_v14 = vsel %vm1128_vm1, 0.0, %v5310_v13 }
 0x250   : > { %v1090_v16 = vpop.xlane.xlu2 %1089 }
 0x251   : > { %v1092_v17 = vmul.f32 %v1090_v16, %v5565_v57 }
 0x253   : > { %v4851_v18 = vpop.eup %4850  ;;  %v1094_v19 = vadd.f32 1e-12, %v1092_v17 }
 0x254   : > { %v1096_v20 = vmul.f32 %v4851_v18, %v1093_v15  ;;  %vm1102_vm10 = vweird.f32 %v4851_v18  ;;  %v5610_v15 = vperm.slane %v1129_v14, 0 }
 0x255   : > { %4852 = vrsqrt.f32 %v1094_v19  ;;  %vm1103_vm12 = vmor %vm1101_vm11, %vm1102_vm10  ;;  %vm1111_vm14 = vweird.f32 %v1094_v19 }
 0x256   : > { %v1097_v21 = vmul.f32 %v4851_v18, %v1096_v20 }
 0x258   : > { %v1098_v22 = vmul.f32 0.5, %v1097_v21 }
 0x25a   : > { %v1099_v23 = vsub.f32 1.5, %v1098_v22 }
 0x25b   : > { %v4853_v24 = vpop.eup %4852 }
 0x25c   : > { %v1100_v25 = vmul.f32 %v4851_v18, %v1099_v23  ;;  %v1106_v26 = vmul.f32 %v4853_v24, %v1094_v19  ;;  %vm1112_vm13 = vweird.f32 %v4853_v24 }
 0x25d   : > { %vm1113_vm15 = vmor %vm1111_vm14, %vm1112_vm13 }
 0x25e   : > { %v1107_v27 = vmul.f32 %v4853_v24, %v1106_v26  ;;  %v1104_v28 = vsel %vm1103_vm12, %v4851_v18, %v1100_v25 }
 0x25f   : > { %v1115_v31 = vmul.f32 %v1104_v28, %v5568_v60 }
 0x260   : > { %v1108_v29 = vmul.f32 0.5, %v1107_v27 }
 0x261   : > { %v1120_v36 = vmul.f32 %v4834_v32, %v1115_v31 }
 0x262   : > { %v1109_v30 = vsub.f32 1.5, %v1108_v29 }
 0x263   : > { %v5584_v39 = vadd.f32 %v4835_v37, %v1120_v36 }
 0x264   : > { %v1110_v33 = vmul.f32 %v4853_v24, %v1109_v30 }
 0x266   : > { %v1114_v34 = vsel %vm1113_vm15, %v4853_v24, %v1110_v33 }
 0x267   : > { %v1116_v35 = vmul.f32 %v1114_v34, %v5573_v0  ;;  %v1167_v0 = vperm.slane %v1163_v41, 2 }
 0x269   : > { %v1121_v38 = vmul.f32 %v4834_v32, %v1116_v35 }
 0x26b   : > { %v5586_v40 = vadd.f32 %v4835_v37, %v1121_v38 }
 0x26d   : > { %v1162_v60 = vpack.c.bf16 %v5586_v40, %v5584_v39 }
 0x26f   : > { %1307 = vmatmul.bf16.vlgmr.msra.gmra.mxu3 %v1162_v60  ;;  %1321 = vmatmul.bf16.vlgmr.msrb.gmra.mxu0 %v1162_v60 }
 0x270   : > { %1335 = vmatmul.bf16.vlgmr.msrb.gmra.mxu1 %v1162_v60 }
 0x2ec   : > { %v1322_v43 = vpop.f32.mrf.mxu0 }
 0x2ed   : > { %v1336_v42 = vpop.f32.mrf.mxu1  ;;  %v1323_v54 = vadd.f32 %v1322_v43, %v1166_v47 }
 0x2ee   : > { %v1337_v44 = vadd.f32 %v1336_v42, %v1167_v0 }
 0x2f0   : > { %v1342_v49 = vpack.c.bf16 %v1337_v44, %v1337_v44 }
 0x2f2   : > { %v1308_v45 = vpop.f32.mrf.mxu3  ;;  %v1423_v55 = vunpack.c.l.b16 %v1342_v49 }
 0x2f3   : > { %v1309_v51 = vadd.f32 %v1308_v45, %v1165_v46 }
 0x2f4   : > { %v1324_v52 = vpop.f32.mrf.mxu0 }
 0x2f5   : > { %v1338_v48 = vpop.f32.mrf.mxu1  ;;  %v1341_v59 = vpack.c.bf16 %v1323_v54, %v1309_v51  ;;  %v1325_v61 = vadd.f32 %v1324_v52, %v1166_v47 }
 0x2f6   : > { %v1339_v50 = vadd.f32 %v1338_v48, %v1167_v0 }
 0x2f7   : > { %v1363_v2 = vunpack.c.l.b16 %v1341_v59  ;;  %v1366_v3 = vunpack.c.h.b16 %v1341_v59 }
 0x2f8   : > { %v1344_v53 = vpack.c.bf16 %v1339_v50, %v1339_v50 }
 0x2fa   : > { %v1424_v56 = vunpack.c.l.b16 %v1344_v53  ;;  %v1310_v58 = vpop.f32.mrf.mxu3 }
 0x2fb   : > { %v1311_v62 = vadd.f32 %v1310_v58, %v1165_v46 }
 0x2fc   : > { %v5593_v63 = vpack.c.b16 %v1424_v56, %v1423_v55 }
 0x2fd   : > { %v1343_v1 = vpack.c.bf16 %v1325_v61, %v1311_v62 }
 0x2fe   : > { %1437 = vmatpush.bf16.msrb.mxu3 %v5593_v63 }
 0x2ff   : > { %v1364_v4 = vunpack.c.l.b16 %v1343_v1  ;;  %v1367_v5 = vunpack.c.h.b16 %v1343_v1 }
 0x301   : > { %v5596_v6 = vpack.c.b16 %v1364_v4, %v1363_v2  ;;  %v1368_v7 = vpack.c.b16 %v1367_v5, %v1366_v3 }
 0x303   : > { %1447 = vrot.lane.b32.xlu0 %v1368_v7, %s5309_s2  ;;  %1445 = vrot.lane.b32.xlu1 %v5596_v6, %s5309_s2  ;;  %v1374_v8 = vsel %vm1369_vm0, %v1368_v7, 0 }
 0x304   : > { %1383 = vmatpush.bf16.xpose.msrb.mxu2 %v1374_v8 }
 0x30b   : > { %3970 = vmatmul.msk.bf16.vlgmr.msrb.gmra.mxu2 %vm1369_vm0, %v5596_v6 }
 0x375   : > { %v1448_v9 = vpop.permute.xlu0 %1447  ;;  %v1446_v11 = vpop.permute.xlu1 %1445 }
 0x376   : > { %v1453_v10 = vsel %vm1369_vm0, %v1448_v9, 0 }
 0x377   : > { %1462 = vmatpush.bf16.xpose.msra.mxu2 %v1453_v10 }
 0x37e   : > { %3972 = vmatmul.msk.bf16.vlgmr.msra.gmra.mxu2 %vm1369_vm0, %v1446_v11 }
 0x38e   : > { %v1385_v16 = vpop.f32.mrf.mxu2 }
 0x38f   : > { %v1390_v17 = vmul.f32 0.17677669, %v1385_v16  ;;  %v4568_v16 = vld [vmem:[#allocation8 + $0x18] sm:$0xff] }
 0x390   : > { %1538 = vmatpush.bf16.msra.mxu1 %v4568_v16 }
 0x391   : > { %v1395_v18 = vadd.f32 %v5610_v15, %v1390_v17  ;;  %v4566_v17 = vld [vmem:[#allocation8 + $0x8] sm:$0xff] }
 0x393   : > { %v1398_v19 = vsel %vm1397_vm2, %v1395_v18, -inf }
 0x394   : > { %1399 = vmax.xlane.f32.xlu2 %v1398_v19 }
 0x396   : > { %v1387_v20 = vpop.f32.mrf.mxu2 }
 0x397   : > { %v1391_v21 = vmul.f32 0.17677669, %v1387_v20 }
 0x399   : > { %v1396_v22 = vadd.f32 %v5610_v15, %v1391_v21 }
 0x39b   : > { %v1401_v23 = vsel %vm1397_vm2, %v1396_v22, -inf }
 0x39c   : > { %1402 = vmax.xlane.f32.xlu0 %v1401_v23 }
 0x3b0   : > { %1577 = vrot.lane.b32.xlu0 %v1368_v7, %s5311_s7 }
 0x3b8   : > { %1575 = vrot.lane.b32.xlu0 %v5596_v6, %s5311_s7 }
 0x401   : > { %v1464_v24 = vpop.f32.mrf.mxu2 }
 0x402   : > { %v1469_v25 = vmul.f32 0.17677669, %v1464_v24 }
 0x404   : > { %v1471_v26 = vadd.f32 %v1469_v25, %v5610_v15 }
 0x406   : > { %v1473_v27 = vsel %vm1397_vm2, %v1471_v26, -inf }
 0x407   : > { %v1400_v28 = vpop.xlane.xlu2 %1399  ;;  %1474 = vmax.xlane.f32.xlu2 %v1473_v27 }
 0x408   : > { %v1404_v29 = vsub.f32 %v1395_v18, %v1400_v28  ;;  %v4565_v18 = vld [vmem:[#allocation8] sm:$0xff] }
 0x409   : > { %v1466_v30 = vpop.f32.mrf.mxu2 }
 0x40a   : > { %v1406_v31 = vmul.f32 1.442695, %v1404_v29  ;;  %v1470_v32 = vmul.f32 0.17677669, %v1466_v30 }
 0x40c   : > { %v1472_v33 = vadd.f32 %v1470_v32, %v5610_v15  ;;  %4854 = vpow2.f32 %v1406_v31 }
 0x40e   : > { %v1476_v34 = vsel %vm1397_vm2, %v1472_v33, -inf }
 0x40f   : > { %1477 = vmax.xlane.f32.xlu2 %v1476_v34  ;;  %v1403_v35 = vpop.xlane.xlu0 %1402 }
 0x410   : > { %v1405_v36 = vsub.f32 %v1396_v22, %v1403_v35 }
 0x412   : > { %v1408_v37 = vmul.f32 1.442695, %v1405_v36  ;;  %v4855_v38 = vpop.eup %4854 }
 0x413   : > { %v1410_v60 = vsel %vm1397_vm2, %v4855_v38, 0.0 }
 0x414   : > { %4856 = vpow2.f32 %v1408_v37 }
 0x417   : > { %1411 = vadd.xlane.f32.xlu2 %v1410_v60 }
 0x41a   : > { %v4857_v41 = vpop.eup %4856 }
 0x41b   : > { %v1413_v42 = vsel %vm1397_vm2, %v4857_v41, 0.0 }
 0x41c   : > { %1414 = vadd.xlane.f32.xlu1 %v1413_v42 }
 0x422   : > { %v1578_v43 = vpop.permute.xlu0 %1577 }
 0x423   : > { %v1583_v0 = vsel %vm1369_vm0, %v1578_v43, 0 }
 0x424   : > { %1592 = vmatpush.bf16.xpose.msrb.mxu2 %v1583_v0 }
 0x42a   : > { %v1576_v44 = vpop.permute.xlu0 %1575 }
 0x42b   : > { %3992 = vmatmul.msk.bf16.vlgmr.msrb.gmra.mxu2 %vm1369_vm0, %v1576_v44 }
 0x435   : > { %1680 = vrot.lane.b32.xlu1 %v1368_v7, %s5312_s29 }
 0x47a   : > { %v1475_v45 = vpop.xlane.xlu2 %1474 }
 0x47b   : > { %v1479_v46 = vsub.f32 %v1471_v26, %v1475_v45 }
 0x47d   : > { %v1481_v47 = vmul.f32 1.442695, %v1479_v46 }
 0x47f   : > { %4858 = vpow2.f32 %v1481_v47 }
 0x482   : > { %v1478_v48 = vpop.xlane.xlu2 %1477 }
 0x483   : > { %v1480_v49 = vsub.f32 %v1472_v33, %v1478_v48 }
 0x485   : > { %v4859_v50 = vpop.eup %4858  ;;  %v1483_v51 = vmul.f32 1.442695, %v1480_v49 }
 0x486   : > { %v1485_v52 = vsel %vm1397_vm2, %v4859_v50, 0.0 }
 0x487   : > { %4860 = vpow2.f32 %v1483_v51  ;;  %1486 = vadd.xlane.f32.xlu2 %v1485_v52 }
 0x48a   : > { %v1412_v53 = vpop.xlane.xlu2 %1411 }
 0x48b   : > { %4862 = vrcp.f32 %v1412_v53 }
 0x48d   : > { %v4861_v54 = vpop.eup %4860 }
 0x48e   : > { %v1488_v55 = vsel %vm1397_vm2, %v4861_v54, 0.0 }
 0x48f   : > { %1489 = vadd.xlane.f32.xlu2 %v1488_v55  ;;  %v1415_v56 = vpop.xlane.xlu1 %1414 }
 0x490   : > { %4864 = vrcp.f32 %v1415_v56 }
 0x491   : > { %v4863_v58 = vpop.eup %4862 }
 0x492   : > { %v1418_v61 = vmul.f32 %v4863_v58, %v4855_v38 }
 0x496   : > { %v4865_v59 = vpop.eup %4864 }
 0x497   : > { %v1419_v62 = vmul.f32 %v4865_v59, %v4857_v41 }
 0x499   : > { %v1420_v1 = vpack.c.bf16 %v1419_v62, %v1418_v61 }
 0x49b   : > { %3971 = vmatmul.msk.bf16.vlgmr.msrb.gmra.mxu3 %vm1397_vm2, %v1420_v1 }
 0x4a7   : > { %1496 = vrot.lane.b32.xlu2 %v5593_v63, %s5309_s2  ;;  %v1681_v22 = vpop.permute.xlu1 %1680 }
 0x4a8   : > { %v1686_v25 = vsel %vm1369_vm0, %v1681_v22, 0  ;;  %v4570_v22 = vld [vmem:[#allocation8 + $0x28] sm:$0xff] }
 0x4a9   : > { %1668 = vmatpush.bf16.msra.mxu0 %v4570_v22  ;;  %v4578_v22 = vld [vmem:[#allocation10 + $0x24] sm:$0xf0] }
 0x4ae   : > { %v1594_v2 = vpop.f32.mrf.mxu2 }
 0x4af   : > { %v1599_v3 = vmul.f32 0.17677669, %v1594_v2  ;;  %1678 = vrot.lane.b32.xlu2 %v5596_v6, %s5312_s29  ;;  %v4567_v6 = vld [vmem:[#allocation8 + $0x10] sm:$0xff] }
 0x4b0   : > { %1539 = vmatpush.bf16.msra.mxu1 %v4567_v6 }
 0x4b1   : > { %v1601_v4 = vadd.f32 %v1599_v3, %v5610_v15 }
 0x4b3   : > { %v1603_v5 = vsel %vm1397_vm2, %v1601_v4, -inf }
 0x4b4   : > { %1604 = vmax.xlane.f32.xlu1 %v1603_v5  ;;  %1567 = vmatpush.bf16.msrb.mxu1 %v4566_v17 }
 0x4b6   : > { %v1596_v37 = vpop.f32.mrf.mxu2 }
 0x4b7   : > { %v1600_v41 = vmul.f32 0.17677669, %v1596_v37 }
 0x4b8   : > { %1568 = vmatpush.bf16.msrb.mxu1 %v4565_v18 }
 0x4b9   : > { %v1602_v45 = vadd.f32 %v1600_v41, %v5610_v15 }
 0x4bb   : > { %v1606_v48 = vsel %vm1397_vm2, %v1602_v45, -inf }
 0x4fa   : > { %v1487_v7 = vpop.xlane.xlu2 %1486 }
 0x4fb   : > { %4866 = vrcp.f32 %v1487_v7 }
 0x501   : > { %v4867_v9 = vpop.eup %4866 }
 0x502   : > { %v1490_v8 = vpop.xlane.xlu2 %1489  ;;  %v1493_v11 = vmul.f32 %v4867_v9, %v4859_v50 }
 0x503   : > { %4868 = vrcp.f32 %v1490_v8 }
 0x509   : > { %v4869_v10 = vpop.eup %4868 }
 0x50a   : > { %v1494_v12 = vmul.f32 %v4869_v10, %v4861_v54  ;;  %v1497_v13 = vpop.permute.xlu2 %1496 }
 0x50b   : > { %1509 = vmatpush.bf16.msra.mxu3 %v1497_v13 }
 0x50c   : > { %v1495_v14 = vpack.c.bf16 %v1494_v12, %v1493_v11 }
 0x50e   : > { %3973 = vmatmul.msk.bf16.vlgmr.msra.gmra.mxu3 %vm1397_vm2, %v1495_v14 }
 0x512   : > { %v1679_v27 = vpop.permute.xlu2 %1678 }
 0x51e   : > { %v1439_v19 = vpop.f32.mrf.mxu3 }
 0x526   : > { %v1441_v20 = vpop.f32.mrf.mxu3 }
 0x527   : > { %v1444_v26 = vpack.c.bf16 %v1441_v20, %v1439_v19  ;;  %v1605_v35 = vpop.xlane.xlu1 %1604 }
 0x528   : > { %v1609_v60 = vsub.f32 %v1601_v4, %v1605_v35 }
 0x52a   : > { %v1611_v43 = vmul.f32 1.442695, %v1609_v60 }
 0x52c   : > { %4870 = vpow2.f32 %v1611_v43 }
 0x532   : > { %v4871_v49 = vpop.eup %4870 }
 0x533   : > { %v1615_v50 = vsel %vm1397_vm2, %v4871_v49, 0.0 }
 0x591   : > { %v1511_v21 = vpop.f32.mrf.mxu3 }
 0x599   : > { %v1513_v23 = vpop.f32.mrf.mxu3 }
 0x59a   : > { %v1516_v24 = vpack.c.bf16 %v1513_v23, %v1511_v21  ;;  %v4569_v23 = vld [vmem:[#allocation8 + $0x20] sm:$0xff] }
 0x59b   : > { %1669 = vmatpush.bf16.msra.mxu0 %v4569_v23  ;;  %v4577_v23 = vld [vmem:[#allocation10 + $0x24] sm:$0xf] }
 0x59c   : > { %3982 = vmatmul.msk.bf16.vlgmr.msra.gmra.mxu1 %vm1369_vm0, %v1516_v24  ;;  %v4572_v24 = vld [vmem:[#allocation8 + $0x38] sm:$0xff] }
 0x59d   : > { %1695 = vmatpush.bf16.xpose.msra.mxu1 %v1686_v25  ;;  %v4571_v25 = vld [vmem:[#allocation8 + $0x30] sm:$0xff] }
 0x5ac   : > { %3991 = vmatmul.msk.bf16.vlgmr.msrb.gmra.mxu1 %vm1369_vm0, %v1444_v26 }
 0x5bc   : > { %4003 = vmatmul.msk.bf16.vlgmr.msra.gmra.mxu1 %vm1369_vm0, %v1679_v27 }
 0x619   : > { %v1541_v28 = vpop.f32.mrf.mxu1 }
 0x621   : > { %v1543_v29 = vpop.f32.mrf.mxu1 }
 0x629   : > { %v1570_v30 = vpop.f32.mrf.mxu1 }
 0x62a   : > { %v5642_v31 = vadd.f32 %v1570_v30, %v1541_v28 }
 0x631   : > { %v1572_v32 = vpop.f32.mrf.mxu1 }
 0x632   : > { %v5644_v33 = vadd.f32 %v1572_v32, %v1543_v29 }
 0x639   : > { %v1697_v34 = vpop.f32.mrf.mxu1 }
 0x63a   : > { %v1702_v36 = vmul.f32 0.17677669, %v1697_v34 }
 0x63c   : > { %v1704_v38 = vadd.f32 %v1702_v36, %v5610_v15  ;;  %v4836_v36 = vld [vmem:[%s5897_s10] ss:$0 sm:$0xff] }
 0x63e   : > { %v1706_v42 = vsel %vm1397_vm2, %v1704_v38, -inf }
 0x63f   : > { %1707 = vmax.xlane.f32.xlu0 %v1706_v42 }
 0x641   : > { %v1699_v0 = vpop.f32.mrf.mxu1 }
 0x642   : > { %v1703_v44 = vmul.f32 0.17677669, %v1699_v0 }
 0x644   : > { %v1705_v46 = vadd.f32 %v1703_v44, %v5610_v15 }
 0x646   : > { %v1709_v47 = vsel %vm1397_vm2, %v1705_v46, -inf }
 0x647   : > { %1710 = vmax.xlane.f32.xlu2 %v1709_v47  ;;  %1607 = vmax.xlane.f32.xlu0 %v1606_v48 }
 0x64f   : > { %1616 = vadd.xlane.f32.xlu2 %v1615_v50 }
 0x6b2   : > { %v1708_v51 = vpop.xlane.xlu0 %1707 }
 0x6b3   : > { %v1712_v52 = vsub.f32 %v1704_v38, %v1708_v51 }
 0x6b5   : > { %v1714_v53 = vmul.f32 1.442695, %v1712_v52  ;;  %v4588_v52 = vld [vmem:[#allocation10 + $0x74] sm:$0xf0] }
 0x6b7   : > { %4872 = vpow2.f32 %v1714_v53  ;;  %v4587_v53 = vld [vmem:[#allocation10 + $0x74] sm:$0xf] }
 0x6ba   : > { %v1711_v54 = vpop.xlane.xlu2 %1710  ;;  %v1608_v55 = vpop.xlane.xlu0 %1607 }
 0x6bb   : > { %v1713_v56 = vsub.f32 %v1705_v46, %v1711_v54  ;;  %v1610_v58 = vsub.f32 %v1602_v45, %v1608_v55  ;;  %v4074_v55 = vld [vmem:[#allocation10 + $0x78] sm:$0xf0] }
 0x6bd   : > { %v4873_v59 = vpop.eup %4872  ;;  %v1716_v61 = vmul.f32 1.442695, %v1713_v56  ;;  %v1613_v62 = vmul.f32 1.442695, %v1610_v58  ;;  %v4077_v56 = vor.u32 %v4587_v53, %v4074_v55  ;;  %v4064_v58 = vld [vmem:[#allocation10 + $0x60] sm:$0xf] }
 0x6be   : > { %v1718_v1 = vsel %vm1397_vm2, %v4873_v59, 0.0 }
 0x6bf   : > { %4874 = vpow2.f32 %v1716_v61  ;;  %1719 = vadd.xlane.f32.xlu2 %v1718_v1  ;;  %1958 = vmatpush.bf16.msrb.mxu1 %v4077_v56  ;;  %v4585_v61 = vld [vmem:[#allocation10 + $0x64] sm:$0xf]  ;;  %v4066_v1 = vld [vmem:[#allocation10 + $0x68] sm:$0xf0] }
 0x6c0   : > { %4876 = vpow2.f32 %v1613_v62 }
 0x6c2   : > { %v1617_v7 = vpop.xlane.xlu2 %1616 }
 0x6c3   : > { %4878 = vrcp.f32 %v1617_v7 }
 0x6c5   : > { %v4875_v2 = vpop.eup %4874 }
 0x6c6   : > { %v4877_v3 = vpop.eup %4876  ;;  %v1721_v4 = vsel %vm1397_vm2, %v4875_v2, 0.0 }
 0x6c7   : > { %1722 = vadd.xlane.f32.xlu0 %v1721_v4  ;;  %v1618_v5 = vsel %vm1397_vm2, %v4877_v3, 0.0  ;;  %v4584_v4 = vld [vmem:[#allocation10 + $0x54] sm:$0xf0] }
 0x6c8   : > { %1619 = vadd.xlane.f32.xlu1 %v1618_v5  ;;  %v4583_v5 = vld [vmem:[#allocation10 + $0x54] sm:$0xf] }
 0x6c9   : > { %v4879_v12 = vpop.eup %4878 }
 0x6ca   : > { %v1623_v14 = vmul.f32 %v4879_v12, %v4871_v49  ;;  %v4581_v12 = vld [vmem:[#allocation10 + $0x44] sm:$0xf] }
 0x6d7   : > { %1626 = vrot.lane.b32.xlu2 %v5593_v63, %s5311_s7 }
 0x6db   : > { %1729 = vrot.lane.b32.xlu0 %v5593_v63, %s5312_s29 }
 0x732   : > { %v1720_v8 = vpop.xlane.xlu2 %1719 }
 0x73a   : > { %v1627_v9 = vpop.permute.xlu2 %1626  ;;  %v1723_v11 = vpop.xlane.xlu0 %1722 }
 0x73b   : > { %v1620_v10 = vpop.xlane.xlu1 %1619  ;;  %1639 = vmatpush.bf16.msrb.mxu3 %v1627_v9 }
 0x73c   : > { %4880 = vrcp.f32 %v1620_v10  ;;  %v4048_v10 = vld [vmem:[#allocation10 + $0x40] sm:$0xf] }
 0x73d   : > { %4882 = vrcp.f32 %v1723_v11  ;;  %v4582_v11 = vld [vmem:[#allocation10 + $0x44] sm:$0xf0] }
 0x73e   : > { %4884 = vrcp.f32 %v1720_v8  ;;  %v4058_v8 = vld [vmem:[#allocation10 + $0x58] sm:$0xf0] }
 0x73f   : > { %1771 = vmatpush.bf16.msra.mxu3 %v4572_v24  ;;  %v4061_v9 = vor.u32 %v4583_v5, %v4058_v8  ;;  %v4596_v8 = vld [vmem:[#allocation11 + $0x38] sm:$0xff] }
 0x742   : > { %v4881_v13 = vpop.eup %4880 }
 0x743   : > { %v1624_v16 = vmul.f32 %v4881_v13, %v4877_v3  ;;  %v4883_v17 = vpop.eup %4882  ;;  %1772 = vmatpush.bf16.msra.mxu3 %v4571_v25  ;;  %v4056_v3 = vld [vmem:[#allocation10 + $0x50] sm:$0xf]  ;;  %v4049_v13 = vor.u32 %v4582_v11, %v4048_v10  ;;  %v4034_v25 = vld [vmem:[#allocation10 + $0x28] sm:$0xf0] }
 0x744   : > { %v4885_v18 = vpop.eup %4884  ;;  %v1727_v63 = vmul.f32 %v4883_v17, %v4875_v2  ;;  %v4069_v2 = vor.u32 %v4585_v61, %v4066_v1  ;;  %v4057_v7 = vor.u32 %v4584_v4, %v4056_v3  ;;  %v4580_v17 = vld [vmem:[#allocation10 + $0x34] sm:$0xf0]  ;;  %v4838_v3 = vld [vmem:[%s5899_s12] ss:$0 sm:$0xff]  ;;  %v4603_v10 = vld [vmem:[#allocation11 + $0x70] sm:$0xff] }
 0x745   : > { %v1625_v6 = vpack.c.bf16 %v1624_v16, %v1623_v14  ;;  %v1726_v19 = vmul.f32 %v4885_v18, %v4873_v59  ;;  %v4586_v59 = vld [vmem:[#allocation10 + $0x64] sm:$0xf0]  ;;  %v4050_v14 = vld [vmem:[#allocation10 + $0x48] sm:$0xf0]  ;;  %v4579_v18 = vld [vmem:[#allocation10 + $0x34] sm:$0xf] }
 0x746   : > { %v4065_v62 = vor.u32 %v4586_v59, %v4064_v58  ;;  %1959 = vmatpush.bf16.msrb.mxu1 %v4069_v2  ;;  %v4053_v16 = vor.u32 %v4581_v12, %v4050_v14  ;;  %v4837_v59 = vld [vmem:[%s5898_s11] ss:$0 sm:$0xff]  ;;  %v4594_v11 = vld [vmem:[#allocation11 + $0x28] sm:$0xff]  ;;  %v4601_v14 = vld [vmem:[#allocation11 + $0x60] sm:$0xff] }
 0x747   : > { %3993 = vmatmul.msk.bf16.vlgmr.msrb.gmra.mxu3 %vm1397_vm2, %v1625_v6  ;;  %v1728_v21 = vpack.c.bf16 %v1727_v63, %v1726_v19  ;;  %v4040_v6 = vld [vmem:[#allocation10 + $0x30] sm:$0xf]  ;;  %v4042_v19 = vld [vmem:[#allocation10 + $0x38] sm:$0xf0]  ;;  %v4602_v12 = vld [vmem:[#allocation11 + $0x68] sm:$0xff] }
 0x748   : > { %v4041_v63 = vor.u32 %v4580_v17, %v4040_v6  ;;  %v4600_v6 = vld [vmem:[#allocation11 + $0x58] sm:$0xff]  ;;  %v4591_v17 = vld [vmem:[#allocation11 + $0x10] sm:$0xff] }
 0x74a   : > { %1960 = vmatpush.bf16.msrb.mxu1 %v4061_v9  ;;  %v4604_v9 = vld [vmem:[#allocation11 + $0x78] sm:$0xff] }
 0x74b   : > { %2156 = vmatpush.bf16.msrb.mxu3 %v4604_v9 }
 0x74d   : > { %v1730_v20 = vpop.permute.xlu0 %1729 }
 0x74e   : > { %1742 = vmatpush.bf16.msra.mxu2 %v1730_v20  ;;  %1961 = vmatpush.bf16.msrb.mxu1 %v4053_v16  ;;  %v4045_v20 = vor.u32 %v4579_v18, %v4042_v19  ;;  %v4592_v16 = vld [vmem:[#allocation11 + $0x18] sm:$0xff]  ;;  %v4599_v18 = vld [vmem:[#allocation11 + $0x50] sm:$0xff]  ;;  %v4590_v19 = vld [vmem:[#allocation11 + $0x8] sm:$0xff] }
 0x74f   : > { %2157 = vmatpush.bf16.msrb.mxu3 %v4603_v10 }
 0x751   : > { %4004 = vmatmul.msk.bf16.vlgmr.msra.gmra.mxu2 %vm1397_vm2, %v1728_v21  ;;  %v4032_v21 = vld [vmem:[#allocation10 + $0x20] sm:$0xf] }
 0x752   : > { %1962 = vmatpush.bf16.msrb.mxu1 %v4045_v20  ;;  %v4033_v24 = vor.u32 %v4578_v22, %v4032_v21  ;;  %2142 = vmatpush.bf16.msrb.mxu2 %v4596_v8  ;;  %v4598_v20 = vld [vmem:[#allocation11 + $0x48] sm:$0xff] }
 0x753   : > { %2158 = vmatpush.bf16.msrb.mxu3 %v4602_v12  ;;  %v4839_v12 = vld [vmem:[#allocation13] ss:$0 sm:$0xff] }
 0x757   : > { %2159 = vmatpush.bf16.msrb.mxu3 %v4601_v14 }
 0x75b   : > { %2160 = vmatpush.bf16.msrb.mxu3 %v4600_v6 }
 0x75f   : > { %2161 = vmatpush.bf16.msrb.mxu3 %v4599_v18 }
 0x763   : > { %2162 = vmatpush.bf16.msrb.mxu3 %v4598_v20 }
 0x7ca   : > { %v1641_v26 = vpop.f32.mrf.mxu3 }
 0x7d2   : > { %v1643_v27 = vpop.f32.mrf.mxu3 }
 0x7d3   : > { %v1646_v28 = vpack.c.bf16 %v1643_v27, %v1641_v26  ;;  %v4037_v26 = vor.u32 %v4577_v23, %v4034_v25  ;;  %v4024_v27 = vld [vmem:[#allocation10 + $0x10] sm:$0xf]  ;;  %v4589_v25 = vld [vmem:[#allocation11] sm:$0xff] }
 0x7d4   : > { %v1744_v29 = vpop.f32.mrf.mxu2 }
 0x7d5   : > { %4002 = vmatmul.msk.bf16.vlgmr.msra.gmra.mxu0 %vm1369_vm0, %v1646_v28  ;;  %1963 = vmatpush.bf16.msrb.mxu1 %v4037_v26  ;;  %v4576_v28 = vld [vmem:[#allocation10 + $0x14] sm:$0xf0]  ;;  %v4597_v26 = vld [vmem:[#allocation11 + $0x40] sm:$0xff] }
 0x7d6   : > { %2163 = vmatpush.bf16.msrb.mxu3 %v4597_v26 }
 0x7dc   : > { %v1746_v30 = vpop.f32.mrf.mxu2 }
 0x7dd   : > { %v1749_v32 = vpack.c.bf16 %v1746_v30, %v1744_v29  ;;  %v4575_v29 = vld [vmem:[#allocation10 + $0x14] sm:$0xf]  ;;  %v4025_v30 = vor.u32 %v4576_v28, %v4024_v27 }
 0x7df   : > { %4013 = vmatmul.msk.bf16.vlgmr.msra.gmra.mxu3 %vm1369_vm0, %v1749_v32  ;;  %v4026_v32 = vld [vmem:[#allocation10 + $0x18] sm:$0xf0] }
 0x852   : > { %v1671_v34 = vpop.f32.mrf.mxu0 }
 0x853   : > { %v1676_v35 = vadd.f32 %v1671_v34, %v5642_v31  ;;  %v4016_v34 = vld [vmem:[#allocation10] sm:$0xf] }
 0x85a   : > { %v1673_v41 = vpop.f32.mrf.mxu0 }
 0x85b   : > { %v1677_v43 = vadd.f32 %v1673_v41, %v5644_v33 }
 0x862   : > { %v1774_v37 = vpop.f32.mrf.mxu3 }
 0x863   : > { %v1779_v38 = vadd.f32 %v1774_v37, %v1676_v35  ;;  %v4574_v35 = vld [vmem:[#allocation10 + $0x4] sm:$0xf0]  ;;  %v4029_v37 = vor.u32 %v4575_v29, %v4026_v32 }
 0x865   : > { %v1785_v60 = vadd.f32 %v4836_v36, %v1779_v38  ;;  %v4573_v38 = vld [vmem:[#allocation10 + $0x4] sm:$0xf]  ;;  %1964 = vmatpush.bf16.msrb.mxu1 %v4029_v37 }
 0x867   : > { %v1787_v42 = vadd.f32 %v1785_v60, %v5584_v39  ;;  %v4018_v60 = vld [vmem:[#allocation10 + $0x8] sm:$0xf0] }
 0x869   : > { %1791 = vadd.xlane.f32.xlu1 %v1787_v42 }
 0x86a   : > { %v1776_v0 = vpop.f32.mrf.mxu3 }
 0x86b   : > { %v1780_v44 = vadd.f32 %v1776_v0, %v1677_v43  ;;  %v4021_v43 = vor.u32 %v4573_v38, %v4018_v60 }
 0x86d   : > { %v1786_v45 = vadd.f32 %v4836_v36, %v1780_v44  ;;  %1965 = vmatpush.bf16.msrb.mxu1 %v4021_v43 }
 0x86f   : > { %v1788_v46 = vadd.f32 %v1786_v45, %v5586_v40  ;;  %v4072_v40 = vld [vmem:[#allocation10 + $0x70] sm:$0xf] }
 0x870   : > { %v4073_v54 = vor.u32 %v4588_v52, %v4072_v40 }
 0x871   : > { %1793 = vadd.xlane.f32.xlu1 %v1788_v46 }
 0x872   : > { %1944 = vmatpush.bf16.msrb.mxu0 %v4073_v54 }
 0x876   : > { %1945 = vmatpush.bf16.msrb.mxu0 %v4065_v62 }
 0x87a   : > { %1946 = vmatpush.bf16.msrb.mxu0 %v4057_v7 }
 0x87e   : > { %1947 = vmatpush.bf16.msrb.mxu0 %v4049_v13  ;;  %v4593_v13 = vld [vmem:[#allocation11 + $0x20] sm:$0xff] }
 0x882   : > { %1948 = vmatpush.bf16.msrb.mxu0 %v4041_v63  ;;  %v1858_v63 = vld [vmem:[%s5901_s14] sm:$0x3] }
 0x883   : > { %v1860_v21 = vperm.slane %v1858_v63, 0  ;;  %v1861_v22 = vperm.slane %v1858_v63, 1 }
 0x886   : > { %1949 = vmatpush.bf16.msrb.mxu0 %v4033_v24 }
 0x88a   : > { %1950 = vmatpush.bf16.msrb.mxu0 %v4025_v30 }
 0x8dc   : > { %v1792_v31 = vpop.xlane.xlu1 %1791 }
 0x8dd   : > { %v1795_v47 = vmul.f32 %v1792_v31, %v5565_v57 }
 0x8df   : > { %v5672_v48 = vsub.f32 %v1787_v42, %v1795_v47  ;;  %v4017_v42 = vor.u32 %v4574_v35, %v4016_v34 }
 0x8e1   : > { %v1799_v49 = vmul.f32 %v5672_v48, %v5672_v48  ;;  %1951 = vmatpush.bf16.msrb.mxu0 %v4017_v42 }
 0x8e3   : > { %1801 = vadd.xlane.f32.xlu0 %v1799_v49 }
 0x8e4   : > { %v1794_v50 = vpop.xlane.xlu1 %1793 }
 0x8e5   : > { %v1796_v39 = vmul.f32 %v1794_v50, %v5565_v57 }
 0x8e7   : > { %v5677_v33 = vsub.f32 %v1788_v46, %v1796_v39 }
 0x8e9   : > { %v1800_v51 = vmul.f32 %v5677_v33, %v5677_v33 }
 0x8eb   : > { %1803 = vadd.xlane.f32.xlu1 %v1800_v51 }
 0x956   : > { %v1802_v36 = vpop.xlane.xlu0 %1801 }
 0x957   : > { %v1805_v41 = vmul.f32 %v1802_v36, %v5565_v57 }
 0x959   : > { %v1807_v0 = vadd.f32 1e-12, %v1805_v41 }
 0x95b   : > { %4886 = vrsqrt.f32 %v1807_v0  ;;  %vm1815_vm4 = vweird.f32 %v1807_v0 }
 0x95e   : > { %v1804_v44 = vpop.xlane.xlu1 %1803 }
 0x95f   : > { %v1806_v45 = vmul.f32 %v1804_v44, %v5565_v57 }
 0x961   : > { %v4887_v46 = vpop.eup %4886  ;;  %v1808_v31 = vadd.f32 1e-12, %v1806_v45 }
 0x962   : > { %v1810_v47 = vmul.f32 %v4887_v46, %v1807_v0  ;;  %vm1816_vm3 = vweird.f32 %v4887_v46 }
 0x963   : > { %4888 = vrsqrt.f32 %v1808_v31  ;;  %vm1817_vm5 = vmor %vm1815_vm4, %vm1816_vm3  ;;  %vm1825_vm7 = vweird.f32 %v1808_v31 }
 0x964   : > { %v1811_v49 = vmul.f32 %v4887_v46, %v1810_v47 }
 0x966   : > { %v1812_v50 = vmul.f32 0.5, %v1811_v49 }
 0x968   : > { %v1813_v39 = vsub.f32 1.5, %v1812_v50 }
 0x969   : > { %v4889_v51 = vpop.eup %4888 }
 0x96a   : > { %v1814_v40 = vmul.f32 %v4887_v46, %v1813_v39  ;;  %v1820_v52 = vmul.f32 %v4889_v51, %v1808_v31  ;;  %vm1826_vm6 = vweird.f32 %v4889_v51 }
 0x96b   : > { %vm1827_vm8 = vmor %vm1825_vm7, %vm1826_vm6 }
 0x96c   : > { %v1821_v53 = vmul.f32 %v4889_v51, %v1820_v52  ;;  %v1818_v54 = vsel %vm1817_vm5, %v4887_v46, %v1814_v40 }
 0x96d   : > { %v1829_v58 = vmul.f32 %v1818_v54, %v5672_v48 }
 0x96e   : > { %v1822_v55 = vmul.f32 0.5, %v1821_v53 }
 0x96f   : > { %v1834_v2 = vmul.f32 %v4837_v59, %v1829_v58 }
 0x970   : > { %v1823_v56 = vsub.f32 1.5, %v1822_v55 }
 0x971   : > { %v5691_v5 = vadd.f32 %v4838_v3, %v1834_v2 }
 0x972   : > { %v1824_v61 = vmul.f32 %v4889_v51, %v1823_v56 }
 0x974   : > { %v1828_v62 = vsel %vm1827_vm8, %v4889_v51, %v1824_v61 }
 0x975   : > { %v1830_v1 = vmul.f32 %v1828_v62, %v5677_v33  ;;  %v4595_v33 = vld [vmem:[#allocation11 + $0x30] sm:$0xff] }
 0x976   : > { %2143 = vmatpush.bf16.msrb.mxu2 %v4595_v33 }
 0x977   : > { %v1835_v4 = vmul.f32 %v4837_v59, %v1830_v1 }
 0x979   : > { %v5693_v7 = vadd.f32 %v4838_v3, %v1835_v4 }
 0x97a   : > { %2144 = vmatpush.bf16.msrb.mxu2 %v4594_v11 }
 0x97b   : > { %v1857_v48 = vpack.c.bf16 %v5693_v7, %v5691_v5 }
 0x97d   : > { %1952 = vmatmul.bf16.vlgmr.msrb.gmra.mxu0 %v1857_v48  ;;  %1966 = vmatmul.bf16.vlgmr.msrb.gmra.mxu1 %v1857_v48 }
 0x97e   : > { %2145 = vmatpush.bf16.msrb.mxu2 %v4593_v13 }
 0x982   : > { %2146 = vmatpush.bf16.msrb.mxu2 %v4592_v16 }
 0x986   : > { %2147 = vmatpush.bf16.msrb.mxu2 %v4591_v17 }
 0x98a   : > { %2148 = vmatpush.bf16.msrb.mxu2 %v4590_v19 }
 0x98e   : > { %2149 = vmatpush.bf16.msrb.mxu2 %v4589_v25 }
 0x9fa   : > { %v1953_v23 = vpop.f32.mrf.mxu0  ;;  %v1967_v24 = vpop.f32.mrf.mxu1 }
 0x9fb   : > { %v1954_v27 = vadd.f32 %v1953_v23, %v1860_v21  ;;  %v1968_v28 = vadd.f32 %v1967_v24, %v1861_v22 }
 0x9fd   : > { %v1972_v29 = vmul.f32 %v1954_v27, %v1954_v27  ;;  %v1973_v30 = vmul.f32 %v1968_v28, %v1968_v28 }
 0x9ff   : > { %v1976_v32 = vmul.f32 %v1972_v29, %v1954_v27  ;;  %v1977_v34 = vmul.f32 %v1973_v30, %v1968_v28  ;;  %v4627_v29 = vld [vmem:[#allocation7 + $0x170] sm:$0xf0]  ;;  %v4626_v30 = vld [vmem:[#allocation7 + $0x16c] sm:$0xf] }
 0xa01   : > { %v1980_v35 = vmul.f32 0.044715, %v1976_v32  ;;  %v1981_v36 = vmul.f32 0.044715, %v1977_v34  ;;  %v4231_v34 = vld [vmem:[#allocation7 + $0x174] sm:$0xf0] }
 0xa02   : > { %v1955_v37 = vpop.f32.mrf.mxu0  ;;  %v1969_v38 = vpop.f32.mrf.mxu1 }
 0xa03   : > { %v1984_v60 = vadd.f32 %v1980_v35, %v1954_v27  ;;  %v1985_v41 = vadd.f32 %v1981_v36, %v1968_v28  ;;  %v1956_v42 = vadd.f32 %v1955_v37, %v1860_v21  ;;  %v1970_v43 = vadd.f32 %v1969_v38, %v1861_v22  ;;  %v4237_v35 = vld [vmem:[#allocation7 + $0x170] sm:$0xf]  ;;  %v4628_v36 = vld [vmem:[#allocation7 + $0x178] sm:$0xf0] }
 0xa04   : > { %v4234_v37 = vor.u32 %v4626_v30, %v4231_v34  ;;  %v4238_v38 = vor.u32 %v4628_v36, %v4237_v35  ;;  %v4145_v34 = vld [vmem:[#allocation7 + $0xc0] sm:$0xf]  ;;  %v4606_v35 = vld [vmem:[#allocation7 + $0xc8] sm:$0xf0]  ;;  %v4605_v36 = vld [vmem:[#allocation7 + $0xc4] sm:$0xf] }
 0xa05   : > { %v1988_v0 = vmul.f32 0.7978846, %v1984_v60  ;;  %v1974_v44 = vmul.f32 %v1956_v42, %v1956_v42  ;;  %v1975_v45 = vmul.f32 %v1970_v43, %v1970_v43  ;;  %v1989_v46 = vmul.f32 0.7978846, %v1985_v41  ;;  %v4217_v60 = vld [vmem:[#allocation7 + $0x150] sm:$0xf] }
 0xa06   : > { %2409 = vmatpush.bf16.msra.mxu1 %v4234_v37  ;;  %2423 = vmatpush.bf16.msra.mxu2 %v4238_v38  ;;  %v4624_v41 = vld [vmem:[#allocation7 + $0x158] sm:$0xf0]  ;;  %v4146_v38 = vor.u32 %v4606_v35, %v4145_v34 }
 0xa07   : > { %v1978_v31 = vmul.f32 %v1974_v44, %v1956_v42  ;;  %v1979_v47 = vmul.f32 %v1975_v45, %v1970_v43  ;;  %4890 = vtanh.f32 %v1988_v0  ;;  %v4219_v0 = vld [vmem:[#allocation7 + $0x15c] sm:$0xf0]  ;;  %v4225_v44 = vld [vmem:[#allocation7 + $0x158] sm:$0xf]  ;;  %v4625_v45 = vld [vmem:[#allocation7 + $0x160] sm:$0xf0] }
 0xa08   : > { %4892 = vtanh.f32 %v1989_v46 }
 0xa09   : > { %v1982_v49 = vmul.f32 0.044715, %v1978_v31  ;;  %v1983_v50 = vmul.f32 0.044715, %v1979_v47  ;;  %v4226_v31 = vor.u32 %v4625_v45, %v4225_v44  ;;  %v4205_v47 = vld [vmem:[#allocation7 + $0x138] sm:$0xf] }
 0xa0b   : > { %v1986_v39 = vadd.f32 %v1982_v49, %v1956_v42  ;;  %v1987_v51 = vadd.f32 %v1983_v50, %v1970_v43  ;;  %2424 = vmatpush.bf16.msra.mxu2 %v4226_v31  ;;  %v4621_v49 = vld [vmem:[#allocation7 + $0x140] sm:$0xf0]  ;;  %v4620_v50 = vld [vmem:[#allocation7 + $0x13c] sm:$0xf] }
 0xa0d   : > { %v1990_v40 = vmul.f32 0.7978846, %v1986_v39  ;;  %v1991_v52 = vmul.f32 0.7978846, %v1987_v51  ;;  %v4891_v53 = vpop.eup %4890  ;;  %v4206_v39 = vor.u32 %v4621_v49, %v4205_v47  ;;  %v4207_v51 = vld [vmem:[#allocation7 + $0x144] sm:$0xf0] }
 0xa0e   : > { %v4893_v54 = vpop.eup %4892  ;;  %v1996_v55 = vadd.f32 1.0, %v4891_v53  ;;  %v4210_v53 = vor.u32 %v4620_v50, %v4207_v51 }
 0xa0f   : > { %4894 = vtanh.f32 %v1990_v40  ;;  %v1997_v56 = vadd.f32 1.0, %v4893_v54  ;;  %v4213_v40 = vld [vmem:[#allocation7 + $0x140] sm:$0xf] }
 0xa10   : > { %4896 = vtanh.f32 %v1991_v52  ;;  %v2000_v61 = vmul.f32 0.5, %v1996_v55  ;;  %v4622_v52 = vld [vmem:[#allocation7 + $0x148] sm:$0xf0]  ;;  %v4193_v55 = vld [vmem:[#allocation7 + $0x120] sm:$0xf] }
 0xa11   : > { %v2001_v1 = vmul.f32 0.5, %v1997_v56  ;;  %v4214_v54 = vor.u32 %v4622_v52, %v4213_v40  ;;  %v4618_v56 = vld [vmem:[#allocation7 + $0x128] sm:$0xf0] }
 0xa12   : > { %v2004_v48 = vmul.f32 %v2000_v61, %v1954_v27  ;;  %v4195_v61 = vld [vmem:[#allocation7 + $0x12c] sm:$0xf0] }
 0xa13   : > { %v2005_v9 = vmul.f32 %v2001_v1, %v1968_v28  ;;  %2425 = vmatpush.bf16.msra.mxu2 %v4214_v54  ;;  %v4619_v1 = vld [vmem:[#allocation7 + $0x130] sm:$0xf0] }
 0xa15   : > { %v4895_v58 = vpop.eup %4894 }
 0xa16   : > { %v4897_v59 = vpop.eup %4896  ;;  %v1998_v62 = vadd.f32 1.0, %v4895_v58  ;;  %v4617_v58 = vld [vmem:[#allocation7 + $0x124] sm:$0xf] }
 0xa17   : > { %v1999_v2 = vadd.f32 1.0, %v4897_v59  ;;  %v4194_v59 = vor.u32 %v4618_v56, %v4193_v55 }
 0xa18   : > { %v2002_v3 = vmul.f32 0.5, %v1998_v62  ;;  %v4201_v62 = vld [vmem:[#allocation7 + $0x128] sm:$0xf] }
 0xa19   : > { %v2003_v4 = vmul.f32 0.5, %v1999_v2  ;;  %v4198_v2 = vor.u32 %v4617_v58, %v4195_v61  ;;  %v4840_v61 = vld [vmem:[%s5904_s17] ss:$0 sm:$0xff] }
 0xa1a   : > { %v2006_v8 = vmul.f32 %v2002_v3, %v1956_v42  ;;  %v4623_v42 = vld [vmem:[#allocation7 + $0x154] sm:$0xf]  ;;  %v4202_v3 = vor.u32 %v4619_v1, %v4201_v62 }
 0xa1b   : > { %v2007_v33 = vmul.f32 %v2003_v4, %v1970_v43  ;;  %v4218_v43 = vor.u32 %v4624_v41, %v4217_v60  ;;  %v4222_v46 = vor.u32 %v4623_v42, %v4219_v0  ;;  %v4181_v4 = vld [vmem:[#allocation7 + $0x108] sm:$0xf]  ;;  %v4147_v60 = vld [vmem:[#allocation7 + $0xcc] sm:$0xf0]  ;;  %v4607_v42 = vld [vmem:[#allocation7 + $0xd0] sm:$0xf0] }
 0xa1c   : > { %v2040_v10 = vpack.c.bf16 %v2006_v8, %v2004_v48  ;;  %2426 = vmatpush.bf16.msra.mxu2 %v4202_v3  ;;  %v4615_v48 = vld [vmem:[#allocation7 + $0x110] sm:$0xf0]  ;;  %v4614_v8 = vld [vmem:[#allocation7 + $0x10c] sm:$0xf]  ;;  %v4153_v41 = vld [vmem:[#allocation7 + $0xc8] sm:$0xf] }
 0xa1d   : > { %v2041_v11 = vpack.c.bf16 %v2007_v33, %v2005_v9  ;;  %2410 = vmatpush.bf16.msra.mxu1 %v4222_v46  ;;  %v4182_v9 = vor.u32 %v4615_v48, %v4181_v4  ;;  %v4183_v33 = vld [vmem:[#allocation7 + $0x114] sm:$0xf0]  ;;  %v4154_v0 = vor.u32 %v4607_v42, %v4153_v41  ;;  %v4841_v4 = vld [vmem:[%s5905_s18] ss:$0 sm:$0xff] }
 0xa1e   : > { %2150 = vmatmul.bf16.vlgmr.msrb.gmra.mxu2 %v2040_v10  ;;  %v4189_v10 = vld [vmem:[#allocation7 + $0x110] sm:$0xf] }
 0xa1f   : > { %2164 = vmatmul.bf16.vlgmr.msrb.gmra.mxu3 %v2041_v11  ;;  %v4616_v11 = vld [vmem:[#allocation7 + $0x118] sm:$0xf0] }
 0xa21   : > { %2411 = vmatpush.bf16.msra.mxu1 %v4210_v53 }
 0xa25   : > { %2412 = vmatpush.bf16.msra.mxu1 %v4198_v2 }
 0xaa1   : > { %v2151_v13 = vpop.f32.mrf.mxu2 }
 0xaa2   : > { %v2152_v14 = vadd.f32 %v4839_v12, %v2151_v13  ;;  %v2165_v16 = vpop.f32.mrf.mxu3  ;;  %v4190_v13 = vor.u32 %v4616_v11, %v4189_v10 }
 0xaa4   : > { %v2166_v6 = vadd.f32 %v2165_v16, %v2152_v14  ;;  %2427 = vmatpush.bf16.msra.mxu2 %v4190_v13  ;;  %v4169_v14 = vld [vmem:[#allocation7 + $0xf0] sm:$0xf]  ;;  %v4612_v16 = vld [vmem:[#allocation7 + $0xf8] sm:$0xf0] }
 0xaa6   : > { %v2170_v17 = vadd.f32 %v2166_v6, %v5691_v5  ;;  %v4611_v6 = vld [vmem:[#allocation7 + $0xf4] sm:$0xf] }
 0xaa8   : > { %2174 = vadd.xlane.f32.xlu2 %v2170_v17 }
 0xaa9   : > { %v2153_v18 = vpop.f32.mrf.mxu2 }
 0xaaa   : > { %v2154_v63 = vadd.f32 %v4839_v12, %v2153_v18  ;;  %v2167_v19 = vpop.f32.mrf.mxu3  ;;  %v4186_v12 = vor.u32 %v4614_v8, %v4183_v33  ;;  %v4171_v18 = vld [vmem:[#allocation7 + $0xfc] sm:$0xf0] }
 0xaac   : > { %v2168_v20 = vadd.f32 %v2167_v19, %v2154_v63  ;;  %2413 = vmatpush.bf16.msra.mxu1 %v4186_v12  ;;  %v4177_v63 = vld [vmem:[#allocation7 + $0xf8] sm:$0xf]  ;;  %v4613_v19 = vld [vmem:[#allocation7 + $0x100] sm:$0xf0] }
 0xaae   : > { %v2171_v21 = vadd.f32 %v2168_v20, %v5693_v7  ;;  %v4229_v7 = vld [vmem:[#allocation7 + $0x168] sm:$0xf]  ;;  %v4174_v20 = vor.u32 %v4611_v6, %v4171_v18 }
 0xaaf   : > { %v4230_v32 = vor.u32 %v4627_v29, %v4229_v7  ;;  %v4610_v7 = vld [vmem:[#allocation7 + $0xe8] sm:$0xf0] }
 0xab0   : > { %2176 = vadd.xlane.f32.xlu1 %v2171_v21  ;;  %2414 = vmatpush.bf16.msra.mxu1 %v4174_v20 }
 0xab1   : > { %2395 = vmatpush.bf16.msra.mxu0 %v4230_v32 }
 0xab5   : > { %2396 = vmatpush.bf16.msra.mxu0 %v4218_v43  ;;  %v4150_v43 = vor.u32 %v4605_v36, %v4147_v60 }
 0xab9   : > { %2397 = vmatpush.bf16.msra.mxu0 %v4206_v39 }
 0xabd   : > { %2398 = vmatpush.bf16.msra.mxu0 %v4194_v59 }
 0xac1   : > { %2399 = vmatpush.bf16.msra.mxu0 %v4182_v9 }
 0xb1b   : > { %v2175_v22 = vpop.xlane.xlu2 %2174 }
 0xb1c   : > { %v2178_v23 = vmul.f32 %v2175_v22, %v5565_v57  ;;  %v4157_v22 = vld [vmem:[#allocation7 + $0xd8] sm:$0xf] }
 0xb1e   : > { %v5703_v24 = vsub.f32 %v2170_v17, %v2178_v23  ;;  %v4170_v17 = vor.u32 %v4612_v16, %v4169_v14  ;;  %v4609_v23 = vld [vmem:[#allocation7 + $0xe0] sm:$0xf0] }
 0xb20   : > { %v2182_v25 = vmul.f32 %v5703_v24, %v5703_v24  ;;  %2400 = vmatpush.bf16.msra.mxu0 %v4170_v17 }
 0xb22   : > { %2184 = vadd.xlane.f32.xlu1 %v2182_v25  ;;  %v4608_v25 = vld [vmem:[#allocation7 + $0xdc] sm:$0xf] }
 0xb23   : > { %v2177_v26 = vpop.xlane.xlu1 %2176 }
 0xb24   : > { %v2179_v5 = vmul.f32 %v2177_v26, %v5565_v57  ;;  %v4158_v26 = vor.u32 %v4609_v23, %v4157_v22 }
 0xb26   : > { %v5708_v27 = vsub.f32 %v2171_v21, %v2179_v5  ;;  %v4178_v21 = vor.u32 %v4613_v19, %v4177_v63  ;;  %v4159_v5 = vld [vmem:[#allocation7 + $0xe4] sm:$0xf0]  ;;  %2401 = vmatpush.bf16.msra.mxu0 %v4158_v26 }
 0xb27   : > { %v4162_v30 = vor.u32 %v4608_v25, %v4159_v5 }
 0xb28   : > { %v2183_v28 = vmul.f32 %v5708_v27, %v5708_v27  ;;  %2428 = vmatpush.bf16.msra.mxu2 %v4178_v21 }
 0xb29   : > { %2415 = vmatpush.bf16.msra.mxu1 %v4162_v30 }
 0xb2a   : > { %2186 = vadd.xlane.f32.xlu1 %v2183_v28  ;;  %v4165_v28 = vld [vmem:[#allocation7 + $0xe0] sm:$0xf]  ;;  %2402 = vmatpush.bf16.msra.mxu0 %v4146_v38 }
 0xb2b   : > { %v4166_v32 = vor.u32 %v4610_v7, %v4165_v28 }
 0xb2d   : > { %2429 = vmatpush.bf16.msra.mxu2 %v4166_v32  ;;  %2416 = vmatpush.bf16.msra.mxu1 %v4150_v43 }
 0xb31   : > { %2430 = vmatpush.bf16.msra.mxu2 %v4154_v0 }
 0xb95   : > { %v2185_v29 = vpop.xlane.xlu1 %2184 }
 0xb96   : > { %v2188_v37 = vmul.f32 %v2185_v29, %v5565_v57 }
 0xb98   : > { %v2190_v44 = vadd.f32 1e-12, %v2188_v37 }
 0xb9a   : > { %4898 = vrsqrt.f32 %v2190_v44  ;;  %vm2198_vm10 = vweird.f32 %v2190_v44 }
 0xb9d   : > { %v2187_v45 = vpop.xlane.xlu1 %2186 }
 0xb9e   : > { %v2189_v46 = vmul.f32 %v2187_v45, %v5565_v57 }
 0xba0   : > { %v4899_v31 = vpop.eup %4898  ;;  %v2191_v47 = vadd.f32 1e-12, %v2189_v46 }
 0xba1   : > { %v2193_v49 = vmul.f32 %v4899_v31, %v2190_v44  ;;  %vm2199_vm9 = vweird.f32 %v4899_v31 }
 0xba2   : > { %4900 = vrsqrt.f32 %v2191_v47  ;;  %vm2200_vm11 = vmor %vm2198_vm10, %vm2199_vm9  ;;  %vm2208_vm13 = vweird.f32 %v2191_v47 }
 0xba3   : > { %v2194_v50 = vmul.f32 %v4899_v31, %v2193_v49 }
 0xba5   : > { %v2195_v39 = vmul.f32 0.5, %v2194_v50 }
 0xba7   : > { %v2196_v51 = vsub.f32 1.5, %v2195_v39 }
 0xba8   : > { %v4901_v40 = vpop.eup %4900 }
 0xba9   : > { %v2197_v52 = vmul.f32 %v4899_v31, %v2196_v51  ;;  %v2203_v53 = vmul.f32 %v4901_v40, %v2191_v47  ;;  %vm2209_vm12 = vweird.f32 %v4901_v40 }
 0xbaa   : > { %vm2210_vm14 = vmor %vm2208_vm13, %vm2209_vm12 }
 0xbab   : > { %v2204_v54 = vmul.f32 %v4901_v40, %v2203_v53  ;;  %v2201_v55 = vsel %vm2200_vm11, %v4899_v31, %v2197_v52 }
 0xbac   : > { %v2212_v59 = vmul.f32 %v2201_v55, %v5703_v24 }
 0xbad   : > { %v2205_v56 = vmul.f32 0.5, %v2204_v54 }
 0xbae   : > { %v2217_v3 = vmul.f32 %v4840_v61, %v2212_v59  ;;  %v4629_v59 = vld [vmem:[#allocation8 + $0x40] sm:$0xff] }
 0xbaf   : > { %v2206_v58 = vsub.f32 1.5, %v2205_v56 }
 0xbb0   : > { %v5722_v8 = vadd.f32 %v4841_v4, %v2217_v3 }
 0xbb1   : > { %v2207_v62 = vmul.f32 %v4901_v40, %v2206_v58  ;;  %v4630_v58 = vld [vmem:[#allocation8 + $0x48] sm:$0xff] }
 0xbb3   : > { %v2211_v1 = vsel %vm2210_vm14, %v4901_v40, %v2207_v62 }
 0xbb4   : > { %v2213_v2 = vmul.f32 %v2211_v1, %v5708_v27  ;;  %v4142_v27 = vld [vmem:[%s5895_s8 + $0x3] sm:$0x7] }
 0xbb5   : > { %v2261_v11 = vperm.slane %v4142_v27, 0  ;;  %v2262_v12 = vperm.slane %v4142_v27, 1  ;;  %v2263_v6 = vperm.slane %v4142_v27, 2 }
 0xbb6   : > { %v2218_v48 = vmul.f32 %v4840_v61, %v2213_v2 }
 0xbb8   : > { %v5724_v9 = vadd.f32 %v4841_v4, %v2218_v48 }
 0xbba   : > { %v2257_v24 = vpack.c.bf16 %v5724_v9, %v5722_v8 }
 0xbbc   : > { %2403 = vmatmul.bf16.vlgmr.msra.gmra.mxu0 %v2257_v24  ;;  %2417 = vmatmul.bf16.vlgmr.msra.gmra.mxu1 %v2257_v24 }
 0xbbd   : > { %2431 = vmatmul.bf16.vlgmr.msra.gmra.mxu2 %v2257_v24 }
 0xc39   : > { %v2404_v33 = vpop.f32.mrf.mxu0  ;;  %v2418_v10 = vpop.f32.mrf.mxu1 }
 0xc3a   : > { %v2405_v13 = vadd.f32 %v2404_v33, %v2261_v11  ;;  %v2419_v14 = vadd.f32 %v2418_v10, %v2262_v12 }
 0xc3c   : > { %v2437_v63 = vpack.c.bf16 %v2419_v14, %v2405_v13 }
 0xc3e   : > { %v2463_v23 = vunpack.c.h.b16 %v2437_v63  ;;  %v2460_v36 = vunpack.c.l.b16 %v2437_v63 }
 0xc40   : > { %v2432_v16 = vpop.f32.mrf.mxu2 }
 0xc41   : > { %v2406_v17 = vpop.f32.mrf.mxu0  ;;  %v2420_v18 = vpop.f32.mrf.mxu1  ;;  %v2433_v22 = vadd.f32 %v2432_v16, %v2263_v6 }
 0xc42   : > { %v2407_v19 = vadd.f32 %v2406_v17, %v2261_v11  ;;  %v2421_v20 = vadd.f32 %v2420_v18, %v2262_v12 }
 0xc43   : > { %v2438_v28 = vpack.c.bf16 %v2433_v22, %v2433_v22 }
 0xc44   : > { %v2439_v21 = vpack.c.bf16 %v2421_v20, %v2407_v19 }
 0xc45   : > { %v2515_v34 = vunpack.c.l.b16 %v2438_v28 }
 0xc46   : > { %v2464_v25 = vunpack.c.h.b16 %v2439_v21  ;;  %v2461_v32 = vunpack.c.l.b16 %v2439_v21 }
 0xc48   : > { %v2465_v26 = vpack.c.b16 %v2464_v25, %v2463_v23  ;;  %v2434_v5 = vpop.f32.mrf.mxu2  ;;  %v2462_v38 = vpack.c.b16 %v2461_v32, %v2460_v36 }
 0xc49   : > { %v2435_v7 = vadd.f32 %v2434_v5, %v2263_v6 }
 0xc4a   : > { %v2470_v29 = vsel %vm1369_vm0, %v2465_v26, 0 }
 0xc4b   : > { %v2440_v30 = vpack.c.bf16 %v2435_v7, %v2435_v7  ;;  %2479 = vmatpush.bf16.xpose.msra.mxu3 %v2470_v29 }
 0xc4d   : > { %v2516_v35 = vunpack.c.l.b16 %v2440_v30 }
 0xc4f   : > { %v5732_v37 = vpack.c.b16 %v2516_v35, %v2515_v34 }
 0xc52   : > { %4239 = vmatmul.msk.bf16.vlgmr.msra.gmra.mxu3 %vm1369_vm0, %v2462_v38 }
 0xc53   : > { %2529 = vmatpush.bf16.msrb.mxu3 %v5732_v37 }
 0xc57   : > { %2659 = vmatpush.bf16.msra.mxu3 %v4630_v58 }
 0xc5b   : > { %2660 = vmatpush.bf16.msra.mxu3 %v4629_v59 }
 0xcd5   : > { %v2481_v60 = vpop.f32.mrf.mxu3 }
 0xcd6   : > { %v2486_v41 = vmul.f32 0.17677669, %v2481_v60 }
 0xcd8   : > { %v2488_v42 = vadd.f32 %v2486_v41, %v5610_v15 }
 0xcda   : > { %v2490_v43 = vsel %vm1397_vm2, %v2488_v42, -inf }
 0xcdb   : > { %2491 = vmax.xlane.f32.xlu1 %v2490_v43 }
 0xcdd   : > { %v2483_v0 = vpop.f32.mrf.mxu3 }
 0xcde   : > { %v2487_v44 = vmul.f32 0.17677669, %v2483_v0 }
 0xce0   : > { %v2489_v45 = vadd.f32 %v2487_v44, %v5610_v15 }
 0xce2   : > { %v2493_v46 = vsel %vm1397_vm2, %v2489_v45, -inf }
 0xce3   : > { %2494 = vmax.xlane.f32.xlu0 %v2493_v46 }
 0xcf7   : > { %2539 = vrot.lane.b32.xlu0 %v2465_v26, %s5309_s2 }
 0xcff   : > { %2772 = vrot.lane.b32.xlu0 %v2465_v26, %s5312_s29 }
 0xd07   : > { %2770 = vrot.lane.b32.xlu0 %v2462_v38, %s5312_s29 }
 0xd4e   : > { %v2492_v31 = vpop.xlane.xlu1 %2491 }
 0xd4f   : > { %v2496_v47 = vsub.f32 %v2488_v42, %v2492_v31 }
 0xd51   : > { %v2498_v49 = vmul.f32 1.442695, %v2496_v47 }
 0xd53   : > { %4902 = vpow2.f32 %v2498_v49 }
 0xd56   : > { %v2495_v50 = vpop.xlane.xlu0 %2494 }
 0xd57   : > { %v2497_v39 = vsub.f32 %v2489_v45, %v2495_v50 }
 0xd59   : > { %v4903_v51 = vpop.eup %4902  ;;  %v2500_v40 = vmul.f32 1.442695, %v2497_v39 }
 0xd5a   : > { %v2502_v52 = vsel %vm1397_vm2, %v4903_v51, 0.0 }
 0xd5b   : > { %4904 = vpow2.f32 %v2500_v40  ;;  %2503 = vadd.xlane.f32.xlu1 %v2502_v52 }
 0xd61   : > { %v4905_v53 = vpop.eup %4904 }
 0xd62   : > { %v2505_v54 = vsel %vm1397_vm2, %v4905_v53, 0.0 }
 0xd63   : > { %2506 = vadd.xlane.f32.xlu2 %v2505_v54 }
 0xd69   : > { %v2540_v55 = vpop.permute.xlu0 %2539 }
 0xd6a   : > { %v2545_v56 = vsel %vm1369_vm0, %v2540_v55, 0 }
 0xd6b   : > { %2554 = vmatpush.bf16.xpose.msrb.mxu0 %v2545_v56 }
 0xd71   : > { %v2773_v24 = vpop.permute.xlu0 %2772 }
 0xd72   : > { %v2778_v10 = vsel %vm1369_vm0, %v2773_v24, 0 }
 0xd74   : > { %2537 = vrot.lane.b32.xlu1 %v2462_v38, %s5309_s2 }
 0xd79   : > { %v2771_v29 = vpop.permute.xlu0 %2770 }
 0xd7b   : > { %2669 = vrot.lane.b32.xlu2 %v2465_v26, %s5311_s7 }
 0xd7c   : > { %2667 = vrot.lane.b32.xlu1 %v2462_v38, %s5311_s7 }
 0xdce   : > { %v2504_v61 = vpop.xlane.xlu1 %2503 }
 0xdcf   : > { %4906 = vrcp.f32 %v2504_v61 }
 0xdd5   : > { %v4907_v1 = vpop.eup %4906 }
 0xdd6   : > { %v2507_v62 = vpop.xlane.xlu2 %2506  ;;  %v2510_v3 = vmul.f32 %v4907_v1, %v4903_v51 }
 0xdd7   : > { %4908 = vrcp.f32 %v2507_v62 }
 0xddd   : > { %v4909_v2 = vpop.eup %4908 }
 0xdde   : > { %v2511_v4 = vmul.f32 %v4909_v2, %v4905_v53  ;;  %v2670_v48 = vpop.permute.xlu2 %2669 }
 0xddf   : > { %v2675_v27 = vsel %vm1369_vm0, %v2670_v48, 0 }
 0xde0   : > { %v2512_v33 = vpack.c.bf16 %v2511_v4, %v2510_v3  ;;  %2684 = vmatpush.bf16.xpose.msra.mxu0 %v2675_v27 }
 0xde2   : > { %4240 = vmatmul.msk.bf16.vlgmr.msrb.gmra.mxu3 %vm1397_vm2, %v2512_v33 }
 0xde3   : > { %2787 = vmatpush.bf16.xpose.msrb.mxu3 %v2778_v10 }
 0xde6   : > { %v2538_v11 = vpop.permute.xlu1 %2537 }
 0xde7   : > { %4241 = vmatmul.msk.bf16.vlgmr.msrb.gmra.mxu0 %vm1369_vm0, %v2538_v11 }
 0xdee   : > { %v2668_v12 = vpop.permute.xlu1 %2667 }
 0xdf7   : > { %4261 = vmatmul.msk.bf16.vlgmr.msra.gmra.mxu0 %vm1369_vm0, %v2668_v12 }
 0xe64   : > { %v2556_v13 = vpop.f32.mrf.mxu0 }
 0xe65   : > { %v2561_v14 = vmul.f32 0.17677669, %v2556_v13  ;;  %v2531_v16 = vpop.f32.mrf.mxu3 }
 0xe67   : > { %v2563_v6 = vadd.f32 %v2561_v14, %v5610_v15 }
 0xe69   : > { %v2565_v17 = vsel %vm1397_vm2, %v2563_v6, -inf }
 0xe6a   : > { %2566 = vmax.xlane.f32.xlu2 %v2565_v17 }
 0xe6c   : > { %v2558_v18 = vpop.f32.mrf.mxu0 }
 0xe6d   : > { %v2562_v63 = vmul.f32 0.17677669, %v2558_v18  ;;  %v2533_v19 = vpop.f32.mrf.mxu3 }
 0xe6e   : > { %v2536_v20 = vpack.c.bf16 %v2533_v19, %v2531_v16 }
 0xe6f   : > { %v2564_v21 = vadd.f32 %v2562_v63, %v5610_v15 }
 0xe70   : > { %4260 = vmatmul.msk.bf16.vlgmr.msra.gmra.mxu3 %vm1369_vm0, %v2536_v20  ;;  %v4632_v20 = vld [vmem:[#allocation8 + $0x58] sm:$0xff] }
 0xe71   : > { %v2568_v22 = vsel %vm1397_vm2, %v2564_v21, -inf  ;;  %2630 = vmatpush.bf16.msrb.mxu2 %v4632_v20  ;;  %v4650_v20 = vld [vmem:[#allocation10 + $0xe4] sm:$0xf0] }
 0xe72   : > { %2569 = vmax.xlane.f32.xlu1 %v2568_v22 }
 0xe74   : > { %v2686_v23 = vpop.f32.mrf.mxu0 }
 0xe75   : > { %v2691_v25 = vmul.f32 0.17677669, %v2686_v23 }
 0xe77   : > { %v2693_v26 = vadd.f32 %v2691_v25, %v5610_v15 }
 0xe79   : > { %v2695_v5 = vsel %vm1397_vm2, %v2693_v26, -inf }
 0xe7a   : > { %2696 = vmax.xlane.f32.xlu0 %v2695_v5 }
 0xe7c   : > { %v2688_v28 = vpop.f32.mrf.mxu0 }
 0xe7d   : > { %v2692_v7 = vmul.f32 0.17677669, %v2688_v28 }
 0xe7f   : > { %v2694_v30 = vadd.f32 %v2692_v7, %v5610_v15 }
 0xe80   : > { %4272 = vmatmul.msk.bf16.vlgmr.msrb.gmra.mxu3 %vm1369_vm0, %v2771_v29 }
 0xe81   : > { %v2698_v32 = vsel %vm1397_vm2, %v2694_v30, -inf }
 0xe82   : > { %2699 = vmax.xlane.f32.xlu2 %v2698_v32 }
 0xedd   : > { %v2567_v34 = vpop.xlane.xlu2 %2566 }
 0xede   : > { %v2571_v35 = vsub.f32 %v2563_v6, %v2567_v34 }
 0xee0   : > { %v2573_v36 = vmul.f32 1.442695, %v2571_v35 }
 0xee2   : > { %4910 = vpow2.f32 %v2573_v36 }
 0xee5   : > { %v2570_v31 = vpop.xlane.xlu1 %2569 }
 0xee6   : > { %v2572_v47 = vsub.f32 %v2564_v21, %v2570_v31  ;;  %v4631_v21 = vld [vmem:[#allocation8 + $0x50] sm:$0xff]  ;;  %v4636_v31 = vld [vmem:[#allocation8 + $0x78] sm:$0xff] }
 0xee7   : > { %2631 = vmatpush.bf16.msrb.mxu2 %v4631_v21  ;;  %v4649_v21 = vld [vmem:[#allocation10 + $0xe4] sm:$0xf] }
 0xee8   : > { %v4911_v38 = vpop.eup %4910  ;;  %v2575_v49 = vmul.f32 1.442695, %v2572_v47  ;;  %v4635_v47 = vld [vmem:[#allocation8 + $0x70] sm:$0xff] }
 0xee9   : > { %v2577_v60 = vsel %vm1397_vm2, %v4911_v38, 0.0 }
 0xeea   : > { %2578 = vadd.xlane.f32.xlu0 %v2577_v60 }
 0xeed   : > { %v2697_v41 = vpop.xlane.xlu0 %2696 }
 0xeee   : > { %v2701_v42 = vsub.f32 %v2693_v26, %v2697_v41 }
 0xef0   : > { %v2703_v43 = vmul.f32 1.442695, %v2701_v42 }
 0xef2   : > { %4912 = vpow2.f32 %v2703_v43 }
 0xef3   : > { %v5765_v0 = vpop.f32.mrf.mxu3  ;;  %4914 = vpow2.f32 %v2575_v49 }
 0xef5   : > { %v2700_v39 = vpop.xlane.xlu2 %2699 }
 0xef6   : > { %v2702_v52 = vsub.f32 %v2694_v30, %v2700_v39 }
 0xef8   : > { %v5767_v44 = vpop.eup %4912  ;;  %v2705_v54 = vmul.f32 1.442695, %v2702_v52 }
 0xef9   : > { %v2707_v45 = vsel %vm1397_vm2, %v5767_v44, 0.0  ;;  %v4915_v58 = vpop.eup %4914 }
 0xefa   : > { %2708 = vadd.xlane.f32.xlu0 %v2707_v45  ;;  %4916 = vpow2.f32 %v2705_v54  ;;  %v2580_v61 = vsel %vm1397_vm2, %v4915_v58, 0.0  ;;  %v4633_v45 = vld [vmem:[#allocation8 + $0x60] sm:$0xff] }
 0xefb   : > { %v5771_v46 = vpop.f32.mrf.mxu3 }
 0xf00   : > { %v4917_v1 = vpop.eup %4916 }
 0xf01   : > { %v2710_v2 = vsel %vm1397_vm2, %v4917_v1, 0.0 }
 0xf03   : > { %v2789_v50 = vpop.f32.mrf.mxu3 }
 0xf04   : > { %v2794_v51 = vmul.f32 0.17677669, %v2789_v50 }
 0xf06   : > { %v2796_v40 = vadd.f32 %v2794_v51, %v5610_v15 }
 0xf08   : > { %v2798_v53 = vsel %vm1397_vm2, %v2796_v40, -inf }
 0xf09   : > { %2799 = vmax.xlane.f32.xlu1 %v2798_v53 }
 0xf0b   : > { %v2791_v55 = vpop.f32.mrf.mxu3 }
 0xf0c   : > { %v2795_v56 = vmul.f32 0.17677669, %v2791_v55 }
 0xf0e   : > { %v2797_v59 = vadd.f32 %v2795_v56, %v5610_v15 }
 0xf10   : > { %v2801_v62 = vsel %vm1397_vm2, %v2797_v59, -inf }
 0xf11   : > { %2581 = vadd.xlane.f32.xlu1 %v2580_v61  ;;  %2802 = vmax.xlane.f32.xlu2 %v2801_v62 }
 0xf19   : > { %2711 = vadd.xlane.f32.xlu1 %v2710_v2 }
 0xf29   : > { %2588 = vrot.lane.b32.xlu2 %v5732_v37, %s5309_s2  ;;  %s791_s2 = scalar_lea.vmem [#allocation16], %s4693_s13 }
 0xf2a   : > { %s3597_s20 = sshll.u32 %s791_s2, 4  ;;  %s3598_s20 = int_to_ptr.vmem [resolvable:$true] %s3597_s20 }
 0xf5d   : > { %v2579_v24 = vpop.xlane.xlu0 %2578 }
 0xf6d   : > { %v2709_v22 = vpop.xlane.xlu0 %2708 }
 0xf7c   : > { %v2800_v3 = vpop.xlane.xlu1 %2799 }
 0xf7d   : > { %v2804_v4 = vsub.f32 %v2796_v40, %v2800_v3 }
 0xf7f   : > { %v2806_v48 = vmul.f32 1.442695, %v2804_v4 }
 0xf81   : > { %4918 = vpow2.f32 %v2806_v48 }
 0xf82   : > { %4920 = vrcp.f32 %v2579_v24 }
 0xf84   : > { %v2582_v15 = vpop.xlane.xlu1 %2581  ;;  %v2803_v27 = vpop.xlane.xlu2 %2802 }
 0xf85   : > { %4922 = vrcp.f32 %v2582_v15  ;;  %v2805_v33 = vsub.f32 %v2797_v59, %v2803_v27  ;;  %v4842_v59 = vld [vmem:[%s5897_s10 + $0x1] ss:$0 sm:$0xff] }
 0xf87   : > { %v4919_v10 = vpop.eup %4918  ;;  %v2808_v11 = vmul.f32 1.442695, %v2805_v33 }
 0xf88   : > { %v2810_v12 = vsel %vm1397_vm2, %v4919_v10, 0.0  ;;  %v4921_v13 = vpop.eup %4920 }
 0xf89   : > { %4924 = vpow2.f32 %v2808_v11  ;;  %2811 = vadd.xlane.f32.xlu0 %v2810_v12  ;;  %v2585_v16 = vmul.f32 %v4921_v13, %v4911_v38 }
 0xf8b   : > { %v4923_v14 = vpop.eup %4922 }
 0xf8c   : > { %v2586_v6 = vmul.f32 %v4923_v14, %v4915_v58  ;;  %v2589_v17 = vpop.permute.xlu2 %2588  ;;  %v2712_v23 = vpop.xlane.xlu1 %2711 }
 0xf8d   : > { %2601 = vmatpush.bf16.msrb.mxu1 %v2589_v17  ;;  %4926 = vrcp.f32 %v2712_v23  ;;  %v4339_v23 = vld [vmem:[#allocation10 + $0xe8] sm:$0xf0] }
 0xf8e   : > { %v2587_v18 = vpack.c.bf16 %v2586_v6, %v2585_v16  ;;  %4928 = vrcp.f32 %v2709_v22  ;;  %v4652_v16 = vld [vmem:[#allocation10 + $0xf4] sm:$0xf0]  ;;  %v4651_v6 = vld [vmem:[#allocation10 + $0xf4] sm:$0xf] }
 0xf8f   : > { %v4925_v63 = vpop.eup %4924 }
 0xf90   : > { %4242 = vmatmul.msk.bf16.vlgmr.msrb.gmra.mxu1 %vm1397_vm2, %v2587_v18  ;;  %v2813_v19 = vsel %vm1397_vm2, %v4925_v63, 0.0  ;;  %v4347_v18 = vld [vmem:[#allocation10 + $0xf8] sm:$0xf0] }
 0xf91   : > { %2814 = vadd.xlane.f32.xlu1 %v2813_v19  ;;  %v4337_v19 = vld [vmem:[#allocation10 + $0xe0] sm:$0xf] }
 0xf92   : > { %v4338_v22 = vor.u32 %v4650_v20, %v4337_v19  ;;  %v4843_v19 = vld [vmem:[%s5898_s11 + $0x1] ss:$0 sm:$0xff] }
 0xf93   : > { %v4927_v26 = vpop.eup %4926 }
 0xf94   : > { %v4929_v5 = vpop.eup %4928  ;;  %v2716_v28 = vmul.f32 %v4927_v26, %v4917_v1  ;;  %v4329_v26 = vld [vmem:[#allocation10 + $0xd0] sm:$0xf] }
 0xf95   : > { %v2715_v30 = vmul.f32 %v4929_v5, %v5767_v44  ;;  %v4634_v44 = vld [vmem:[#allocation8 + $0x68] sm:$0xff]  ;;  %v4648_v5 = vld [vmem:[#allocation10 + $0xd4] sm:$0xf0] }
 0xf96   : > { %2760 = vmatpush.bf16.msra.mxu2 %v4634_v44  ;;  %v4315_v44 = vld [vmem:[#allocation10 + $0xb8] sm:$0xf0] }
 0xf97   : > { %v2717_v34 = vpack.c.bf16 %v2716_v28, %v2715_v30  ;;  %v4647_v28 = vld [vmem:[#allocation10 + $0xd4] sm:$0xf] }
 0xf9a   : > { %2761 = vmatpush.bf16.msra.mxu2 %v4633_v45 }
 0xf9d   : > { %2718 = vrot.lane.b32.xlu0 %v5732_v37, %s5311_s7  ;;  %s5956_s7 = sld [smem:[#allocation42_spill]] }
 0xfa3   : > { %s5226_s22 = scalar_lea.hbm %s5956_s7, 96 }
 0xfaa   : > { %2821 = vrot.lane.b32.xlu1 %v5732_v37, %s5312_s29  ;;  %s3596_s29 = scalar_lea.hbm %s5956_s7, %s4694_s30 }
 0xfab   : > { %s3599_s1 = sshll.u32 %s3596_s29, 4  ;;  %s3600_s1 = int_to_ptr.hbm [resolvable:$true] %s3599_s1 }
 0xfac   : > { %s5220_s21 = sshra.s32 %s3600_s1, 4  ;;  %s5221_s21 = int_to_ptr.hbm [resolvable:$true] %s5220_s21 }
 0xfad   : > { %s5222_s27 = scalar_lea.hbm %s5221_s21, 48  ;;  %p5227_p3 = scmp.lt.s32.totalorder %s5221_s21, %s5956_s7 }
 0xfae   : > { %p5223_p0 = scmp.ne.s32.totalorder %s5221_s21, %s5222_s27  ;;  %p5228_p4 = scmp.lt.s32.totalorder %s5226_s22, %s5222_s27 }
 0xfb0   : > { %p5224_p1 = pnand %p5223_p0, %p5463_p5  ;;  %p5229_p7 = por %p5228_p4, %p5227_p3 }
 0xfb2   : > { %p5225_p2 = pneg %p5224_p1 }
 0xfb4   : > { %p5230_p8 = pnand %p5229_p7, %p5225_p2 }
 0xffc   : > { %v2812_v25 = vpop.xlane.xlu0 %2811 }
0x1004   : > { %v2815_v29 = vpop.xlane.xlu1 %2814 }
0x1005   : > { %4930 = vrcp.f32 %v2815_v29  ;;  %v4331_v29 = vld [vmem:[#allocation10 + $0xd8] sm:$0xf0] }
0x1006   : > { %4932 = vrcp.f32 %v2812_v25  ;;  %v4342_v25 = vor.u32 %v4649_v21, %v4339_v23  ;;  %v4334_v30 = vor.u32 %v4647_v28, %v4331_v29  ;;  %v4668_v29 = vld [vmem:[#allocation11 + $0xf8] sm:$0xff] }
0x100b   : > { %v4931_v36 = vpop.eup %4930 }
0x100c   : > { %v4933_v38 = vpop.eup %4932  ;;  %v2819_v60 = vmul.f32 %v4931_v36, %v4925_v63  ;;  %v4350_v63 = vor.u32 %v4651_v6, %v4347_v18  ;;  %v4323_v36 = vld [vmem:[#allocation10 + $0xc8] sm:$0xf0] }
0x100d   : > { %v2603_v7 = vpop.f32.mrf.mxu1  ;;  %v2818_v41 = vmul.f32 %v4933_v38, %v4919_v10 }
0x100e   : > { %3055 = vmatpush.bf16.msra.mxu3 %v4350_v63 }
0x100f   : > { %v2719_v32 = vpop.permute.xlu0 %2718  ;;  %v2820_v43 = vpack.c.bf16 %v2819_v60, %v2818_v41  ;;  %v4313_v60 = vld [vmem:[#allocation10 + $0xb0] sm:$0xf]  ;;  %v4644_v41 = vld [vmem:[#allocation10 + $0xb4] sm:$0xf0] }
0x1010   : > { %2731 = vmatpush.bf16.msra.mxu1 %v2719_v32  ;;  %v4321_v32 = vld [vmem:[#allocation10 + $0xc0] sm:$0xf] }
0x1012   : > { %3056 = vmatpush.bf16.msra.mxu3 %v4342_v25  ;;  %v4844_v25 = vld [vmem:[%s5899_s12 + $0x1] ss:$0 sm:$0xff] }
0x1013   : > { %4262 = vmatmul.msk.bf16.vlgmr.msra.gmra.mxu1 %vm1397_vm2, %v2717_v34  ;;  %v4646_v34 = vld [vmem:[#allocation10 + $0xc4] sm:$0xf0] }
0x1014   : > { %2863 = vmatpush.bf16.msrb.mxu1 %v4636_v31  ;;  %v4305_v31 = vld [vmem:[#allocation10 + $0xa0] sm:$0xf] }
0x1015   : > { %v2605_v37 = vpop.f32.mrf.mxu1 }
0x1016   : > { %v2608_v35 = vpack.c.bf16 %v2605_v37, %v2603_v7  ;;  %v4330_v7 = vor.u32 %v4648_v5, %v4329_v26  ;;  %3057 = vmatpush.bf16.msra.mxu3 %v4334_v30  ;;  %v4645_v37 = vld [vmem:[#allocation10 + $0xc4] sm:$0xf]  ;;  %v4667_v30 = vld [vmem:[#allocation11 + $0xf0] sm:$0xff] }
0x1017   : > { %v4326_v38 = vor.u32 %v4645_v37, %v4323_v36  ;;  %v4657_v37 = vld [vmem:[#allocation11 + $0xa0] sm:$0xff]  ;;  %v4656_v36 = vld [vmem:[#allocation11 + $0x98] sm:$0xff] }
0x1018   : > { %4251 = vmatmul.msk.bf16.vlgmr.msrb.gmra.mxu2 %vm1369_vm0, %v2608_v35  ;;  %2864 = vmatpush.bf16.msrb.mxu1 %v4635_v47  ;;  %v4322_v35 = vor.u32 %v4646_v34, %v4321_v32  ;;  %v4642_v47 = vld [vmem:[#allocation10 + $0xa4] sm:$0xf0] }
0x1019   : > { %v4658_v32 = vld [vmem:[#allocation11 + $0xa8] sm:$0xff] }
0x101a   : > { %3058 = vmatpush.bf16.msra.mxu3 %v4326_v38  ;;  %v4666_v34 = vld [vmem:[#allocation11 + $0xe8] sm:$0xff]  ;;  %v4664_v38 = vld [vmem:[#allocation11 + $0xd8] sm:$0xff] }
0x101c   : > { %v2822_v42 = vpop.permute.xlu1 %2821  ;;  %3255 = vmatpush.bf16.msra.mxu1 %v4668_v29 }
0x101d   : > { %2834 = vmatpush.bf16.msrb.mxu0 %v2822_v42  ;;  %v4643_v42 = vld [vmem:[#allocation10 + $0xb4] sm:$0xf] }
0x101e   : > { %v4318_v45 = vor.u32 %v4643_v42, %v4315_v44  ;;  %v4286_v42 = vld [vmem:[%s5901_s14 + $0x2] sm:$0x3]  ;;  %v4662_v44 = vld [vmem:[#allocation11 + $0xc8] sm:$0xff] }
0x1020   : > { %4273 = vmatmul.msk.bf16.vlgmr.msrb.gmra.mxu0 %vm1397_vm2, %v2820_v43  ;;  %v4314_v43 = vor.u32 %v4644_v41, %v4313_v60  ;;  %3059 = vmatpush.bf16.msra.mxu3 %v4318_v45  ;;  %v4655_v60 = vld [vmem:[#allocation11 + $0x90] sm:$0xff]  ;;  %v2957_v45 = vperm.slane %v4286_v42, 0 }
0x1021   : > { %3256 = vmatpush.bf16.msra.mxu1 %v4667_v30  ;;  %v4663_v41 = vld [vmem:[#allocation11 + $0xd0] sm:$0xff] }
0x1025   : > { %3257 = vmatpush.bf16.msra.mxu1 %v4666_v34 }
0x1090   : > { %v2733_v49 = vpop.f32.mrf.mxu1 }
0x1098   : > { %v2735_v50 = vpop.f32.mrf.mxu1 }
0x1099   : > { %v2738_v39 = vpack.c.bf16 %v2735_v50, %v2733_v49  ;;  %v4641_v49 = vld [vmem:[#allocation10 + $0xa4] sm:$0xf]  ;;  %v4306_v50 = vor.u32 %v4642_v47, %v4305_v31  ;;  %v2958_v31 = vperm.slane %v4286_v42, 1 }
0x109b   : > { %4271 = vmatmul.msk.bf16.vlgmr.msra.gmra.mxu2 %vm1369_vm0, %v2738_v39  ;;  %v2633_v53 = vpop.f32.mrf.mxu2  ;;  %v4307_v39 = vld [vmem:[#allocation10 + $0xa8] sm:$0xf0] }
0x109c   : > { %v2663_v56 = vadd.f32 %v5765_v0, %v2633_v53  ;;  %v4639_v53 = vld [vmem:[#allocation10 + $0x94] sm:$0xf] }
0x109d   : > { %v2836_v51 = vpop.f32.mrf.mxu0 }
0x10a3   : > { %v2635_v54 = vpop.f32.mrf.mxu2 }
0x10a4   : > { %v2665_v3 = vadd.f32 %v5771_v46, %v2635_v54 }
0x10a5   : > { %v2838_v40 = vpop.f32.mrf.mxu0 }
0x10a6   : > { %v2841_v52 = vpack.c.bf16 %v2838_v40, %v2836_v51  ;;  %v4310_v51 = vor.u32 %v4641_v49, %v4307_v39  ;;  %v4297_v40 = vld [vmem:[#allocation10 + $0x90] sm:$0xf]  ;;  %v4661_v39 = vld [vmem:[#allocation11 + $0xc0] sm:$0xff] }
0x10a8   : > { %4282 = vmatmul.msk.bf16.vlgmr.msrb.gmra.mxu1 %vm1369_vm0, %v2841_v52  ;;  %3060 = vmatpush.bf16.msra.mxu3 %v4310_v51  ;;  %v4640_v52 = vld [vmem:[#allocation10 + $0x94] sm:$0xf0] }
0x10a9   : > { %v4298_v54 = vor.u32 %v4640_v52, %v4297_v40 }
0x111e   : > { %v2763_v55 = vpop.f32.mrf.mxu2 }
0x111f   : > { %v2768_v58 = vadd.f32 %v2763_v55, %v2663_v56  ;;  %v4299_v55 = vld [vmem:[#allocation10 + $0x98] sm:$0xf0]  ;;  %v4289_v56 = vld [vmem:[#allocation10 + $0x80] sm:$0xf] }
0x1125   : > { %v2866_v61 = vpop.f32.mrf.mxu1 }
0x1126   : > { %v2871_v62 = vadd.f32 %v2866_v61, %v2768_v58  ;;  %v2765_v2 = vpop.f32.mrf.mxu2  ;;  %v4638_v58 = vld [vmem:[#allocation10 + $0x84] sm:$0xf0]  ;;  %v4302_v61 = vor.u32 %v4639_v53, %v4299_v55 }
0x1127   : > { %v2769_v48 = vadd.f32 %v2765_v2, %v2665_v3  ;;  %v4290_v3 = vor.u32 %v4638_v58, %v4289_v56 }
0x1128   : > { %v2878_v1 = vadd.f32 %v4842_v59, %v2871_v62  ;;  %v4637_v62 = vld [vmem:[#allocation10 + $0x84] sm:$0xf]  ;;  %3061 = vmatpush.bf16.msra.mxu3 %v4302_v61 }
0x112a   : > { %v2880_v4 = vadd.f32 %v2878_v1, %v5722_v8  ;;  %v4291_v1 = vld [vmem:[#allocation10 + $0x88] sm:$0xf0] }
0x112c   : > { %2886 = vadd.xlane.f32.xlu2 %v2880_v4 }
0x112d   : > { %v2868_v24 = vpop.f32.mrf.mxu1 }
0x112e   : > { %v2872_v15 = vadd.f32 %v2868_v24, %v2769_v48 }
0x1130   : > { %v2879_v27 = vadd.f32 %v4842_v59, %v2872_v15 }
0x1132   : > { %v2881_v0 = vadd.f32 %v2879_v27, %v5724_v9  ;;  %v4345_v9 = vld [vmem:[#allocation10 + $0xf0] sm:$0xf] }
0x1133   : > { %v4346_v17 = vor.u32 %v4652_v16, %v4345_v9 }
0x1134   : > { %2888 = vadd.xlane.f32.xlu0 %v2881_v0 }
0x1135   : > { %3041 = vmatpush.bf16.msrb.mxu2 %v4346_v17 }
0x1139   : > { %3042 = vmatpush.bf16.msrb.mxu2 %v4338_v22 }
0x113d   : > { %3043 = vmatpush.bf16.msrb.mxu2 %v4330_v7  ;;  %v4660_v7 = vld [vmem:[#allocation11 + $0xb8] sm:$0xff] }
0x113e   : > { %3241 = vmatpush.bf16.msra.mxu0 %v4660_v7 }
0x1141   : > { %3044 = vmatpush.bf16.msrb.mxu2 %v4322_v35  ;;  %v4665_v35 = vld [vmem:[#allocation11 + $0xe0] sm:$0xff] }
0x1142   : > { %3258 = vmatpush.bf16.msra.mxu1 %v4665_v35 }
0x1145   : > { %3045 = vmatpush.bf16.msrb.mxu2 %v4314_v43  ;;  %v4654_v43 = vld [vmem:[#allocation11 + $0x88] sm:$0xff] }
0x1146   : > { %3259 = vmatpush.bf16.msra.mxu1 %v4664_v38 }
0x1149   : > { %3046 = vmatpush.bf16.msrb.mxu2 %v4306_v50  ;;  %v4653_v50 = vld [vmem:[#allocation11 + $0x80] sm:$0xff] }
0x114a   : > { %3260 = vmatpush.bf16.msra.mxu1 %v4663_v41 }
0x114d   : > { %3047 = vmatpush.bf16.msrb.mxu2 %v4298_v54 }
0x114e   : > { %3261 = vmatpush.bf16.msra.mxu1 %v4662_v44 }
0x1151   : > { %3048 = vmatpush.bf16.msrb.mxu2 %v4290_v3 }
0x1152   : > { %3262 = vmatpush.bf16.msra.mxu1 %v4661_v39 }
0x119f   : > { %v2887_v33 = vpop.xlane.xlu2 %2886 }
0x11a0   : > { %v2890_v10 = vmul.f32 %v2887_v33, %v5565_v57 }
0x11a2   : > { %v5802_v11 = vsub.f32 %v2880_v4, %v2890_v10  ;;  %v4294_v4 = vor.u32 %v4637_v62, %v4291_v1 }
0x11a4   : > { %v2894_v12 = vmul.f32 %v5802_v11, %v5802_v11  ;;  %3062 = vmatpush.bf16.msra.mxu3 %v4294_v4 }
0x11a6   : > { %2896 = vadd.xlane.f32.xlu1 %v2894_v12 }
0x11a7   : > { %v2889_v46 = vpop.xlane.xlu0 %2888 }
0x11a8   : > { %v2891_v8 = vmul.f32 %v2889_v46, %v5565_v57 }
0x11aa   : > { %v5807_v13 = vsub.f32 %v2881_v0, %v2891_v8 }
0x11ac   : > { %v2895_v14 = vmul.f32 %v5807_v13, %v5807_v13 }
0x11ae   : > { %2898 = vadd.xlane.f32.xlu2 %v2895_v14 }
0x1219   : > { %v2897_v59 = vpop.xlane.xlu1 %2896 }
0x121a   : > { %v2900_v2 = vmul.f32 %v2897_v59, %v5565_v57 }
0x121c   : > { %v2902_v48 = vadd.f32 1e-12, %v2900_v2 }
0x121e   : > { %4934 = vrsqrt.f32 %v2902_v48  ;;  %vm2910_vm0 = vweird.f32 %v2902_v48 }
0x1221   : > { %v2899_v24 = vpop.xlane.xlu2 %2898 }
0x1222   : > { %v2901_v15 = vmul.f32 %v2899_v24, %v5565_v57 }
0x1224   : > { %v4935_v27 = vpop.eup %4934  ;;  %v2903_v0 = vadd.f32 1e-12, %v2901_v15 }
0x1225   : > { %v2905_v33 = vmul.f32 %v4935_v27, %v2902_v48  ;;  %vm2911_vm15 = vweird.f32 %v4935_v27 }
0x1226   : > { %4936 = vrsqrt.f32 %v2903_v0  ;;  %vm2912_vm1 = vmor %vm2910_vm0, %vm2911_vm15  ;;  %vm2920_vm3 = vweird.f32 %v2903_v0 }
0x1227   : > { %v2906_v10 = vmul.f32 %v4935_v27, %v2905_v33 }
0x1229   : > { %v2907_v12 = vmul.f32 0.5, %v2906_v10 }
0x122b   : > { %v2908_v46 = vsub.f32 1.5, %v2907_v12 }
0x122c   : > { %v4937_v8 = vpop.eup %4936 }
0x122d   : > { %v2909_v14 = vmul.f32 %v4935_v27, %v2908_v46  ;;  %v2915_v9 = vmul.f32 %v4937_v8, %v2903_v0  ;;  %vm2921_vm2 = vweird.f32 %v4937_v8 }
0x122e   : > { %vm2922_vm4 = vmor %vm2920_vm3, %vm2921_vm2 }
0x122f   : > { %v2916_v16 = vmul.f32 %v4937_v8, %v2915_v9  ;;  %v2913_v6 = vsel %vm2912_vm1, %v4935_v27, %v2909_v14 }
0x1230   : > { %v2924_v63 = vmul.f32 %v2913_v6, %v5802_v11 }
0x1231   : > { %v2917_v17 = vmul.f32 0.5, %v2916_v16 }
0x1232   : > { %v2929_v23 = vmul.f32 %v4843_v19, %v2924_v63 }
0x1233   : > { %v2918_v18 = vsub.f32 1.5, %v2917_v17 }
0x1234   : > { %v5821_v5 = vadd.f32 %v4844_v25, %v2929_v23 }
0x1235   : > { %v2919_v20 = vmul.f32 %v4937_v8, %v2918_v18 }
0x1237   : > { %v2923_v21 = vsel %vm2922_vm4, %v4937_v8, %v2919_v20 }
0x1238   : > { %v2925_v22 = vmul.f32 %v2923_v21, %v5807_v13  ;;  %v4659_v13 = vld [vmem:[#allocation11 + $0xb0] sm:$0xff] }
0x1239   : > { %3242 = vmatpush.bf16.msra.mxu0 %v4659_v13 }
0x123a   : > { %v2930_v26 = vmul.f32 %v4843_v19, %v2925_v22 }
0x123c   : > { %v5823_v28 = vadd.f32 %v4844_v25, %v2930_v26 }
0x123d   : > { %3243 = vmatpush.bf16.msra.mxu0 %v4658_v32  ;;  %v4845_v32 = vld [vmem:[#allocation13 + $0x1] ss:$0 sm:$0xff] }
0x123e   : > { %v2953_v11 = vpack.c.bf16 %v5823_v28, %v5821_v5 }
0x1240   : > { %3049 = vmatmul.bf16.vlgmr.msrb.gmra.mxu2 %v2953_v11  ;;  %3063 = vmatmul.bf16.vlgmr.msra.gmra.mxu3 %v2953_v11 }
0x1241   : > { %3244 = vmatpush.bf16.msra.mxu0 %v4657_v37 }
0x1245   : > { %3245 = vmatpush.bf16.msra.mxu0 %v4656_v36 }
0x1249   : > { %3246 = vmatpush.bf16.msra.mxu0 %v4655_v60 }
0x124d   : > { %3247 = vmatpush.bf16.msra.mxu0 %v4654_v43 }
0x1251   : > { %3248 = vmatpush.bf16.msra.mxu0 %v4653_v50 }
0x12c3   : > { %v3050_v47 = vpop.f32.mrf.mxu2  ;;  %v3064_v49 = vpop.f32.mrf.mxu3 }
0x12c4   : > { %v3051_v51 = vadd.f32 %v3050_v47, %v2957_v45  ;;  %v3065_v40 = vadd.f32 %v3064_v49, %v2958_v31 }
0x12c6   : > { %v3069_v52 = vmul.f32 %v3051_v51, %v3051_v51  ;;  %v3070_v53 = vmul.f32 %v3065_v40, %v3065_v40 }
0x12c8   : > { %v3073_v54 = vmul.f32 %v3069_v52, %v3051_v51  ;;  %v3074_v55 = vmul.f32 %v3070_v53, %v3065_v40  ;;  %v4690_v52 = vld [vmem:[#allocation14 + $0xac] sm:$0xf] }
0x12ca   : > { %v3077_v56 = vmul.f32 0.044715, %v3073_v54  ;;  %v3078_v58 = vmul.f32 0.044715, %v3074_v55  ;;  %v4505_v54 = vld [vmem:[#allocation14 + $0xb4] sm:$0xf0] }
0x12cb   : > { %v3052_v59 = vpop.f32.mrf.mxu2  ;;  %v3066_v61 = vpop.f32.mrf.mxu3  ;;  %v4511_v55 = vld [vmem:[#allocation14 + $0xb0] sm:$0xf] }
0x12cc   : > { %v3081_v62 = vadd.f32 %v3077_v56, %v3051_v51  ;;  %v3082_v1 = vadd.f32 %v3078_v58, %v3065_v40  ;;  %v3053_v2 = vadd.f32 %v3052_v59, %v2957_v45  ;;  %v3067_v3 = vadd.f32 %v3066_v61, %v2958_v31  ;;  %v4692_v56 = vld [vmem:[#allocation14 + $0xb8] sm:$0xf0]  ;;  %v4491_v61 = vld [vmem:[#allocation14 + $0x90] sm:$0xf] }
0x12cd   : > { %v4508_v58 = vor.u32 %v4690_v52, %v4505_v54  ;;  %v4512_v59 = vor.u32 %v4692_v56, %v4511_v55  ;;  %v4670_v54 = vld [vmem:[#allocation14 + $0x8] sm:$0xf0]  ;;  %v4669_v55 = vld [vmem:[#allocation14 + $0x4] sm:$0xf] }
0x12ce   : > { %v3085_v4 = vmul.f32 0.7978846, %v3081_v62  ;;  %v3071_v48 = vmul.f32 %v3053_v2, %v3053_v2  ;;  %v3072_v24 = vmul.f32 %v3067_v3, %v3067_v3  ;;  %v3086_v15 = vmul.f32 0.7978846, %v3082_v1  ;;  %v4688_v62 = vld [vmem:[#allocation14 + $0x98] sm:$0xf0] }
0x12cf   : > { %3508 = vmatpush.bf16.msrb.mxu3 %v4508_v58  ;;  %3522 = vmatpush.bf16.msrb.mxu0 %v4512_v59  ;;  %v4687_v1 = vld [vmem:[#allocation14 + $0x94] sm:$0xf]  ;;  %v4421_v59 = vld [vmem:[#allocation14 + $0xc] sm:$0xf0] }
0x12d0   : > { %v3075_v27 = vmul.f32 %v3071_v48, %v3053_v2  ;;  %v3076_v0 = vmul.f32 %v3072_v24, %v3067_v3  ;;  %4938 = vtanh.f32 %v3085_v4  ;;  %v4499_v4 = vld [vmem:[#allocation14 + $0x98] sm:$0xf]  ;;  %v4689_v48 = vld [vmem:[#allocation14 + $0xa0] sm:$0xf0] }
0x12d1   : > { %4940 = vtanh.f32 %v3086_v15  ;;  %v4500_v15 = vor.u32 %v4689_v48, %v4499_v4 }
0x12d2   : > { %v3079_v33 = vmul.f32 0.044715, %v3075_v27  ;;  %v3080_v10 = vmul.f32 0.044715, %v3076_v0  ;;  %v4479_v27 = vld [vmem:[#allocation14 + $0x78] sm:$0xf] }
0x12d3   : > { %3523 = vmatpush.bf16.msrb.mxu0 %v4500_v15  ;;  %v4685_v0 = vld [vmem:[#allocation14 + $0x80] sm:$0xf0] }
0x12d4   : > { %v3083_v12 = vadd.f32 %v3079_v33, %v3053_v2  ;;  %v3084_v46 = vadd.f32 %v3080_v10, %v3067_v3  ;;  %v4684_v33 = vld [vmem:[#allocation14 + $0x7c] sm:$0xf]  ;;  %v4480_v10 = vor.u32 %v4685_v0, %v4479_v27 }
0x12d6   : > { %v3087_v8 = vmul.f32 0.7978846, %v3083_v12  ;;  %v3088_v14 = vmul.f32 0.7978846, %v3084_v46  ;;  %v4939_v9 = vpop.eup %4938  ;;  %v4481_v12 = vld [vmem:[#allocation14 + $0x84] sm:$0xf0] }
0x12d7   : > { %v4941_v16 = vpop.eup %4940  ;;  %v3093_v6 = vadd.f32 1.0, %v4939_v9  ;;  %v4487_v46 = vld [vmem:[#allocation14 + $0x80] sm:$0xf] }
0x12d8   : > { %4942 = vtanh.f32 %v3087_v8  ;;  %v3094_v17 = vadd.f32 1.0, %v4941_v16  ;;  %v4686_v8 = vld [vmem:[#allocation14 + $0x88] sm:$0xf0]  ;;  %v4467_v16 = vld [vmem:[#allocation14 + $0x60] sm:$0xf] }
0x12d9   : > { %4944 = vtanh.f32 %v3088_v14  ;;  %v3097_v19 = vmul.f32 0.5, %v3093_v6  ;;  %v4484_v14 = vor.u32 %v4684_v33, %v4481_v12  ;;  %v4488_v9 = vor.u32 %v4686_v8, %v4487_v46  ;;  %v4682_v6 = vld [vmem:[#allocation14 + $0x68] sm:$0xf0] }
0x12da   : > { %v3098_v21 = vmul.f32 0.5, %v3094_v17  ;;  %v4681_v17 = vld [vmem:[#allocation14 + $0x64] sm:$0xf] }
0x12db   : > { %v3101_v26 = vmul.f32 %v3097_v19, %v3051_v51  ;;  %3524 = vmatpush.bf16.msrb.mxu0 %v4488_v9  ;;  %v4475_v19 = vld [vmem:[#allocation14 + $0x68] sm:$0xf] }
0x12dc   : > { %v3102_v7 = vmul.f32 %v3098_v21, %v3065_v40  ;;  %v4691_v40 = vld [vmem:[#allocation14 + $0xb0] sm:$0xf0] }
0x12de   : > { %v4943_v18 = vpop.eup %4942 }
0x12df   : > { %v4945_v63 = vpop.eup %4944  ;;  %v3095_v20 = vadd.f32 1.0, %v4943_v18  ;;  %v4468_v18 = vor.u32 %v4682_v6, %v4467_v16 }
0x12e0   : > { %v3096_v22 = vadd.f32 1.0, %v4945_v63  ;;  %v4469_v63 = vld [vmem:[#allocation14 + $0x6c] sm:$0xf0] }
0x12e1   : > { %v3099_v23 = vmul.f32 0.5, %v3095_v20  ;;  %v4683_v20 = vld [vmem:[#allocation14 + $0x70] sm:$0xf0]  ;;  %v4472_v21 = vor.u32 %v4681_v17, %v4469_v63  ;;  %v4846_v17 = vld [vmem:[%s5904_s17 + $0x1] ss:$0 sm:$0xff] }
0x12e2   : > { %v3100_v25 = vmul.f32 0.5, %v3096_v22  ;;  %v4476_v22 = vor.u32 %v4683_v20, %v4475_v19 }
0x12e3   : > { %v3103_v11 = vmul.f32 %v3099_v23, %v3053_v2  ;;  %v4492_v2 = vor.u32 %v4688_v62, %v4491_v61  ;;  %v4455_v23 = vld [vmem:[#allocation14 + $0x48] sm:$0xf]  ;;  %v4671_v62 = vld [vmem:[#allocation14 + $0x10] sm:$0xf0] }
0x12e4   : > { %v3104_v29 = vmul.f32 %v3100_v25, %v3067_v3  ;;  %v4493_v3 = vld [vmem:[#allocation14 + $0x9c] sm:$0xf0]  ;;  %3525 = vmatpush.bf16.msrb.mxu0 %v4476_v22  ;;  %v4679_v25 = vld [vmem:[#allocation14 + $0x50] sm:$0xf0]  ;;  %v4427_v61 = vld [vmem:[#allocation14 + $0x8] sm:$0xf] }
0x12e5   : > { %v3138_v13 = vpack.c.bf16 %v3103_v11, %v3101_v26  ;;  %v4496_v24 = vor.u32 %v4687_v1, %v4493_v3  ;;  %v4678_v26 = vld [vmem:[#allocation14 + $0x4c] sm:$0xf]  ;;  %v4456_v11 = vor.u32 %v4679_v25, %v4455_v23  ;;  %v4424_v1 = vor.u32 %v4669_v55, %v4421_v59 }
0x12e6   : > { %v3139_v30 = vpack.c.bf16 %v3104_v29, %v3102_v7  ;;  %v4457_v7 = vld [vmem:[#allocation14 + $0x54] sm:$0xf0]  ;;  %v4463_v29 = vld [vmem:[#allocation14 + $0x50] sm:$0xf] }
0x12e7   : > { %3249 = vmatmul.bf16.vlgmr.msra.gmra.mxu0 %v3138_v13  ;;  %3509 = vmatpush.bf16.msrb.mxu3 %v4496_v24  ;;  %v4680_v13 = vld [vmem:[#allocation14 + $0x58] sm:$0xf0] }
0x12e8   : > { %3263 = vmatmul.bf16.vlgmr.msra.gmra.mxu1 %v3139_v30  ;;  %v4460_v30 = vor.u32 %v4678_v26, %v4457_v7 }
0x12eb   : > { %3510 = vmatpush.bf16.msrb.mxu3 %v4484_v14 }
0x12ef   : > { %3511 = vmatpush.bf16.msrb.mxu3 %v4472_v21  ;;  %v4847_v21 = vld [vmem:[%s5905_s18 + $0x1] ss:$0 sm:$0xff] }
0x12f3   : > { %3512 = vmatpush.bf16.msrb.mxu3 %v4460_v30 }
0x1364   : > { %v3250_v34 = vpop.f32.mrf.mxu0 }
0x1365   : > { %v3251_v37 = vadd.f32 %v4845_v32, %v3250_v34  ;;  %v3264_v35 = vpop.f32.mrf.mxu1  ;;  %v4443_v34 = vld [vmem:[#allocation14 + $0x30] sm:$0xf] }
0x1367   : > { %v3265_v36 = vadd.f32 %v3264_v35, %v3251_v37  ;;  %v4676_v37 = vld [vmem:[#allocation14 + $0x38] sm:$0xf0]  ;;  %v4675_v35 = vld [vmem:[#allocation14 + $0x34] sm:$0xf] }
0x1369   : > { %v3269_v38 = vadd.f32 %v3265_v36, %v5821_v5  ;;  %v4444_v36 = vor.u32 %v4676_v37, %v4443_v34 }
0x136b   : > { %3275 = vadd.xlane.f32.xlu2 %v3269_v38 }
0x136c   : > { %v3252_v60 = vpop.f32.mrf.mxu0 }
0x136d   : > { %v3253_v41 = vadd.f32 %v4845_v32, %v3252_v60  ;;  %v3266_v42 = vpop.f32.mrf.mxu1  ;;  %v4464_v32 = vor.u32 %v4680_v13, %v4463_v29  ;;  %v4451_v60 = vld [vmem:[#allocation14 + $0x38] sm:$0xf] }
0x136f   : > { %v3267_v43 = vadd.f32 %v3266_v42, %v3253_v41  ;;  %3526 = vmatpush.bf16.msrb.mxu0 %v4464_v32  ;;  %v4677_v41 = vld [vmem:[#allocation14 + $0x40] sm:$0xf0] }
0x1371   : > { %v3270_v44 = vadd.f32 %v3267_v43, %v5823_v28  ;;  %v4503_v28 = vld [vmem:[#allocation14 + $0xa8] sm:$0xf]  ;;  %v4452_v43 = vor.u32 %v4677_v41, %v4451_v60 }
0x1372   : > { %v4504_v53 = vor.u32 %v4691_v40, %v4503_v28 }
0x1373   : > { %3277 = vadd.xlane.f32.xlu0 %v3270_v44  ;;  %3527 = vmatpush.bf16.msrb.mxu0 %v4452_v43 }
0x1374   : > { %3494 = vmatpush.bf16.msra.mxu2 %v4504_v53  ;;  %v4419_v53 = vld [vmem:[#allocation14] sm:$0xf] }
0x1375   : > { %v4420_v58 = vor.u32 %v4670_v54, %v4419_v53 }
0x1378   : > { %3495 = vmatpush.bf16.msra.mxu2 %v4492_v2  ;;  %v4428_v2 = vor.u32 %v4671_v62, %v4427_v61 }
0x137c   : > { %3496 = vmatpush.bf16.msra.mxu2 %v4480_v10 }
0x1380   : > { %3497 = vmatpush.bf16.msra.mxu2 %v4468_v18 }
0x1384   : > { %3498 = vmatpush.bf16.msra.mxu2 %v4456_v11 }
0x1388   : > { %3499 = vmatpush.bf16.msra.mxu2 %v4444_v36 }
0x13de   : > { %v3276_v45 = vpop.xlane.xlu2 %3275 }
0x13df   : > { %v3279_v31 = vmul.f32 %v3276_v45, %v5565_v57  ;;  %v4673_v45 = vld [vmem:[#allocation14 + $0x20] sm:$0xf0] }
0x13e1   : > { %v5833_v47 = vsub.f32 %v3269_v38, %v3279_v31  ;;  %v4445_v38 = vld [vmem:[#allocation14 + $0x3c] sm:$0xf0]  ;;  %v4672_v31 = vld [vmem:[#allocation14 + $0x1c] sm:$0xf] }
0x13e2   : > { %v4448_v42 = vor.u32 %v4675_v35, %v4445_v38 }
0x13e3   : > { %v3283_v49 = vmul.f32 %v5833_v47, %v5833_v47 }
0x13e4   : > { %3513 = vmatpush.bf16.msrb.mxu3 %v4448_v42 }
0x13e5   : > { %3285 = vadd.xlane.f32.xlu2 %v3283_v49 }
0x13e6   : > { %v3278_v50 = vpop.xlane.xlu0 %3277 }
0x13e7   : > { %v3280_v5 = vmul.f32 %v3278_v50, %v5565_v57  ;;  %v4433_v50 = vld [vmem:[#allocation14 + $0x24] sm:$0xf0] }
0x13e8   : > { %v4436_v40 = vor.u32 %v4672_v31, %v4433_v50 }
0x13e9   : > { %v5838_v39 = vsub.f32 %v3270_v44, %v3280_v5  ;;  %v4431_v44 = vld [vmem:[#allocation14 + $0x18] sm:$0xf]  ;;  %v4439_v5 = vld [vmem:[#allocation14 + $0x20] sm:$0xf] }
0x13ea   : > { %v4432_v49 = vor.u32 %v4673_v45, %v4431_v44  ;;  %3514 = vmatpush.bf16.msrb.mxu3 %v4436_v40 }
0x13eb   : > { %v3284_v51 = vmul.f32 %v5838_v39, %v5838_v39 }
0x13ec   : > { %3500 = vmatpush.bf16.msra.mxu2 %v4432_v49 }
0x13ed   : > { %3287 = vadd.xlane.f32.xlu0 %v3284_v51  ;;  %v4674_v51 = vld [vmem:[#allocation14 + $0x28] sm:$0xf0] }
0x13ee   : > { %v4440_v52 = vor.u32 %v4674_v51, %v4439_v5  ;;  %3515 = vmatpush.bf16.msrb.mxu3 %v4424_v1 }
0x13f0   : > { %3528 = vmatpush.bf16.msrb.mxu0 %v4440_v52  ;;  %3501 = vmatpush.bf16.msra.mxu2 %v4420_v58 }
0x13f4   : > { %3529 = vmatpush.bf16.msrb.mxu0 %v4428_v2 }
0x1458   : > { %v3286_v28 = vpop.xlane.xlu2 %3285 }
0x1459   : > { %v3289_v56 = vmul.f32 %v3286_v28, %v5565_v57 }
0x145b   : > { %v3291_v3 = vadd.f32 1e-12, %v3289_v56 }
0x145d   : > { %4946 = vrsqrt.f32 %v3291_v3  ;;  %vm3299_vm6 = vweird.f32 %v3291_v3 }
0x1460   : > { %v3288_v4 = vpop.xlane.xlu0 %3287 }
0x1461   : > { %v3290_v48 = vmul.f32 %v3288_v4, %v5565_v57 }
0x1463   : > { %v4947_v24 = vpop.eup %4946  ;;  %v3292_v15 = vadd.f32 1e-12, %v3290_v48 }
0x1464   : > { %v3294_v27 = vmul.f32 %v4947_v24, %v3291_v3  ;;  %vm3300_vm5 = vweird.f32 %v4947_v24 }
0x1465   : > { %4948 = vrsqrt.f32 %v3292_v15  ;;  %vm3301_vm7 = vmor %vm3299_vm6, %vm3300_vm5  ;;  %vm3309_vm9 = vweird.f32 %v3292_v15 }
0x1466   : > { %v3295_v0 = vmul.f32 %v4947_v24, %v3294_v27 }
0x1468   : > { %v3296_v33 = vmul.f32 0.5, %v3295_v0 }
0x146a   : > { %v3297_v10 = vsub.f32 1.5, %v3296_v33 }
0x146b   : > { %v4949_v12 = vpop.eup %4948 }
0x146c   : > { %v3298_v46 = vmul.f32 %v4947_v24, %v3297_v10  ;;  %v3304_v8 = vmul.f32 %v4949_v12, %v3292_v15  ;;  %vm3310_vm8 = vweird.f32 %v4949_v12 }
0x146d   : > { %vm3311_vm10 = vmor %vm3309_vm9, %vm3310_vm8 }
0x146e   : > { %v3305_v14 = vmul.f32 %v4949_v12, %v3304_v8  ;;  %v3302_v9 = vsel %vm3301_vm7, %v4947_v24, %v3298_v46 }
0x146f   : > { %v3313_v57 = vmul.f32 %v3302_v9, %v5833_v47  ;;  %v3358_v47 = vld [vmem:[%s5954_s0] sm:$0x7] }
0x1470   : > { %v3306_v16 = vmul.f32 0.5, %v3305_v14  ;;  %v3362_v7 = vperm.slane %v3358_v47, 2  ;;  %v3360_v29 = vperm.slane %v3358_v47, 0 }
0x1471   : > { %v3318_v20 = vmul.f32 %v4846_v17, %v3313_v57 }
0x1472   : > { %v3307_v6 = vsub.f32 1.5, %v3306_v16 }
0x1473   : > { %v3323_v23 = vadd.f32 %v4847_v21, %v3318_v20 }
0x1474   : > { %v3308_v18 = vmul.f32 %v4949_v12, %v3307_v6 }
0x1476   : > { %v3312_v63 = vsel %vm3311_vm10, %v4949_v12, %v3308_v18 }
0x1477   : > { %v3314_v19 = vmul.f32 %v3312_v63, %v5838_v39  ;;  %v3361_v39 = vperm.slane %v3358_v47, 1 }
0x1479   : > { %v3319_v22 = vmul.f32 %v4846_v17, %v3314_v19 }
0x147b   : > { %v3324_v25 = vadd.f32 %v4847_v21, %v3319_v22 }
0x147d   : > { %v3357_v26 = vpack.c.bf16 %v3324_v25, %v3323_v23 }
0x147f   : > { %3502 = vmatmul.bf16.vlgmr.msra.gmra.mxu2 %v3357_v26  ;;  %3516 = vmatmul.bf16.vlgmr.msrb.gmra.mxu3 %v3357_v26 }
0x1480   : > { %3530 = vmatmul.bf16.vlgmr.msrb.gmra.mxu0 %v3357_v26 }
0x14fd   : > { %v3531_v11 = vpop.f32.mrf.mxu0 }
0x14fe   : > { %v3532_v32 = vadd.f32 %v3531_v11, %v3362_v7 }
0x1502   : > { %v3503_v13 = vpop.f32.mrf.mxu2  ;;  %v3517_v30 = vpop.f32.mrf.mxu3 }
0x1503   : > { %v3504_v34 = vadd.f32 %v3503_v13, %v3360_v29  ;;  %v3518_v35 = vadd.f32 %v3517_v30, %v3361_v39 }
0x1505   : > { %v3536_v37 = vmax.f32 %v3504_v34, %v3532_v32  ;;  %v3533_v38 = vpop.f32.mrf.mxu0 }
0x1506   : > { %v3534_v42 = vadd.f32 %v3533_v38, %v3362_v7 }
0x1507   : > { %v3537_v36 = vmax.f32 %v3536_v37, %v3518_v35 }
0x1509   : > { %3538 = vmax.xlane.f32.xlu1 %v3537_v36 }
0x150a   : > { %v3505_v60 = vpop.f32.mrf.mxu2  ;;  %v3519_v41 = vpop.f32.mrf.mxu3 }
0x150b   : > { %v3506_v43 = vadd.f32 %v3505_v60, %v3360_v29  ;;  %v3520_v45 = vadd.f32 %v3519_v41, %v3361_v39 }
0x150d   : > { %v3540_v44 = vmax.f32 %v3506_v43, %v3534_v42 }
0x150f   : > { %v3541_v31 = vmax.f32 %v3540_v44, %v3520_v45 }
0x1511   : > { %3542 = vmax.xlane.f32.xlu2 %v3541_v31 }
0x157c   : > { %v3539_v49 = vpop.xlane.xlu1 %3538 }
0x157d   : > { %v3544_v50 = vsub.f32 %v3504_v34, %v3539_v49  ;;  %v3545_v5 = vsub.f32 %v3518_v35, %v3539_v49  ;;  %v3546_v51 = vsub.f32 %v3532_v32, %v3539_v49 }
0x157f   : > { %v3550_v28 = vmul.f32 1.442695, %v3544_v50  ;;  %v3552_v40 = vmul.f32 1.442695, %v3545_v5  ;;  %v3554_v52 = vmul.f32 1.442695, %v3546_v51 }
0x1581   : > { %4950 = vpow2.f32 %v3550_v28 }
0x1582   : > { %4952 = vpow2.f32 %v3552_v40 }
0x1583   : > { %4954 = vpow2.f32 %v3554_v52 }
0x1584   : > { %v3543_v53 = vpop.xlane.xlu2 %3542 }
0x1585   : > { %v3547_v54 = vsub.f32 %v3506_v43, %v3543_v53  ;;  %v3548_v55 = vsub.f32 %v3520_v45, %v3543_v53  ;;  %v3549_v56 = vsub.f32 %v3534_v42, %v3543_v53 }
0x1587   : > { %v4951_v58 = vpop.eup %4950  ;;  %v3556_v59 = vmul.f32 1.442695, %v3547_v54  ;;  %v3558_v61 = vmul.f32 1.442695, %v3548_v55  ;;  %v3560_v1 = vmul.f32 1.442695, %v3549_v56 }
0x1588   : > { %v4953_v62 = vpop.eup %4952 }
0x1589   : > { %4956 = vpow2.f32 %v3556_v59  ;;  %v3562_v2 = vadd.f32 %v4953_v62, %v4951_v58  ;;  %v4955_v3 = vpop.eup %4954 }
0x158a   : > { %4958 = vpow2.f32 %v3558_v61 }
0x158b   : > { %v3563_v4 = vadd.f32 %v4955_v3, %v3562_v2  ;;  %4960 = vpow2.f32 %v3560_v1 }
0x158d   : > { %3564 = vadd.xlane.f32.xlu0 %v3563_v4 }
0x158f   : > { %v4957_v48 = vpop.eup %4956 }
0x1590   : > { %v4959_v24 = vpop.eup %4958 }
0x1591   : > { %v3566_v15 = vadd.f32 %v4959_v24, %v4957_v48  ;;  %v4961_v27 = vpop.eup %4960 }
0x1593   : > { %v3567_v0 = vadd.f32 %v4961_v27, %v3566_v15 }
0x1595   : > { %3568 = vadd.xlane.f32.xlu1 %v3567_v0 }
0x1600   : > { %v3565_v33 = vpop.xlane.xlu0 %3564 }
0x1601   : > { %4962 = vrcp.f32 %v3565_v33 }
0x1607   : > { %v4963_v10 = vpop.eup %4962 }
0x1608   : > { %v3572_v12 = vmul.f32 %v4963_v10, %v4951_v58  ;;  %v3573_v46 = vmul.f32 %v4963_v10, %v4953_v62  ;;  %v3574_v8 = vmul.f32 %v4963_v10, %v4955_v3  ;;  %v3569_v14 = vpop.xlane.xlu1 %3568 }
0x1609   : > { %4964 = vrcp.f32 %v3569_v14 }
0x160a   : > { %3578 = vst [vmem:[%s791_s2] sm:$0xff] %v3572_v12 }
0x160b   : > { %3579 = vst [vmem:[%s791_s2 + $0x8] sm:$0xff] %v3573_v46 }
0x160c   : > { %3580 = vst [vmem:[%s791_s2 + $0x10] sm:$0xff] %v3574_v8 }
0x160f   : > { %v4965_v9 = vpop.eup %4964 }
0x1610   : > { %v3575_v16 = vmul.f32 %v4965_v9, %v4957_v48  ;;  %v3576_v6 = vmul.f32 %v4965_v9, %v4959_v24  ;;  %v3577_v57 = vmul.f32 %v4965_v9, %v4961_v27 }
0x1612   : > { %3581 = vst [vmem:[%s791_s2 + $0x18] sm:$0xff] %v3575_v16 }
0x1613   : > { %3582 = vst [vmem:[%s791_s2 + $0x20] sm:$0xff] %v3576_v6 }
0x1614   : > { %3583 = vst [vmem:[%s791_s2 + $0x28] sm:$0xff] %v3577_v57 }
0x1615   : > { %5233 = shalt.err (!%p5230_p8)
}
0x1616   : > { %s5313_s9 = smov 384   ;;  %s5314_s24 = smov 24  }
0x1617   : > { %4727 = dma.vmem_to_hbm [thread:$0]  (%p5463_p5), %s3598_s20, 768, %s3600_s1, %s3585_s3, %s5313_s9, %s5313_s9, %s5314_s24  }
0x1618 PF: > { %s5958_s13 = sld [smem:[#allocation26_spill]] }
0x1619   : > { %s5959_s30 = sld [smem:[#allocation23_spill]] }
0x161e   : > { %p4774_p9 = scmp.ge.s32.totalorder %s5958_s13, 2 }
0x161f   : > { %s3614_s23 = sand.u32 1, %s5959_s30  }
0x1620   : > { %p4755_p10 = pnand %p4774_p9, %p5467_p6  ;;  %s3615_s26 = scalar_lea.sflag [#allocation4], %s3614_s23 }
0x1622   : > { %p4756_p11 = pneg %p4755_p10 }
0x1624   : > { %5271 = dma.done.wait (%p4756_p11), %s3615_s26, 768  }
0x1625   : > { %5273 = vsyncadd (%p4756_p11), %s3615_s26, 4294966528  ;;  %s5961_s27 = sld [smem:[#allocation27_spill]] }
0x1626   : > { %s5962_s2 = sld [smem:[#allocation24_spill]] }
0x1627   : > { %s5963_s25 = sld [smem:[#allocation25_spill]] }
0x1628   : > { %s5964_s26 = sld [smem:[#allocation28_spill]] }
0x162b   : > { %p36_p12 = scmp.ge.s32.totalorder %s5961_s27, 4  }
0x162d   :  { %38 = sbr.rel (!%p36_p12) target bundleno = 21 (0x15), region = 187 }
0x1632   :  { %3621 = vsyncpa [#allocation3], 1 }
0x1633   :  { %3623 = vsyncpa [#allocation3 + $0x1], 1 }
0x1634   :  { %3624 = vsyncpa [#allocation6], 1 }
0x1635   :  { %3625 = vsyncpa [#allocation9], 1 }
0x1636   :  { %3626 = vsyncpa [#allocation12], 1 }
0x1637   :  { %3627 = vsyncpa [#allocation15], 1 }
0x1638   :  { %3628 = vsyncpa [#allocation4], 1 }
0x1639   :  { %3630 = vsyncpa [#allocation4 + $0x1], 1 }

</bundles_post_ra>
